<compile_context>
chip_gen: v5e
topology: v5e:2x2
jax: 0.10.0
libtpu: 0.0.40
codegen_flags: <defaults>
</compile_context>

<pallas_src>
import jax
import jax.numpy as jnp
from jax.experimental import pallas as pl
from jax.experimental.pallas import tpu as pltpu

# ----------------------------- configuration --------------------------------
B, T, H, W, C = 2, 4, 16, 16, 4      # video shape
F_DIM = 32                           # encoder feature dim
N_SLOTS = 4                          # number of object slots
S = 32                               # slot dim
D = 32                               # attention inner dim
HID = 32                             # MLP hidden dim
HW = H * W
THW = T * HW

# --------------------------- packed weight slab -----------------------------
def _align8(n):
    return (n + 7) & ~7

_SLAB_SPECS = [                       # (name, rows, cols)
    ("enc_w", F_DIM, C), ("wq", S, D), ("wkv", 2 * D, F_DIM), ("wo", D, S),
    ("fw1a", S, HID), ("fw1b", S, HID), ("fw2", HID, 2),
    ("nwf", HID, C), ("nwfl", HID, 2), ("nw2", C, HID),
    ("slots0", N_SLOTS, S),
    ("enc_b", F_DIM, 1), ("nb1", HID, 1), ("nb2", C, 1),
    ("bo", 1, S), ("fb1", 1, HID), ("fb2", 1, 2),
]
SLAB_OFF = {}
_row = 0
for _name, _rows, _cols in _SLAB_SPECS:
    SLAB_OFF[_name] = _row
    _row = _align8(_row + _rows)
SLAB_ROWS = _align8(_row)             # 432
SLAB_COLS = 32
_SLAB_DIMS = {n: (r, c) for n, r, c in _SLAB_SPECS}


def pack_slab(params):
    """Concatenate every small weight/bias into one (SLAB_ROWS, 32) f32 slab (1 DMA)."""
    entries = {
        "enc_w": params["enc_w"].T,                                             # (F, C)
        "wq": params["wq"],                                                     # (S, D)
        "wkv": jnp.concatenate([params["wk"].T, params["wv"].T], axis=0),       # (2D, F)
        "wo": params["wo"],                                                     # (D, S)
        "fw1a": params["flow_w1"][:S],
        "fw1b": params["flow_w1"][S:],
        "fw2": params["flow_w2"],                                               # (HID, 2)
        "nwf": params["nf_wf"].T,                                               # (HID, C)
        "nwfl": params["nf_wfl"].T,                                             # (HID, 2)
        "nw2": params["nf_w2"].T,                                               # (C, HID)
        "slots0": params["slots_init"],                                         # (N, S)
        "enc_b": params["enc_b"].reshape(F_DIM, 1),
        "nb1": params["nf_b1"].reshape(HID, 1),
        "nb2": params["nf_b2"].reshape(C, 1),
        "bo": params["bo"].reshape(1, S),
        "fb1": params["flow_b1"].reshape(1, HID),
        "fb2": params["flow_b2"].reshape(1, 2),
    }
    slab = jnp.zeros((SLAB_ROWS, SLAB_COLS), jnp.float32)
    for name, arr in entries.items():
        rows, cols = _SLAB_DIMS[name]
        off = SLAB_OFF[name]
        slab = slab.at[off:off + rows, :cols].set(arr.astype(jnp.float32))
    return slab


# ------------------------------- fused kernel --------------------------------
def make_fused_kernel(bb):
    """bb = number of batch elements folded into one grid step (1 on v7x, B elsewhere)."""

    def kernel(video_ref,                 # (1, C, bb*THW)  feature-major video block
               pos_ref,                   # (F, HW)
               slab_ref,                  # (SLAB_ROWS, 32) packed weights
               slots_out_ref,             # (bb, N, T*S)        lane-dense
               attn_out_ref,              # (bb, N, THW)        lane-dense
               flow_out_ref,              # (bb, 2, (T-1)*HW)   lane-dense
               pred_out_ref):             # (bb, C, (T-1)*HW)   lane-dense

        def ld(name):                      # static, 8-row-aligned slab slices
            rows, cols = _SLAB_DIMS[name]
            off = SLAB_OFF[name]
            blk = slab_ref[off:off + rows, :]
            return blk if cols == SLAB_COLS else blk[:, :cols]

        enc_w, enc_b = ld("enc_w"), ld("enc_b")
        wq, wkv, wo, bo = ld("wq"), ld("wkv"), ld("wo"), ld("bo")
        fw1a, fw1b, fb1 = ld("fw1a"), ld("fw1b"), ld("fb1")
        fw2, fb2 = ld("fw2"), ld("fb2")
        nwf, nwfl, nb1 = ld("nwf"), ld("nwfl"), ld("nb1")
        nw2, nb2 = ld("nw2"), ld("nb2")
        slots0 = ld("slots0")
        pos = pos_ref[...]                                                     # (F, HW)
        x = video_ref[0]                                                       # (C, bb*THW)

        # encoder (1x1 conv + relu), one matmul over all bb*T*HW tokens,
        # then additive pos embed via 256-lane-aligned per-frame slices.
        enc_pre = jnp.dot(enc_w, x, preferred_element_type=jnp.float32)        # (F, bb*THW)
        enc_pre = jnp.maximum(enc_pre + enc_b, 0.0)
        enc = jnp.concatenate(
            [enc_pre[:, f * HW:(f + 1) * HW] + pos for f in range(bb * T)], axis=1)

        # fused k/v projection: ONE matmul, split in-register.
        kv = jnp.dot(wkv, enc, preferred_element_type=jnp.float32)             # (2D, bb*THW)
        k = kv[:D]
        v = kv[D:]
        scale = D ** -0.5
        eps = 1e-8

        def inverted_attention(slots, k_tok):
            """Softmax over the slot axis, independently per token."""
            q = jnp.dot(slots, wq, preferred_element_type=jnp.float32)         # (N, D)
            logits = jnp.dot(q, k_tok, preferred_element_type=jnp.float32) * scale
            logits = logits - jnp.max(logits, axis=0, keepdims=True)
            e = jnp.exp(logits)
            return e * pl.reciprocal(jnp.sum(e, axis=0, keepdims=True), approx=True)

        def weighted_mean(attn, v_tok):
            """Epsilon-normalized token-weighted mean of v; tiny attn matrix stays lhs."""
            wgt = attn * pl.reciprocal(jnp.sum(attn, axis=1, keepdims=True) + eps,
                                       approx=True)                            # (N, L)
            return jax.lax.dot_general(wgt, v_tok, (((1,), (1,)), ((), ())),
                                       preferred_element_type=jnp.float32)     # (N, D)

        for b in range(bb):                # static unroll over batch elements in this block
            off = b * THW
            k_b = k[:, off:off + THW]                                           # (D, THW)
            v_b = v[:, off:off + THW]                                           # (D, THW)

            # ---- pass 1: video-level slot attention over all T*HW tokens ------
            attn0 = inverted_attention(slots0, k_b)                             # (N, THW)
            upd0 = weighted_mean(attn0, v_b)                                    # (N, D)
            slots1 = slots0 + jnp.dot(upd0, wo, preferred_element_type=jnp.float32) + bo

            # ---- pass 2: framewise attention (slots reused; no repeat_interleave)
            attn1 = inverted_attention(slots1, k_b)                             # (N, THW)
            attn_out_ref[b] = attn1

            upd_t = [weighted_mean(attn1[:, t * HW:(t + 1) * HW],
                                   v_b[:, t * HW:(t + 1) * HW]) for t in range(T)]
            proj = jnp.dot(jnp.concatenate(upd_t, axis=0), wo,                  # one (T*N,D)@(D,S)
                           preferred_element_type=jnp.float32)
            slots_t = [slots1 + proj[t * N_SLOTS:(t + 1) * N_SLOTS] + bo for t in range(T)]
            slots_out_ref[b] = jnp.concatenate(slots_t, axis=1)                 # (N, T*S) one store

            # ---- flow MLP on adjacent slot pairs, batched over (T-1)*N rows ----
            prev = jnp.concatenate(slots_t[:-1], axis=0)                        # ((T-1)*N, S)
            nxt = jnp.concatenate(slots_t[1:], axis=0)
            hmid = jnp.dot(prev, fw1a, preferred_element_type=jnp.float32)
            hmid = hmid + jnp.dot(nxt, fw1b, preferred_element_type=jnp.float32)
            hmid = jnp.maximum(hmid + fb1, 0.0)                                 # ((T-1)*N, HID)
            sflow = (jnp.dot(hmid, fw2, preferred_element_type=jnp.float32) + fb2) * 20.0

            # ---- dense-flow rendering (masks == attention maps) ----------------
            flow_parts = []
            for t in range(T - 1):
                sf_t = sflow[t * N_SLOTS:(t + 1) * N_SLOTS]                     # (N, 2)
                att_t = attn1[:, t * HW:(t + 1) * HW]                           # (N, HW)
                flow_parts.append(
                    jax.lax.dot_general(sf_t, att_t, (((0,), (0,)), ((), ())),
                                        preferred_element_type=jnp.float32))    # (2, HW)
            flow_full = jnp.concatenate(flow_parts, axis=1)                     # (2, (T-1)*HW)
            flow_out_ref[b] = flow_full

            # ---- next-frame per-pixel MLP, batched across the T-1 frames -------
            frames = x[:, off:off + (T - 1) * HW]                               # (C, (T-1)*HW)
            hh = jnp.dot(nwf, frames, preferred_element_type=jnp.float32)
            hh = hh + jnp.dot(nwfl, flow_full, preferred_element_type=jnp.float32)
            hh = jnp.maximum(hh + nb1, 0.0)                                     # (HID, (T-1)*HW)
            pred_out_ref[b] = (jnp.dot(nw2, hh, preferred_element_type=jnp.float32) + nb2)

    return kernel


# ------------------------------ pallas wrapper --------------------------------
def make_forward(bb):
    grid = (B // bb,)
    lb = bb * THW
    kernel = make_fused_kernel(bb)
    inv2 = lambda i: (0, 0)
    sem = ("parallel",) if grid[0] > 1 else ("arbitrary",)

    call = pl.pallas_call(
        kernel,
        out_shape=(
            jax.ShapeDtypeStruct((B, N_SLOTS, T * S), jnp.float32),
            jax.ShapeDtypeStruct((B, N_SLOTS, THW), jnp.float32),
            jax.ShapeDtypeStruct((B, 2, (T - 1) * HW), jnp.float32),
            jax.ShapeDtypeStruct((B, C, (T - 1) * HW), jnp.float32),
        ),
        grid=grid,
        in_specs=[
            pl.BlockSpec((1, C, lb), lambda i: (i, 0, 0)),
            pl.BlockSpec((F_DIM, HW), inv2),
            pl.BlockSpec((SLAB_ROWS, SLAB_COLS), inv2),
        ],
        out_specs=(
            pl.BlockSpec((bb, N_SLOTS, T * S), lambda i: (i, 0, 0)),
            pl.BlockSpec((bb, N_SLOTS, THW), lambda i: (i, 0, 0)),
            pl.BlockSpec((bb, 2, (T - 1) * HW), lambda i: (i, 0, 0)),
            pl.BlockSpec((bb, C, (T - 1) * HW), lambda i: (i, 0, 0)),
        ),
        compiler_params=pltpu.CompilerParams(dimension_semantics=sem),
    )

    @jax.jit
    def forward(video, params):
        # ---- wrapper-side layout plumbing (pure XLA) ---------------------------
        vid_cm = jnp.transpose(video.reshape(B, T * HW, C), (0, 2, 1))           # (B, C, THW)
        vid_in = jnp.transpose(vid_cm.reshape(B // bb, bb, C, THW),
                               (0, 2, 1, 3)).reshape(B // bb, C, bb * THW)
        pos_fm = params["pos"].T                                                  # (F, HW)
        slab = pack_slab(params)

        slots_lane, attn, flow_ld, pred_ld = call(vid_in, pos_fm, slab)

        # ---- un-reshape lane-dense kernel outputs ------------------------------
        slots_t = jnp.transpose(slots_lane.reshape(B, N_SLOTS, T, S), (0, 2, 1, 3))
        att_btnp = jnp.transpose(attn.reshape(B, N_SLOTS, T, HW), (0, 2, 1, 3))   # (B,T,N,HW)
        att_out = jnp.transpose(att_btnp, (0, 1, 3, 2))                           # (B,T,HW,N)
        # mask_decoder is None -> masks = attention maps; eval-mode segmentation
        pred_seg = jnp.argmax(att_btnp, axis=2).reshape(B, T, H, W)[..., None]

        images_flow = jnp.transpose(flow_ld.reshape(B, 2, T - 1, HW),
                                    (0, 2, 3, 1)).reshape(B, T - 1, H, W, 2)
        pred_frames = jnp.transpose(pred_ld.reshape(B, C, T - 1, HW),
                                    (0, 2, 3, 1)).reshape(B, T - 1, H, W, C)
        pred_frames = jnp.concatenate([video[:, :1], pred_frames], axis=1)        # (B,T,H,W,C)

        return pred_frames, pred_seg, images_flow, slots_t, att_out

    return forward


# ------------------------------ parameters -----------------------------------
def init_params(key):
    ks = jax.random.split(key, 12)
    sc = 0.1
    return {
        "enc_w": jax.random.normal(ks[0], (C, F_DIM), jnp.float32) * sc,
        "enc_b": jnp.zeros((F_DIM,), jnp.float32),
        "pos": jax.random.normal(ks[1], (HW, F_DIM), jnp.float32) * sc,
        "slots_init": jax.random.normal(ks[2], (N_SLOTS, S), jnp.float32) * sc,
        "wq": jax.random.normal(ks[3], (S, D), jnp.float32) * sc,
        "wk": jax.random.normal(ks[4], (F_DIM, D), jnp.float32) * sc,
        "wv": jax.random.normal(ks[5], (F_DIM, D), jnp.float32) * sc,
        "wo": jax.random.normal(ks[6], (D, S), jnp.float32) * sc,
        "bo": jnp.zeros((S,), jnp.float32),
        "flow_w1": jax.random.normal(ks[7], (2 * S, HID), jnp.float32) * sc,
        "flow_b1": jnp.zeros((HID,), jnp.float32),
        "flow_w2": jax.random.normal(ks[8], (HID, 2), jnp.float32) * sc,
        "flow_b2": jnp.zeros((2,), jnp.float32),
        "nf_wf": jax.random.normal(ks[9], (C, HID), jnp.float32) * sc,
        "nf_wfl": jax.random.normal(ks[10], (2, HID), jnp.float32) * sc,
        "nf_b1": jnp.zeros((HID,), jnp.float32),
        "nf_w2": jax.random.normal(ks[11], (HID, C), jnp.float32) * sc,
        "nf_b2": jnp.zeros((C,), jnp.float32),
    }


# ---------------------------------- main --------------------------------------
if __name__ == "__main__":
    key = jax.random.PRNGKey(0)
    k_vid, k_par = jax.random.split(key)
    video = jax.random.normal(k_vid, (B, T, H, W, C), jnp.float32)
    params = init_params(k_par)

    # v7x has 2 TensorCores/chip -> keep a 2-wide "parallel" grid (one batch element per TC);
    # single-TC chips (v5e / v6e) fold the whole batch into one grid step.
    try:
        kind = jax.devices()[0].device_kind.lower()
    except Exception:
        kind = ""
    batch_block = 1 if "7" in kind else B

    forward = make_forward(batch_block)
    outs = jax.block_until_ready(forward(video, params))
    pred_frames, pred_seg, images_flow, slots_t, att_out = outs

    assert pred_frames.shape == (B, T, H, W, C)
    assert pred_seg.shape == (B, T, H, W, 1)
    assert images_flow.shape == (B, T - 1, H, W, 2)
    assert slots_t.shape == (B, T, N_SLOTS, S)
    assert att_out.shape == (B, T, H * W, N_SLOTS)
    print("KERNEL_OK")
</pallas_src>

<mosaic_0001>
module attributes {stable_mosaic.version = 11 : i64} {
  func.func @kernel(%arg0: i32, %arg1: memref<1x4x2048xf32, #tpu.memory_space<vmem>>, %arg2: memref<32x256xf32, #tpu.memory_space<vmem>>, %arg3: memref<432x32xf32, #tpu.memory_space<vmem>>, %arg4: memref<2x4x128xf32, #tpu.memory_space<vmem>>, %arg5: memref<2x4x1024xf32, #tpu.memory_space<vmem>>, %arg6: memref<2x2x768xf32, #tpu.memory_space<vmem>>, %arg7: memref<2x4x768xf32, #tpu.memory_space<vmem>>) attributes {dimension_semantics = [#tpu.dimension_semantics<arbitrary>], iteration_bounds = array<i64: 1>, scalar_prefetch = 0 : i64, scratch_operands = 0 : i64, tpu.core_type = #tpu.core_type<tc>, window_params = [{transform_indices = @transform_0, window_bounds = array<i64: 1, 4, 2048>}, {pipeline_mode = #tpu.pipeline_mode<synchronous>, transform_indices = @transform_1, window_bounds = array<i64: 32, 256>}, {pipeline_mode = #tpu.pipeline_mode<synchronous>, transform_indices = @transform_2, window_bounds = array<i64: 432, 32>}, {transform_indices = @transform_3, window_bounds = array<i64: 2, 4, 128>}, {transform_indices = @transform_4, window_bounds = array<i64: 2, 4, 1024>}, {transform_indices = @transform_5, window_bounds = array<i64: 2, 2, 768>}, {transform_indices = @transform_6, window_bounds = array<i64: 2, 4, 768>}]} {
    %c0 = arith.constant 0 : index
    %c0_0 = arith.constant 0 : index
    %0 = vector.load %arg3[%c0, %c0_0] : memref<432x32xf32, #tpu.memory_space<vmem>>, vector<32x32xf32>
    %1 = vector.extract_strided_slice %0 {offsets = [0, 0], sizes = [32, 4], strides = [1, 1]} : vector<32x32xf32> to vector<32x4xf32>
    %c336 = arith.constant 336 : index
    %c0_1 = arith.constant 0 : index
    %2 = vector.load %arg3[%c336, %c0_1] : memref<432x32xf32, #tpu.memory_space<vmem>>, vector<32x32xf32>
    %3 = vector.extract_strided_slice %2 {offsets = [0, 0], sizes = [32, 1], strides = [1, 1]} : vector<32x32xf32> to vector<32x1xf32>
    %c32 = arith.constant 32 : index
    %c0_2 = arith.constant 0 : index
    %4 = vector.load %arg3[%c32, %c0_2] : memref<432x32xf32, #tpu.memory_space<vmem>>, vector<32x32xf32>
    %c64 = arith.constant 64 : index
    %c0_3 = arith.constant 0 : index
    %5 = vector.load %arg3[%c64, %c0_3] : memref<432x32xf32, #tpu.memory_space<vmem>>, vector<64x32xf32>
    %c128 = arith.constant 128 : index
    %c0_4 = arith.constant 0 : index
    %6 = vector.load %arg3[%c128, %c0_4] : memref<432x32xf32, #tpu.memory_space<vmem>>, vector<32x32xf32>
    %c408 = arith.constant 408 : index
    %c0_5 = arith.constant 0 : index
    %7 = vector.load %arg3[%c408, %c0_5] : memref<432x32xf32, #tpu.memory_space<vmem>>, vector<1x32xf32>
    %c160 = arith.constant 160 : index
    %c0_6 = arith.constant 0 : index
    %8 = vector.load %arg3[%c160, %c0_6] : memref<432x32xf32, #tpu.memory_space<vmem>>, vector<32x32xf32>
    %c192 = arith.constant 192 : index
    %c0_7 = arith.constant 0 : index
    %9 = vector.load %arg3[%c192, %c0_7] : memref<432x32xf32, #tpu.memory_space<vmem>>, vector<32x32xf32>
    %c416 = arith.constant 416 : index
    %c0_8 = arith.constant 0 : index
    %10 = vector.load %arg3[%c416, %c0_8] : memref<432x32xf32, #tpu.memory_space<vmem>>, vector<1x32xf32>
    %c224 = arith.constant 224 : index
    %c0_9 = arith.constant 0 : index
    %11 = vector.load %arg3[%c224, %c0_9] : memref<432x32xf32, #tpu.memory_space<vmem>>, vector<32x32xf32>
    %12 = vector.extract_strided_slice %11 {offsets = [0, 0], sizes = [32, 2], strides = [1, 1]} : vector<32x32xf32> to vector<32x2xf32>
    %c424 = arith.constant 424 : index
    %c0_10 = arith.constant 0 : index
    %13 = vector.load %arg3[%c424, %c0_10] : memref<432x32xf32, #tpu.memory_space<vmem>>, vector<1x32xf32>
    %14 = vector.extract_strided_slice %13 {offsets = [0, 0], sizes = [1, 2], strides = [1, 1]} : vector<1x32xf32> to vector<1x2xf32>
    %c256 = arith.constant 256 : index
    %c0_11 = arith.constant 0 : index
    %15 = vector.load %arg3[%c256, %c0_11] : memref<432x32xf32, #tpu.memory_space<vmem>>, vector<32x32xf32>
    %16 = vector.extract_strided_slice %15 {offsets = [0, 0], sizes = [32, 4], strides = [1, 1]} : vector<32x32xf32> to vector<32x4xf32>
    %c288 = arith.constant 288 : index
    %c0_12 = arith.constant 0 : index
    %17 = vector.load %arg3[%c288, %c0_12] : memref<432x32xf32, #tpu.memory_space<vmem>>, vector<32x32xf32>
    %18 = vector.extract_strided_slice %17 {offsets = [0, 0], sizes = [32, 2], strides = [1, 1]} : vector<32x32xf32> to vector<32x2xf32>
    %c368 = arith.constant 368 : index
    %c0_13 = arith.constant 0 : index
    %19 = vector.load %arg3[%c368, %c0_13] : memref<432x32xf32, #tpu.memory_space<vmem>>, vector<32x32xf32>
    %20 = vector.extract_strided_slice %19 {offsets = [0, 0], sizes = [32, 1], strides = [1, 1]} : vector<32x32xf32> to vector<32x1xf32>
    %c320 = arith.constant 320 : index
    %c0_14 = arith.constant 0 : index
    %21 = vector.load %arg3[%c320, %c0_14] : memref<432x32xf32, #tpu.memory_space<vmem>>, vector<4x32xf32>
    %c400 = arith.constant 400 : index
    %c0_15 = arith.constant 0 : index
    %22 = vector.load %arg3[%c400, %c0_15] : memref<432x32xf32, #tpu.memory_space<vmem>>, vector<4x32xf32>
    %23 = vector.extract_strided_slice %22 {offsets = [0, 0], sizes = [4, 1], strides = [1, 1]} : vector<4x32xf32> to vector<4x1xf32>
    %c328 = arith.constant 328 : index
    %c0_16 = arith.constant 0 : index
    %24 = vector.load %arg3[%c328, %c0_16] : memref<432x32xf32, #tpu.memory_space<vmem>>, vector<4x32xf32>
    %c0_17 = arith.constant 0 : index
    %c0_18 = arith.constant 0 : index
    %25 = vector.load %arg2[%c0_17, %c0_18] : memref<32x256xf32, #tpu.memory_space<vmem>>, vector<32x256xf32>
    %c0_19 = arith.constant 0 : index
    %c0_20 = arith.constant 0 : index
    %c0_21 = arith.constant 0 : index
    %26 = vector.load %arg1[%c0_19, %c0_20, %c0_21] : memref<1x4x2048xf32, #tpu.memory_space<vmem>>, vector<1x4x2048xf32>
    %27 = vector.shape_cast %26 : vector<1x4x2048xf32> to vector<4x2048xf32>
    %cst = arith.constant dense<0.000000e+00> : vector<32x2048xf32>
    %28 = tpu.matmul %1, %27, %cst {dimension_numbers = #tpu.dot_dimension_numbers<[1], [0], [0], [1], [0, 0, 1, 1], [], []>} : vector<32x4xf32>, vector<4x2048xf32>, vector<32x2048xf32> -> vector<32x2048xf32>
    %29 = vector.broadcast %3 : vector<32x1xf32> to vector<32x2048xf32>
    %30 = arith.addf %28, %29 : vector<32x2048xf32>
    %cst_22 = arith.constant 0.000000e+00 : f32
    %31 = vector.broadcast %cst_22 : f32 to vector<32x2048xf32>
    %32 = arith.maximumf %30, %31 : vector<32x2048xf32>
    %33 = vector.extract_strided_slice %32 {offsets = [0, 0], sizes = [32, 256], strides = [1, 1]} : vector<32x2048xf32> to vector<32x256xf32>
    %34 = arith.addf %33, %25 : vector<32x256xf32>
    %35 = vector.extract_strided_slice %32 {offsets = [0, 256], sizes = [32, 256], strides = [1, 1]} : vector<32x2048xf32> to vector<32x256xf32>
    %36 = arith.addf %35, %25 : vector<32x256xf32>
    %37 = vector.extract_strided_slice %32 {offsets = [0, 512], sizes = [32, 256], strides = [1, 1]} : vector<32x2048xf32> to vector<32x256xf32>
    %38 = arith.addf %37, %25 : vector<32x256xf32>
    %39 = vector.extract_strided_slice %32 {offsets = [0, 768], sizes = [32, 256], strides = [1, 1]} : vector<32x2048xf32> to vector<32x256xf32>
    %40 = arith.addf %39, %25 : vector<32x256xf32>
    %41 = vector.extract_strided_slice %32 {offsets = [0, 1024], sizes = [32, 256], strides = [1, 1]} : vector<32x2048xf32> to vector<32x256xf32>
    %42 = arith.addf %41, %25 : vector<32x256xf32>
    %43 = vector.extract_strided_slice %32 {offsets = [0, 1280], sizes = [32, 256], strides = [1, 1]} : vector<32x2048xf32> to vector<32x256xf32>
    %44 = arith.addf %43, %25 : vector<32x256xf32>
    %45 = vector.extract_strided_slice %32 {offsets = [0, 1536], sizes = [32, 256], strides = [1, 1]} : vector<32x2048xf32> to vector<32x256xf32>
    %46 = arith.addf %45, %25 : vector<32x256xf32>
    %47 = vector.extract_strided_slice %32 {offsets = [0, 1792], sizes = [32, 256], strides = [1, 1]} : vector<32x2048xf32> to vector<32x256xf32>
    %48 = arith.addf %47, %25 : vector<32x256xf32>
    %49 = tpu.concatenate %34, %36, %38, %40, %42, %44, %46, %48 in 1 : vector<32x256xf32>, vector<32x256xf32>, vector<32x256xf32>, vector<32x256xf32>, vector<32x256xf32>, vector<32x256xf32>, vector<32x256xf32>, vector<32x256xf32> -> vector<32x2048xf32>
    %cst_23 = arith.constant dense<0.000000e+00> : vector<64x2048xf32>
    %50 = tpu.matmul %5, %49, %cst_23 {dimension_numbers = #tpu.dot_dimension_numbers<[1], [0], [0], [1], [0, 0, 1, 1], [], []>} : vector<64x32xf32>, vector<32x2048xf32>, vector<64x2048xf32> -> vector<64x2048xf32>
    %51 = vector.extract_strided_slice %50 {offsets = [0, 0], sizes = [32, 2048], strides = [1, 1]} : vector<64x2048xf32> to vector<32x2048xf32>
    %52 = vector.extract_strided_slice %50 {offsets = [32, 0], sizes = [32, 2048], strides = [1, 1]} : vector<64x2048xf32> to vector<32x2048xf32>
    %53 = vector.extract_strided_slice %51 {offsets = [0, 0], sizes = [32, 1024], strides = [1, 1]} : vector<32x2048xf32> to vector<32x1024xf32>
    %54 = vector.extract_strided_slice %52 {offsets = [0, 0], sizes = [32, 1024], strides = [1, 1]} : vector<32x2048xf32> to vector<32x1024xf32>
    %cst_24 = arith.constant dense<0.000000e+00> : vector<4x32xf32>
    %55 = tpu.matmul %24, %4, %cst_24 {dimension_numbers = #tpu.dot_dimension_numbers<[1], [0], [0], [1], [0, 0, 1, 1], [], []>} : vector<4x32xf32>, vector<32x32xf32>, vector<4x32xf32> -> vector<4x32xf32>
    %cst_25 = arith.constant dense<0.000000e+00> : vector<4x1024xf32>
    %56 = tpu.matmul %55, %53, %cst_25 {dimension_numbers = #tpu.dot_dimension_numbers<[1], [0], [0], [1], [0, 0, 1, 1], [], []>} : vector<4x32xf32>, vector<32x1024xf32>, vector<4x1024xf32> -> vector<4x1024xf32>
    %cst_26 = arith.constant 0.176776692 : f32
    %57 = vector.broadcast %cst_26 : f32 to vector<4x1024xf32>
    %58 = arith.mulf %56, %57 : vector<4x1024xf32>
    %cst_27 = arith.constant dense<0xFF800000> : vector<1024xf32>
    %59 = vector.multi_reduction <maximumf>, %58, %cst_27 [0] : vector<4x1024xf32> to vector<1024xf32>
    %60 = vector.shape_cast %59 : vector<1024xf32> to vector<1x1024xf32>
    %61 = vector.broadcast %60 : vector<1x1024xf32> to vector<4x1024xf32>
    %62 = arith.subf %58, %61 : vector<4x1024xf32>
    %63 = math.exp %62 : vector<4x1024xf32>
    %cst_28 = arith.constant dense<0.000000e+00> : vector<1024xf32>
    %64 = vector.multi_reduction <add>, %63, %cst_28 [0] : vector<4x1024xf32> to vector<1024xf32>
    %65 = vector.shape_cast %64 : vector<1024xf32> to vector<1x1024xf32>
    %66 = tpu.reciprocal %65 {approx = true} : vector<1x1024xf32> -> vector<1x1024xf32>
    %67 = vector.broadcast %66 : vector<1x1024xf32> to vector<4x1024xf32>
    %68 = arith.mulf %63, %67 : vector<4x1024xf32>
    %cst_29 = arith.constant dense<0.000000e+00> : vector<4xf32>
    %69 = vector.multi_reduction <add>, %68, %cst_29 [1] : vector<4x1024xf32> to vector<4xf32>
    %70 = vector.shape_cast %69 : vector<4xf32> to vector<4x1xf32>
    %cst_30 = arith.constant 9.99999993E-9 : f32
    %71 = vector.broadcast %cst_30 : f32 to vector<4x1xf32>
    %72 = arith.addf %70, %71 : vector<4x1xf32>
    %73 = tpu.reciprocal %72 {approx = true} : vector<4x1xf32> -> vector<4x1xf32>
    %74 = vector.broadcast %73 : vector<4x1xf32> to vector<4x1024xf32>
    %75 = arith.mulf %68, %74 : vector<4x1024xf32>
    %cst_31 = arith.constant dense<0.000000e+00> : vector<4x32xf32>
    %76 = tpu.matmul %75, %54, %cst_31 {dimension_numbers = #tpu.dot_dimension_numbers<[1], [1], [0], [0], [0, 0, 1, 0], [], []>} : vector<4x1024xf32>, vector<32x1024xf32>, vector<4x32xf32> -> vector<4x32xf32>
    %cst_32 = arith.constant dense<0.000000e+00> : vector<4x32xf32>
    %77 = tpu.matmul %76, %6, %cst_32 {dimension_numbers = #tpu.dot_dimension_numbers<[1], [0], [0], [1], [0, 0, 1, 1], [], []>} : vector<4x32xf32>, vector<32x32xf32>, vector<4x32xf32> -> vector<4x32xf32>
    %78 = arith.addf %24, %77 : vector<4x32xf32>
    %79 = vector.broadcast %7 : vector<1x32xf32> to vector<4x32xf32>
    %80 = arith.addf %78, %79 : vector<4x32xf32>
    %cst_33 = arith.constant dense<0.000000e+00> : vector<4x32xf32>
    %81 = tpu.matmul %80, %4, %cst_33 {dimension_numbers = #tpu.dot_dimension_numbers<[1], [0], [0], [1], [0, 0, 1, 1], [], []>} : vector<4x32xf32>, vector<32x32xf32>, vector<4x32xf32> -> vector<4x32xf32>
    %cst_34 = arith.constant dense<0.000000e+00> : vector<4x1024xf32>
    %82 = tpu.matmul %81, %53, %cst_34 {dimension_numbers = #tpu.dot_dimension_numbers<[1], [0], [0], [1], [0, 0, 1, 1], [], []>} : vector<4x32xf32>, vector<32x1024xf32>, vector<4x1024xf32> -> vector<4x1024xf32>
    %cst_35 = arith.constant 0.176776692 : f32
    %83 = vector.broadcast %cst_35 : f32 to vector<4x1024xf32>
    %84 = arith.mulf %82, %83 : vector<4x1024xf32>
    %cst_36 = arith.constant dense<0xFF800000> : vector<1024xf32>
    %85 = vector.multi_reduction <maximumf>, %84, %cst_36 [0] : vector<4x1024xf32> to vector<1024xf32>
    %86 = vector.shape_cast %85 : vector<1024xf32> to vector<1x1024xf32>
    %87 = vector.broadcast %86 : vector<1x1024xf32> to vector<4x1024xf32>
    %88 = arith.subf %84, %87 : vector<4x1024xf32>
    %89 = math.exp %88 : vector<4x1024xf32>
    %cst_37 = arith.constant dense<0.000000e+00> : vector<1024xf32>
    %90 = vector.multi_reduction <add>, %89, %cst_37 [0] : vector<4x1024xf32> to vector<1024xf32>
    %91 = vector.shape_cast %90 : vector<1024xf32> to vector<1x1024xf32>
    %92 = tpu.reciprocal %91 {approx = true} : vector<1x1024xf32> -> vector<1x1024xf32>
    %93 = vector.broadcast %92 : vector<1x1024xf32> to vector<4x1024xf32>
    %94 = arith.mulf %89, %93 : vector<4x1024xf32>
    %c0_38 = arith.constant 0 : index
    %c0_39 = arith.constant 0 : index
    %c0_40 = arith.constant 0 : index
    %95 = vector.load %arg5[%c0_38, %c0_39, %c0_40] : memref<2x4x1024xf32, #tpu.memory_space<vmem>>, vector<1x4x1024xf32>
    %96 = vector.shape_cast %95 : vector<1x4x1024xf32> to vector<4x1024xf32>
    %97 = vector.shape_cast %94 : vector<4x1024xf32> to vector<1x4x1024xf32>
    tpu.vector_store %arg5[%c0_38, %c0_39, %c0_40], %97 {strides = array<i32>} : memref<2x4x1024xf32, #tpu.memory_space<vmem>>, vector<1x4x1024xf32>,
    %98 = vector.extract_strided_slice %94 {offsets = [0, 0], sizes = [4, 256], strides = [1, 1]} : vector<4x1024xf32> to vector<4x256xf32>
    %99 = vector.extract_strided_slice %54 {offsets = [0, 0], sizes = [32, 256], strides = [1, 1]} : vector<32x1024xf32> to vector<32x256xf32>
    %cst_41 = arith.constant dense<0.000000e+00> : vector<4xf32>
    %100 = vector.multi_reduction <add>, %98, %cst_41 [1] : vector<4x256xf32> to vector<4xf32>
    %101 = vector.shape_cast %100 : vector<4xf32> to vector<4x1xf32>
    %cst_42 = arith.constant 9.99999993E-9 : f32
    %102 = vector.broadcast %cst_42 : f32 to vector<4x1xf32>
    %103 = arith.addf %101, %102 : vector<4x1xf32>
    %104 = tpu.reciprocal %103 {approx = true} : vector<4x1xf32> -> vector<4x1xf32>
    %105 = vector.broadcast %104 : vector<4x1xf32> to vector<4x256xf32>
    %106 = arith.mulf %98, %105 : vector<4x256xf32>
    %cst_43 = arith.constant dense<0.000000e+00> : vector<4x32xf32>
    %107 = tpu.matmul %106, %99, %cst_43 {dimension_numbers = #tpu.dot_dimension_numbers<[1], [1], [0], [0], [0, 0, 1, 0], [], []>} : vector<4x256xf32>, vector<32x256xf32>, vector<4x32xf32> -> vector<4x32xf32>
    %108 = vector.extract_strided_slice %94 {offsets = [0, 256], sizes = [4, 256], strides = [1, 1]} : vector<4x1024xf32> to vector<4x256xf32>
    %109 = vector.extract_strided_slice %54 {offsets = [0, 256], sizes = [32, 256], strides = [1, 1]} : vector<32x1024xf32> to vector<32x256xf32>
    %cst_44 = arith.constant dense<0.000000e+00> : vector<4xf32>
    %110 = vector.multi_reduction <add>, %108, %cst_44 [1] : vector<4x256xf32> to vector<4xf32>
    %111 = vector.shape_cast %110 : vector<4xf32> to vector<4x1xf32>
    %cst_45 = arith.constant 9.99999993E-9 : f32
    %112 = vector.broadcast %cst_45 : f32 to vector<4x1xf32>
    %113 = arith.addf %111, %112 : vector<4x1xf32>
    %114 = tpu.reciprocal %113 {approx = true} : vector<4x1xf32> -> vector<4x1xf32>
    %115 = vector.broadcast %114 : vector<4x1xf32> to vector<4x256xf32>
    %116 = arith.mulf %108, %115 : vector<4x256xf32>
    %cst_46 = arith.constant dense<0.000000e+00> : vector<4x32xf32>
    %117 = tpu.matmul %116, %109, %cst_46 {dimension_numbers = #tpu.dot_dimension_numbers<[1], [1], [0], [0], [0, 0, 1, 0], [], []>} : vector<4x256xf32>, vector<32x256xf32>, vector<4x32xf32> -> vector<4x32xf32>
    %118 = vector.extract_strided_slice %94 {offsets = [0, 512], sizes = [4, 256], strides = [1, 1]} : vector<4x1024xf32> to vector<4x256xf32>
    %119 = vector.extract_strided_slice %54 {offsets = [0, 512], sizes = [32, 256], strides = [1, 1]} : vector<32x1024xf32> to vector<32x256xf32>
    %cst_47 = arith.constant dense<0.000000e+00> : vector<4xf32>
    %120 = vector.multi_reduction <add>, %118, %cst_47 [1] : vector<4x256xf32> to vector<4xf32>
    %121 = vector.shape_cast %120 : vector<4xf32> to vector<4x1xf32>
    %cst_48 = arith.constant 9.99999993E-9 : f32
    %122 = vector.broadcast %cst_48 : f32 to vector<4x1xf32>
    %123 = arith.addf %121, %122 : vector<4x1xf32>
    %124 = tpu.reciprocal %123 {approx = true} : vector<4x1xf32> -> vector<4x1xf32>
    %125 = vector.broadcast %124 : vector<4x1xf32> to vector<4x256xf32>
    %126 = arith.mulf %118, %125 : vector<4x256xf32>
    %cst_49 = arith.constant dense<0.000000e+00> : vector<4x32xf32>
    %127 = tpu.matmul %126, %119, %cst_49 {dimension_numbers = #tpu.dot_dimension_numbers<[1], [1], [0], [0], [0, 0, 1, 0], [], []>} : vector<4x256xf32>, vector<32x256xf32>, vector<4x32xf32> -> vector<4x32xf32>
    %128 = vector.extract_strided_slice %94 {offsets = [0, 768], sizes = [4, 256], strides = [1, 1]} : vector<4x1024xf32> to vector<4x256xf32>
    %129 = vector.extract_strided_slice %54 {offsets = [0, 768], sizes = [32, 256], strides = [1, 1]} : vector<32x1024xf32> to vector<32x256xf32>
    %cst_50 = arith.constant dense<0.000000e+00> : vector<4xf32>
    %130 = vector.multi_reduction <add>, %128, %cst_50 [1] : vector<4x256xf32> to vector<4xf32>
    %131 = vector.shape_cast %130 : vector<4xf32> to vector<4x1xf32>
    %cst_51 = arith.constant 9.99999993E-9 : f32
    %132 = vector.broadcast %cst_51 : f32 to vector<4x1xf32>
    %133 = arith.addf %131, %132 : vector<4x1xf32>
    %134 = tpu.reciprocal %133 {approx = true} : vector<4x1xf32> -> vector<4x1xf32>
    %135 = vector.broadcast %134 : vector<4x1xf32> to vector<4x256xf32>
    %136 = arith.mulf %128, %135 : vector<4x256xf32>
    %cst_52 = arith.constant dense<0.000000e+00> : vector<4x32xf32>
    %137 = tpu.matmul %136, %129, %cst_52 {dimension_numbers = #tpu.dot_dimension_numbers<[1], [1], [0], [0], [0, 0, 1, 0], [], []>} : vector<4x256xf32>, vector<32x256xf32>, vector<4x32xf32> -> vector<4x32xf32>
    %138 = tpu.concatenate %107, %117, %127, %137 in 0 : vector<4x32xf32>, vector<4x32xf32>, vector<4x32xf32>, vector<4x32xf32> -> vector<16x32xf32>
    %cst_53 = arith.constant dense<0.000000e+00> : vector<16x32xf32>
    %139 = tpu.matmul %138, %6, %cst_53 {dimension_numbers = #tpu.dot_dimension_numbers<[1], [0], [0], [1], [0, 0, 1, 1], [], []>} : vector<16x32xf32>, vector<32x32xf32>, vector<16x32xf32> -> vector<16x32xf32>
    %140 = vector.extract_strided_slice %139 {offsets = [0, 0], sizes = [4, 32], strides = [1, 1]} : vector<16x32xf32> to vector<4x32xf32>
    %141 = arith.addf %80, %140 : vector<4x32xf32>
    %142 = vector.broadcast %7 : vector<1x32xf32> to vector<4x32xf32>
    %143 = arith.addf %141, %142 : vector<4x32xf32>
    %144 = vector.extract_strided_slice %139 {offsets = [4, 0], sizes = [4, 32], strides = [1, 1]} : vector<16x32xf32> to vector<4x32xf32>
    %145 = arith.addf %80, %144 : vector<4x32xf32>
    %146 = vector.broadcast %7 : vector<1x32xf32> to vector<4x32xf32>
    %147 = arith.addf %145, %146 : vector<4x32xf32>
    %148 = vector.extract_strided_slice %139 {offsets = [8, 0], sizes = [4, 32], strides = [1, 1]} : vector<16x32xf32> to vector<4x32xf32>
    %149 = arith.addf %80, %148 : vector<4x32xf32>
    %150 = vector.broadcast %7 : vector<1x32xf32> to vector<4x32xf32>
    %151 = arith.addf %149, %150 : vector<4x32xf32>
    %152 = vector.extract_strided_slice %139 {offsets = [12, 0], sizes = [4, 32], strides = [1, 1]} : vector<16x32xf32> to vector<4x32xf32>
    %153 = arith.addf %80, %152 : vector<4x32xf32>
    %154 = vector.broadcast %7 : vector<1x32xf32> to vector<4x32xf32>
    %155 = arith.addf %153, %154 : vector<4x32xf32>
    %156 = tpu.concatenate %143, %147, %151, %155 in 1 : vector<4x32xf32>, vector<4x32xf32>, vector<4x32xf32>, vector<4x32xf32> -> vector<4x128xf32>
    %c0_54 = arith.constant 0 : index
    %c0_55 = arith.constant 0 : index
    %c0_56 = arith.constant 0 : index
    %157 = vector.load %arg4[%c0_54, %c0_55, %c0_56] : memref<2x4x128xf32, #tpu.memory_space<vmem>>, vector<1x4x128xf32>
    %158 = vector.shape_cast %157 : vector<1x4x128xf32> to vector<4x128xf32>
    %159 = vector.shape_cast %156 : vector<4x128xf32> to vector<1x4x128xf32>
    tpu.vector_store %arg4[%c0_54, %c0_55, %c0_56], %159 {strides = array<i32>} : memref<2x4x128xf32, #tpu.memory_space<vmem>>, vector<1x4x128xf32>,
    %160 = tpu.concatenate %143, %147, %151 in 0 : vector<4x32xf32>, vector<4x32xf32>, vector<4x32xf32> -> vector<12x32xf32>
    %161 = tpu.concatenate %147, %151, %155 in 0 : vector<4x32xf32>, vector<4x32xf32>, vector<4x32xf32> -> vector<12x32xf32>
    %cst_57 = arith.constant dense<0.000000e+00> : vector<12x32xf32>
    %162 = tpu.matmul %160, %8, %cst_57 {dimension_numbers = #tpu.dot_dimension_numbers<[1], [0], [0], [1], [0, 0, 1, 1], [], []>} : vector<12x32xf32>, vector<32x32xf32>, vector<12x32xf32> -> vector<12x32xf32>
    %cst_58 = arith.constant dense<0.000000e+00> : vector<12x32xf32>
    %163 = tpu.matmul %161, %9, %cst_58 {dimension_numbers = #tpu.dot_dimension_numbers<[1], [0], [0], [1], [0, 0, 1, 1], [], []>} : vector<12x32xf32>, vector<32x32xf32>, vector<12x32xf32> -> vector<12x32xf32>
    %164 = arith.addf %162, %163 : vector<12x32xf32>
    %165 = vector.broadcast %10 : vector<1x32xf32> to vector<12x32xf32>
    %166 = arith.addf %164, %165 : vector<12x32xf32>
    %cst_59 = arith.constant 0.000000e+00 : f32
    %167 = vector.broadcast %cst_59 : f32 to vector<12x32xf32>
    %168 = arith.maximumf %166, %167 : vector<12x32xf32>
    %cst_60 = arith.constant dense<0.000000e+00> : vector<12x2xf32>
    %169 = tpu.matmul %168, %12, %cst_60 {dimension_numbers = #tpu.dot_dimension_numbers<[1], [0], [0], [1], [0, 0, 1, 1], [], []>} : vector<12x32xf32>, vector<32x2xf32>, vector<12x2xf32> -> vector<12x2xf32>
    %170 = vector.broadcast %14 : vector<1x2xf32> to vector<12x2xf32>
    %171 = arith.addf %169, %170 : vector<12x2xf32>
    %cst_61 = arith.constant 2.000000e+01 : f32
    %172 = vector.broadcast %cst_61 : f32 to vector<12x2xf32>
    %173 = arith.mulf %171, %172 : vector<12x2xf32>
    %174 = vector.extract_strided_slice %173 {offsets = [0, 0], sizes = [4, 2], strides = [1, 1]} : vector<12x2xf32> to vector<4x2xf32>
    %175 = vector.extract_strided_slice %94 {offsets = [0, 0], sizes = [4, 256], strides = [1, 1]} : vector<4x1024xf32> to vector<4x256xf32>
    %cst_62 = arith.constant dense<0.000000e+00> : vector<2x256xf32>
    %176 = tpu.matmul %174, %175, %cst_62 {dimension_numbers = #tpu.dot_dimension_numbers<[0], [0], [1], [1], [0, 1, 1, 1], [], []>} : vector<4x2xf32>, vector<4x256xf32>, vector<2x256xf32> -> vector<2x256xf32>
    %177 = vector.extract_strided_slice %173 {offsets = [4, 0], sizes = [4, 2], strides = [1, 1]} : vector<12x2xf32> to vector<4x2xf32>
    %178 = vector.extract_strided_slice %94 {offsets = [0, 256], sizes = [4, 256], strides = [1, 1]} : vector<4x1024xf32> to vector<4x256xf32>
    %cst_63 = arith.constant dense<0.000000e+00> : vector<2x256xf32>
    %179 = tpu.matmul %177, %178, %cst_63 {dimension_numbers = #tpu.dot_dimension_numbers<[0], [0], [1], [1], [0, 1, 1, 1], [], []>} : vector<4x2xf32>, vector<4x256xf32>, vector<2x256xf32> -> vector<2x256xf32>
    %180 = vector.extract_strided_slice %173 {offsets = [8, 0], sizes = [4, 2], strides = [1, 1]} : vector<12x2xf32> to vector<4x2xf32>
    %181 = vector.extract_strided_slice %94 {offsets = [0, 512], sizes = [4, 256], strides = [1, 1]} : vector<4x1024xf32> to vector<4x256xf32>
    %cst_64 = arith.constant dense<0.000000e+00> : vector<2x256xf32>
    %182 = tpu.matmul %180, %181, %cst_64 {dimension_numbers = #tpu.dot_dimension_numbers<[0], [0], [1], [1], [0, 1, 1, 1], [], []>} : vector<4x2xf32>, vector<4x256xf32>, vector<2x256xf32> -> vector<2x256xf32>
    %183 = tpu.concatenate %176, %179, %182 in 1 : vector<2x256xf32>, vector<2x256xf32>, vector<2x256xf32> -> vector<2x768xf32>
    %c0_65 = arith.constant 0 : index
    %c0_66 = arith.constant 0 : index
    %c0_67 = arith.constant 0 : index
    %184 = vector.load %arg6[%c0_65, %c0_66, %c0_67] : memref<2x2x768xf32, #tpu.memory_space<vmem>>, vector<1x2x768xf32>
    %185 = vector.shape_cast %184 : vector<1x2x768xf32> to vector<2x768xf32>
    %186 = vector.shape_cast %183 : vector<2x768xf32> to vector<1x2x768xf32>
    tpu.vector_store %arg6[%c0_65, %c0_66, %c0_67], %186 {strides = array<i32>} : memref<2x2x768xf32, #tpu.memory_space<vmem>>, vector<1x2x768xf32>,
    %187 = vector.extract_strided_slice %27 {offsets = [0, 0], sizes = [4, 768], strides = [1, 1]} : vector<4x2048xf32> to vector<4x768xf32>
    %cst_68 = arith.constant dense<0.000000e+00> : vector<32x768xf32>
    %188 = tpu.matmul %16, %187, %cst_68 {dimension_numbers = #tpu.dot_dimension_numbers<[1], [0], [0], [1], [0, 0, 1, 1], [], []>} : vector<32x4xf32>, vector<4x768xf32>, vector<32x768xf32> -> vector<32x768xf32>
    %cst_69 = arith.constant dense<0.000000e+00> : vector<32x768xf32>
    %189 = tpu.matmul %18, %183, %cst_69 {dimension_numbers = #tpu.dot_dimension_numbers<[1], [0], [0], [1], [0, 0, 1, 1], [], []>} : vector<32x2xf32>, vector<2x768xf32>, vector<32x768xf32> -> vector<32x768xf32>
    %190 = arith.addf %188, %189 : vector<32x768xf32>
    %191 = vector.broadcast %20 : vector<32x1xf32> to vector<32x768xf32>
    %192 = arith.addf %190, %191 : vector<32x768xf32>
    %cst_70 = arith.constant 0.000000e+00 : f32
    %193 = vector.broadcast %cst_70 : f32 to vector<32x768xf32>
    %194 = arith.maximumf %192, %193 : vector<32x768xf32>
    %cst_71 = arith.constant dense<0.000000e+00> : vector<4x768xf32>
    %195 = tpu.matmul %21, %194, %cst_71 {dimension_numbers = #tpu.dot_dimension_numbers<[1], [0], [0], [1], [0, 0, 1, 1], [], []>} : vector<4x32xf32>, vector<32x768xf32>, vector<4x768xf32> -> vector<4x768xf32>
    %196 = vector.broadcast %23 : vector<4x1xf32> to vector<4x768xf32>
    %197 = arith.addf %195, %196 : vector<4x768xf32>
    %c0_72 = arith.constant 0 : index
    %c0_73 = arith.constant 0 : index
    %c0_74 = arith.constant 0 : index
    %198 = vector.load %arg7[%c0_72, %c0_73, %c0_74] : memref<2x4x768xf32, #tpu.memory_space<vmem>>, vector<1x4x768xf32>
    %199 = vector.shape_cast %198 : vector<1x4x768xf32> to vector<4x768xf32>
    %200 = vector.shape_cast %197 : vector<4x768xf32> to vector<1x4x768xf32>
    tpu.vector_store %arg7[%c0_72, %c0_73, %c0_74], %200 {strides = array<i32>} : memref<2x4x768xf32, #tpu.memory_space<vmem>>, vector<1x4x768xf32>,
    %201 = vector.extract_strided_slice %51 {offsets = [0, 1024], sizes = [32, 1024], strides = [1, 1]} : vector<32x2048xf32> to vector<32x1024xf32>
    %202 = vector.extract_strided_slice %52 {offsets = [0, 1024], sizes = [32, 1024], strides = [1, 1]} : vector<32x2048xf32> to vector<32x1024xf32>
    %cst_75 = arith.constant dense<0.000000e+00> : vector<4x32xf32>
    %203 = tpu.matmul %24, %4, %cst_75 {dimension_numbers = #tpu.dot_dimension_numbers<[1], [0], [0], [1], [0, 0, 1, 1], [], []>} : vector<4x32xf32>, vector<32x32xf32>, vector<4x32xf32> -> vector<4x32xf32>
    %cst_76 = arith.constant dense<0.000000e+00> : vector<4x1024xf32>
    %204 = tpu.matmul %203, %201, %cst_76 {dimension_numbers = #tpu.dot_dimension_numbers<[1], [0], [0], [1], [0, 0, 1, 1], [], []>} : vector<4x32xf32>, vector<32x1024xf32>, vector<4x1024xf32> -> vector<4x1024xf32>
    %cst_77 = arith.constant 0.176776692 : f32
    %205 = vector.broadcast %cst_77 : f32 to vector<4x1024xf32>
    %206 = arith.mulf %204, %205 : vector<4x1024xf32>
    %cst_78 = arith.constant dense<0xFF800000> : vector<1024xf32>
    %207 = vector.multi_reduction <maximumf>, %206, %cst_78 [0] : vector<4x1024xf32> to vector<1024xf32>
    %208 = vector.shape_cast %207 : vector<1024xf32> to vector<1x1024xf32>
    %209 = vector.broadcast %208 : vector<1x1024xf32> to vector<4x1024xf32>
    %210 = arith.subf %206, %209 : vector<4x1024xf32>
    %211 = math.exp %210 : vector<4x1024xf32>
    %cst_79 = arith.constant dense<0.000000e+00> : vector<1024xf32>
    %212 = vector.multi_reduction <add>, %211, %cst_79 [0] : vector<4x1024xf32> to vector<1024xf32>
    %213 = vector.shape_cast %212 : vector<1024xf32> to vector<1x1024xf32>
    %214 = tpu.reciprocal %213 {approx = true} : vector<1x1024xf32> -> vector<1x1024xf32>
    %215 = vector.broadcast %214 : vector<1x1024xf32> to vector<4x1024xf32>
    %216 = arith.mulf %211, %215 : vector<4x1024xf32>
    %cst_80 = arith.constant dense<0.000000e+00> : vector<4xf32>
    %217 = vector.multi_reduction <add>, %216, %cst_80 [1] : vector<4x1024xf32> to vector<4xf32>
    %218 = vector.shape_cast %217 : vector<4xf32> to vector<4x1xf32>
    %cst_81 = arith.constant 9.99999993E-9 : f32
    %219 = vector.broadcast %cst_81 : f32 to vector<4x1xf32>
    %220 = arith.addf %218, %219 : vector<4x1xf32>
    %221 = tpu.reciprocal %220 {approx = true} : vector<4x1xf32> -> vector<4x1xf32>
    %222 = vector.broadcast %221 : vector<4x1xf32> to vector<4x1024xf32>
    %223 = arith.mulf %216, %222 : vector<4x1024xf32>
    %cst_82 = arith.constant dense<0.000000e+00> : vector<4x32xf32>
    %224 = tpu.matmul %223, %202, %cst_82 {dimension_numbers = #tpu.dot_dimension_numbers<[1], [1], [0], [0], [0, 0, 1, 0], [], []>} : vector<4x1024xf32>, vector<32x1024xf32>, vector<4x32xf32> -> vector<4x32xf32>
    %cst_83 = arith.constant dense<0.000000e+00> : vector<4x32xf32>
    %225 = tpu.matmul %224, %6, %cst_83 {dimension_numbers = #tpu.dot_dimension_numbers<[1], [0], [0], [1], [0, 0, 1, 1], [], []>} : vector<4x32xf32>, vector<32x32xf32>, vector<4x32xf32> -> vector<4x32xf32>
    %226 = arith.addf %24, %225 : vector<4x32xf32>
    %227 = vector.broadcast %7 : vector<1x32xf32> to vector<4x32xf32>
    %228 = arith.addf %226, %227 : vector<4x32xf32>
    %cst_84 = arith.constant dense<0.000000e+00> : vector<4x32xf32>
    %229 = tpu.matmul %228, %4, %cst_84 {dimension_numbers = #tpu.dot_dimension_numbers<[1], [0], [0], [1], [0, 0, 1, 1], [], []>} : vector<4x32xf32>, vector<32x32xf32>, vector<4x32xf32> -> vector<4x32xf32>
    %cst_85 = arith.constant dense<0.000000e+00> : vector<4x1024xf32>
    %230 = tpu.matmul %229, %201, %cst_85 {dimension_numbers = #tpu.dot_dimension_numbers<[1], [0], [0], [1], [0, 0, 1, 1], [], []>} : vector<4x32xf32>, vector<32x1024xf32>, vector<4x1024xf32> -> vector<4x1024xf32>
    %cst_86 = arith.constant 0.176776692 : f32
    %231 = vector.broadcast %cst_86 : f32 to vector<4x1024xf32>
    %232 = arith.mulf %230, %231 : vector<4x1024xf32>
    %cst_87 = arith.constant dense<0xFF800000> : vector<1024xf32>
    %233 = vector.multi_reduction <maximumf>, %232, %cst_87 [0] : vector<4x1024xf32> to vector<1024xf32>
    %234 = vector.shape_cast %233 : vector<1024xf32> to vector<1x1024xf32>
    %235 = vector.broadcast %234 : vector<1x1024xf32> to vector<4x1024xf32>
    %236 = arith.subf %232, %235 : vector<4x1024xf32>
    %237 = math.exp %236 : vector<4x1024xf32>
    %cst_88 = arith.constant dense<0.000000e+00> : vector<1024xf32>
    %238 = vector.multi_reduction <add>, %237, %cst_88 [0] : vector<4x1024xf32> to vector<1024xf32>
    %239 = vector.shape_cast %238 : vector<1024xf32> to vector<1x1024xf32>
    %240 = tpu.reciprocal %239 {approx = true} : vector<1x1024xf32> -> vector<1x1024xf32>
    %241 = vector.broadcast %240 : vector<1x1024xf32> to vector<4x1024xf32>
    %242 = arith.mulf %237, %241 : vector<4x1024xf32>
    %c1 = arith.constant 1 : index
    %c0_89 = arith.constant 0 : index
    %c0_90 = arith.constant 0 : index
    %243 = vector.load %arg5[%c1, %c0_89, %c0_90] : memref<2x4x1024xf32, #tpu.memory_space<vmem>>, vector<1x4x1024xf32>
    %244 = vector.shape_cast %243 : vector<1x4x1024xf32> to vector<4x1024xf32>
    %245 = vector.shape_cast %242 : vector<4x1024xf32> to vector<1x4x1024xf32>
    tpu.vector_store %arg5[%c1, %c0_89, %c0_90], %245 {strides = array<i32>} : memref<2x4x1024xf32, #tpu.memory_space<vmem>>, vector<1x4x1024xf32>,
    %246 = vector.extract_strided_slice %242 {offsets = [0, 0], sizes = [4, 256], strides = [1, 1]} : vector<4x1024xf32> to vector<4x256xf32>
    %247 = vector.extract_strided_slice %202 {offsets = [0, 0], sizes = [32, 256], strides = [1, 1]} : vector<32x1024xf32> to vector<32x256xf32>
    %cst_91 = arith.constant dense<0.000000e+00> : vector<4xf32>
    %248 = vector.multi_reduction <add>, %246, %cst_91 [1] : vector<4x256xf32> to vector<4xf32>
    %249 = vector.shape_cast %248 : vector<4xf32> to vector<4x1xf32>
    %cst_92 = arith.constant 9.99999993E-9 : f32
    %250 = vector.broadcast %cst_92 : f32 to vector<4x1xf32>
    %251 = arith.addf %249, %250 : vector<4x1xf32>
    %252 = tpu.reciprocal %251 {approx = true} : vector<4x1xf32> -> vector<4x1xf32>
    %253 = vector.broadcast %252 : vector<4x1xf32> to vector<4x256xf32>
    %254 = arith.mulf %246, %253 : vector<4x256xf32>
    %cst_93 = arith.constant dense<0.000000e+00> : vector<4x32xf32>
    %255 = tpu.matmul %254, %247, %cst_93 {dimension_numbers = #tpu.dot_dimension_numbers<[1], [1], [0], [0], [0, 0, 1, 0], [], []>} : vector<4x256xf32>, vector<32x256xf32>, vector<4x32xf32> -> vector<4x32xf32>
    %256 = vector.extract_strided_slice %242 {offsets = [0, 256], sizes = [4, 256], strides = [1, 1]} : vector<4x1024xf32> to vector<4x256xf32>
    %257 = vector.extract_strided_slice %202 {offsets = [0, 256], sizes = [32, 256], strides = [1, 1]} : vector<32x1024xf32> to vector<32x256xf32>
    %cst_94 = arith.constant dense<0.000000e+00> : vector<4xf32>
    %258 = vector.multi_reduction <add>, %256, %cst_94 [1] : vector<4x256xf32> to vector<4xf32>
    %259 = vector.shape_cast %258 : vector<4xf32> to vector<4x1xf32>
    %cst_95 = arith.constant 9.99999993E-9 : f32
    %260 = vector.broadcast %cst_95 : f32 to vector<4x1xf32>
    %261 = arith.addf %259, %260 : vector<4x1xf32>
    %262 = tpu.reciprocal %261 {approx = true} : vector<4x1xf32> -> vector<4x1xf32>
    %263 = vector.broadcast %262 : vector<4x1xf32> to vector<4x256xf32>
    %264 = arith.mulf %256, %263 : vector<4x256xf32>
    %cst_96 = arith.constant dense<0.000000e+00> : vector<4x32xf32>
    %265 = tpu.matmul %264, %257, %cst_96 {dimension_numbers = #tpu.dot_dimension_numbers<[1], [1], [0], [0], [0, 0, 1, 0], [], []>} : vector<4x256xf32>, vector<32x256xf32>, vector<4x32xf32> -> vector<4x32xf32>
    %266 = vector.extract_strided_slice %242 {offsets = [0, 512], sizes = [4, 256], strides = [1, 1]} : vector<4x1024xf32> to vector<4x256xf32>
    %267 = vector.extract_strided_slice %202 {offsets = [0, 512], sizes = [32, 256], strides = [1, 1]} : vector<32x1024xf32> to vector<32x256xf32>
    %cst_97 = arith.constant dense<0.000000e+00> : vector<4xf32>
    %268 = vector.multi_reduction <add>, %266, %cst_97 [1] : vector<4x256xf32> to vector<4xf32>
    %269 = vector.shape_cast %268 : vector<4xf32> to vector<4x1xf32>
    %cst_98 = arith.constant 9.99999993E-9 : f32
    %270 = vector.broadcast %cst_98 : f32 to vector<4x1xf32>
    %271 = arith.addf %269, %270 : vector<4x1xf32>
    %272 = tpu.reciprocal %271 {approx = true} : vector<4x1xf32> -> vector<4x1xf32>
    %273 = vector.broadcast %272 : vector<4x1xf32> to vector<4x256xf32>
    %274 = arith.mulf %266, %273 : vector<4x256xf32>
    %cst_99 = arith.constant dense<0.000000e+00> : vector<4x32xf32>
    %275 = tpu.matmul %274, %267, %cst_99 {dimension_numbers = #tpu.dot_dimension_numbers<[1], [1], [0], [0], [0, 0, 1, 0], [], []>} : vector<4x256xf32>, vector<32x256xf32>, vector<4x32xf32> -> vector<4x32xf32>
    %276 = vector.extract_strided_slice %242 {offsets = [0, 768], sizes = [4, 256], strides = [1, 1]} : vector<4x1024xf32> to vector<4x256xf32>
    %277 = vector.extract_strided_slice %202 {offsets = [0, 768], sizes = [32, 256], strides = [1, 1]} : vector<32x1024xf32> to vector<32x256xf32>
    %cst_100 = arith.constant dense<0.000000e+00> : vector<4xf32>
    %278 = vector.multi_reduction <add>, %276, %cst_100 [1] : vector<4x256xf32> to vector<4xf32>
    %279 = vector.shape_cast %278 : vector<4xf32> to vector<4x1xf32>
    %cst_101 = arith.constant 9.99999993E-9 : f32
    %280 = vector.broadcast %cst_101 : f32 to vector<4x1xf32>
    %281 = arith.addf %279, %280 : vector<4x1xf32>
    %282 = tpu.reciprocal %281 {approx = true} : vector<4x1xf32> -> vector<4x1xf32>
    %283 = vector.broadcast %282 : vector<4x1xf32> to vector<4x256xf32>
    %284 = arith.mulf %276, %283 : vector<4x256xf32>
    %cst_102 = arith.constant dense<0.000000e+00> : vector<4x32xf32>
    %285 = tpu.matmul %284, %277, %cst_102 {dimension_numbers = #tpu.dot_dimension_numbers<[1], [1], [0], [0], [0, 0, 1, 0], [], []>} : vector<4x256xf32>, vector<32x256xf32>, vector<4x32xf32> -> vector<4x32xf32>
    %286 = tpu.concatenate %255, %265, %275, %285 in 0 : vector<4x32xf32>, vector<4x32xf32>, vector<4x32xf32>, vector<4x32xf32> -> vector<16x32xf32>
    %cst_103 = arith.constant dense<0.000000e+00> : vector<16x32xf32>
    %287 = tpu.matmul %286, %6, %cst_103 {dimension_numbers = #tpu.dot_dimension_numbers<[1], [0], [0], [1], [0, 0, 1, 1], [], []>} : vector<16x32xf32>, vector<32x32xf32>, vector<16x32xf32> -> vector<16x32xf32>
    %288 = vector.extract_strided_slice %287 {offsets = [0, 0], sizes = [4, 32], strides = [1, 1]} : vector<16x32xf32> to vector<4x32xf32>
    %289 = arith.addf %228, %288 : vector<4x32xf32>
    %290 = vector.broadcast %7 : vector<1x32xf32> to vector<4x32xf32>
    %291 = arith.addf %289, %290 : vector<4x32xf32>
    %292 = vector.extract_strided_slice %287 {offsets = [4, 0], sizes = [4, 32], strides = [1, 1]} : vector<16x32xf32> to vector<4x32xf32>
    %293 = arith.addf %228, %292 : vector<4x32xf32>
    %294 = vector.broadcast %7 : vector<1x32xf32> to vector<4x32xf32>
    %295 = arith.addf %293, %294 : vector<4x32xf32>
    %296 = vector.extract_strided_slice %287 {offsets = [8, 0], sizes = [4, 32], strides = [1, 1]} : vector<16x32xf32> to vector<4x32xf32>
    %297 = arith.addf %228, %296 : vector<4x32xf32>
    %298 = vector.broadcast %7 : vector<1x32xf32> to vector<4x32xf32>
    %299 = arith.addf %297, %298 : vector<4x32xf32>
    %300 = vector.extract_strided_slice %287 {offsets = [12, 0], sizes = [4, 32], strides = [1, 1]} : vector<16x32xf32> to vector<4x32xf32>
    %301 = arith.addf %228, %300 : vector<4x32xf32>
    %302 = vector.broadcast %7 : vector<1x32xf32> to vector<4x32xf32>
    %303 = arith.addf %301, %302 : vector<4x32xf32>
    %304 = tpu.concatenate %291, %295, %299, %303 in 1 : vector<4x32xf32>, vector<4x32xf32>, vector<4x32xf32>, vector<4x32xf32> -> vector<4x128xf32>
    %c1_104 = arith.constant 1 : index
    %c0_105 = arith.constant 0 : index
    %c0_106 = arith.constant 0 : index
    %305 = vector.load %arg4[%c1_104, %c0_105, %c0_106] : memref<2x4x128xf32, #tpu.memory_space<vmem>>, vector<1x4x128xf32>
    %306 = vector.shape_cast %305 : vector<1x4x128xf32> to vector<4x128xf32>
    %307 = vector.shape_cast %304 : vector<4x128xf32> to vector<1x4x128xf32>
    tpu.vector_store %arg4[%c1_104, %c0_105, %c0_106], %307 {strides = array<i32>} : memref<2x4x128xf32, #tpu.memory_space<vmem>>, vector<1x4x128xf32>,
    %308 = tpu.concatenate %291, %295, %299 in 0 : vector<4x32xf32>, vector<4x32xf32>, vector<4x32xf32> -> vector<12x32xf32>
    %309 = tpu.concatenate %295, %299, %303 in 0 : vector<4x32xf32>, vector<4x32xf32>, vector<4x32xf32> -> vector<12x32xf32>
    %cst_107 = arith.constant dense<0.000000e+00> : vector<12x32xf32>
    %310 = tpu.matmul %308, %8, %cst_107 {dimension_numbers = #tpu.dot_dimension_numbers<[1], [0], [0], [1], [0, 0, 1, 1], [], []>} : vector<12x32xf32>, vector<32x32xf32>, vector<12x32xf32> -> vector<12x32xf32>
    %cst_108 = arith.constant dense<0.000000e+00> : vector<12x32xf32>
    %311 = tpu.matmul %309, %9, %cst_108 {dimension_numbers = #tpu.dot_dimension_numbers<[1], [0], [0], [1], [0, 0, 1, 1], [], []>} : vector<12x32xf32>, vector<32x32xf32>, vector<12x32xf32> -> vector<12x32xf32>
    %312 = arith.addf %310, %311 : vector<12x32xf32>
    %313 = vector.broadcast %10 : vector<1x32xf32> to vector<12x32xf32>
    %314 = arith.addf %312, %313 : vector<12x32xf32>
    %cst_109 = arith.constant 0.000000e+00 : f32
    %315 = vector.broadcast %cst_109 : f32 to vector<12x32xf32>
    %316 = arith.maximumf %314, %315 : vector<12x32xf32>
    %cst_110 = arith.constant dense<0.000000e+00> : vector<12x2xf32>
    %317 = tpu.matmul %316, %12, %cst_110 {dimension_numbers = #tpu.dot_dimension_numbers<[1], [0], [0], [1], [0, 0, 1, 1], [], []>} : vector<12x32xf32>, vector<32x2xf32>, vector<12x2xf32> -> vector<12x2xf32>
    %318 = vector.broadcast %14 : vector<1x2xf32> to vector<12x2xf32>
    %319 = arith.addf %317, %318 : vector<12x2xf32>
    %cst_111 = arith.constant 2.000000e+01 : f32
    %320 = vector.broadcast %cst_111 : f32 to vector<12x2xf32>
    %321 = arith.mulf %319, %320 : vector<12x2xf32>
    %322 = vector.extract_strided_slice %321 {offsets = [0, 0], sizes = [4, 2], strides = [1, 1]} : vector<12x2xf32> to vector<4x2xf32>
    %323 = vector.extract_strided_slice %242 {offsets = [0, 0], sizes = [4, 256], strides = [1, 1]} : vector<4x1024xf32> to vector<4x256xf32>
    %cst_112 = arith.constant dense<0.000000e+00> : vector<2x256xf32>
    %324 = tpu.matmul %322, %323, %cst_112 {dimension_numbers = #tpu.dot_dimension_numbers<[0], [0], [1], [1], [0, 1, 1, 1], [], []>} : vector<4x2xf32>, vector<4x256xf32>, vector<2x256xf32> -> vector<2x256xf32>
    %325 = vector.extract_strided_slice %321 {offsets = [4, 0], sizes = [4, 2], strides = [1, 1]} : vector<12x2xf32> to vector<4x2xf32>
    %326 = vector.extract_strided_slice %242 {offsets = [0, 256], sizes = [4, 256], strides = [1, 1]} : vector<4x1024xf32> to vector<4x256xf32>
    %cst_113 = arith.constant dense<0.000000e+00> : vector<2x256xf32>
    %327 = tpu.matmul %325, %326, %cst_113 {dimension_numbers = #tpu.dot_dimension_numbers<[0], [0], [1], [1], [0, 1, 1, 1], [], []>} : vector<4x2xf32>, vector<4x256xf32>, vector<2x256xf32> -> vector<2x256xf32>
    %328 = vector.extract_strided_slice %321 {offsets = [8, 0], sizes = [4, 2], strides = [1, 1]} : vector<12x2xf32> to vector<4x2xf32>
    %329 = vector.extract_strided_slice %242 {offsets = [0, 512], sizes = [4, 256], strides = [1, 1]} : vector<4x1024xf32> to vector<4x256xf32>
    %cst_114 = arith.constant dense<0.000000e+00> : vector<2x256xf32>
    %330 = tpu.matmul %328, %329, %cst_114 {dimension_numbers = #tpu.dot_dimension_numbers<[0], [0], [1], [1], [0, 1, 1, 1], [], []>} : vector<4x2xf32>, vector<4x256xf32>, vector<2x256xf32> -> vector<2x256xf32>
    %331 = tpu.concatenate %324, %327, %330 in 1 : vector<2x256xf32>, vector<2x256xf32>, vector<2x256xf32> -> vector<2x768xf32>
    %c1_115 = arith.constant 1 : index
    %c0_116 = arith.constant 0 : index
    %c0_117 = arith.constant 0 : index
    %332 = vector.load %arg6[%c1_115, %c0_116, %c0_117] : memref<2x2x768xf32, #tpu.memory_space<vmem>>, vector<1x2x768xf32>
    %333 = vector.shape_cast %332 : vector<1x2x768xf32> to vector<2x768xf32>
    %334 = vector.shape_cast %331 : vector<2x768xf32> to vector<1x2x768xf32>
    tpu.vector_store %arg6[%c1_115, %c0_116, %c0_117], %334 {strides = array<i32>} : memref<2x2x768xf32, #tpu.memory_space<vmem>>, vector<1x2x768xf32>,
    %335 = vector.extract_strided_slice %27 {offsets = [0, 1024], sizes = [4, 768], strides = [1, 1]} : vector<4x2048xf32> to vector<4x768xf32>
    %cst_118 = arith.constant dense<0.000000e+00> : vector<32x768xf32>
    %336 = tpu.matmul %16, %335, %cst_118 {dimension_numbers = #tpu.dot_dimension_numbers<[1], [0], [0], [1], [0, 0, 1, 1], [], []>} : vector<32x4xf32>, vector<4x768xf32>, vector<32x768xf32> -> vector<32x768xf32>
    %cst_119 = arith.constant dense<0.000000e+00> : vector<32x768xf32>
    %337 = tpu.matmul %18, %331, %cst_119 {dimension_numbers = #tpu.dot_dimension_numbers<[1], [0], [0], [1], [0, 0, 1, 1], [], []>} : vector<32x2xf32>, vector<2x768xf32>, vector<32x768xf32> -> vector<32x768xf32>
    %338 = arith.addf %336, %337 : vector<32x768xf32>
    %339 = vector.broadcast %20 : vector<32x1xf32> to vector<32x768xf32>
    %340 = arith.addf %338, %339 : vector<32x768xf32>
    %cst_120 = arith.constant 0.000000e+00 : f32
    %341 = vector.broadcast %cst_120 : f32 to vector<32x768xf32>
    %342 = arith.maximumf %340, %341 : vector<32x768xf32>
    %cst_121 = arith.constant dense<0.000000e+00> : vector<4x768xf32>
    %343 = tpu.matmul %21, %342, %cst_121 {dimension_numbers = #tpu.dot_dimension_numbers<[1], [0], [0], [1], [0, 0, 1, 1], [], []>} : vector<4x32xf32>, vector<32x768xf32>, vector<4x768xf32> -> vector<4x768xf32>
    %344 = vector.broadcast %23 : vector<4x1xf32> to vector<4x768xf32>
    %345 = arith.addf %343, %344 : vector<4x768xf32>
    %c1_122 = arith.constant 1 : index
    %c0_123 = arith.constant 0 : index
    %c0_124 = arith.constant 0 : index
    %346 = vector.load %arg7[%c1_122, %c0_123, %c0_124] : memref<2x4x768xf32, #tpu.memory_space<vmem>>, vector<1x4x768xf32>
    %347 = vector.shape_cast %346 : vector<1x4x768xf32> to vector<4x768xf32>
    %348 = vector.shape_cast %345 : vector<4x768xf32> to vector<1x4x768xf32>
    tpu.vector_store %arg7[%c1_122, %c0_123, %c0_124], %348 {strides = array<i32>} : memref<2x4x768xf32, #tpu.memory_space<vmem>>, vector<1x4x768xf32>,
    return
  }
  func.func @transform_0(%arg0: i32) -> (i32, i32, i32) {
    %c0_i32 = arith.constant 0 : i32
    %c0_i32_0 = arith.constant 0 : i32
    %c0_i32_1 = arith.constant 0 : i32
    return %arg0, %c0_i32, %c0_i32_0 : i32, i32, i32
  }
  func.func @transform_1(%arg0: i32) -> (i32, i32) {
    %c0_i32 = arith.constant 0 : i32
    %c0_i32_0 = arith.constant 0 : i32
    %c0_i32_1 = arith.constant 0 : i32
    return %c0_i32, %c0_i32_0 : i32, i32
  }
  func.func @transform_2(%arg0: i32) -> (i32, i32) {
    %c0_i32 = arith.constant 0 : i32
    %c0_i32_0 = arith.constant 0 : i32
    %c0_i32_1 = arith.constant 0 : i32
    return %c0_i32, %c0_i32_0 : i32, i32
  }
  func.func @transform_3(%arg0: i32) -> (i32, i32, i32) {
    %c0_i32 = arith.constant 0 : i32
    %c0_i32_0 = arith.constant 0 : i32
    %c0_i32_1 = arith.constant 0 : i32
    return %arg0, %c0_i32, %c0_i32_0 : i32, i32, i32
  }
  func.func @transform_4(%arg0: i32) -> (i32, i32, i32) {
    %c0_i32 = arith.constant 0 : i32
    %c0_i32_0 = arith.constant 0 : i32
    %c0_i32_1 = arith.constant 0 : i32
    return %arg0, %c0_i32, %c0_i32_0 : i32, i32, i32
  }
  func.func @transform_5(%arg0: i32) -> (i32, i32, i32) {
    %c0_i32 = arith.constant 0 : i32
    %c0_i32_0 = arith.constant 0 : i32
    %c0_i32_1 = arith.constant 0 : i32
    return %arg0, %c0_i32, %c0_i32_0 : i32, i32, i32
  }
  func.func @transform_6(%arg0: i32) -> (i32, i32, i32) {
    %c0_i32 = arith.constant 0 : i32
    %c0_i32_0 = arith.constant 0 : i32
    %c0_i32_1 = arith.constant 0 : i32
    return %arg0, %c0_i32, %c0_i32_0 : i32, i32, i32
  }
}

</mosaic_0001>

<bundles_post_ra>
// kernel: forward.1
= control target key start
LH: loop header
LB: loop body
LE: loop exit
PB: predicated region body
PF: predicated region fallthrough
CT: control target
= control target key end

     0   :  { %v8827_v2 = vmov 0   ;;  %vm156_vm0 = vcmask 1043456   ;;  %vm143_vm1 = vcmask 31744   ;;  %vm781_vm2 = vcmask 261120   ;;  %s6367_s20 = smov 96   ;;  %s6368_s23 = smov 64   ;;  %s8820_s0 = inlined_call_operand.vmem [shape: f32[1,4,2048], index: 0, kind: input, shape index: {}]   ;;  %s8821_s2 = inlined_call_operand.vmem [shape: f32[432,32], index: 2, kind: input, shape index: {}]   ;;  %s8822_s1 = inlined_call_operand.vmem [shape: f32[32,256], index: 1, kind: input, shape index: {}]   ;;  %s8823_s4 = inlined_call_operand.vmem [shape: f32[2,4,1024], index: 4, kind: output, shape index: {1}]   ;;  %s8824_s5 = inlined_call_operand.vmem [shape: f32[2,2,768], index: 5, kind: output, shape index: {2}]   ;;  %s8825_s6 = inlined_call_operand.vmem [shape: f32[2,4,768], index: 6, kind: output, shape index: {3}]   ;;  %s8826_s3 = inlined_call_operand.vmem [shape: f32[2,4,128], index: 3, kind: output, shape index: {0}]  }
   0x1   :  { %v6407_v0 = vld [vmem:[%s8820_s0] sm:$0xff]  ;;  %v6412_v1 = vld [vmem:[%s8820_s0 + $0x8] sm:$0xff]  ;;  %6179 = vset.pattern.permute.xlu1 %v8827_v2  ;;  %6178 = vset.pattern.permute.xlu0 %v8827_v2  ;;  %v23_v3 = vld [vmem:[%s8821_s2 + $0x158] sm:$0xff]  ;;  %vm3005_vm3 = vcmask 1041408   ;;  %vm3015_vm4 = vcmask 15360   ;;  %vm3007_vm5 = vcmask 1045508  }
   0x2   :  { %116 = vst [vmem:[#allocation1] ss:$2 sm:$0xff] %v6407_v0  ;;  %95 = vperm.xlu1 %6179, %v23_v3   ;;  %v25_v4 = vld [vmem:[%s8821_s2 + $0x168] sm:$0xff]  ;;  %v6427_v5 = vld [vmem:[%s8820_s0 + $0x10] sm:$0xff]  ;;  %v83_v6 = vld [vmem:[%s8820_s0 + $0x18] sm:$0xff]  ;;  %vm2651_vm6 = vcmask 523264  }
   0x3   :  { %118 = vst [vmem:[#allocation1 + $0x10] ss:$2 sm:$0xff] %v6412_v1  ;;  %105 = vperm.xlu0 %6178, %v25_v4   ;;  %v6436_v7 = vld [vmem:[%s8820_s0 + $0x20] sm:$0xff]  ;;  %v6441_v8 = vld [vmem:[%s8820_s0 + $0x28] sm:$0xff]  ;;  %v22_v13 = vld [vmem:[%s8821_s2 + $0x150] sm:$0xff]  ;;  %vm2653_vm7 = vcmask 785408  }
   0x4   :  { %120 = vst [vmem:[#allocation1 + $0x20] ss:$2 sm:$0xff] %v6427_v5  ;;  %v6446_v9 = vld [vmem:[%s8821_s2] sm:$0xff]  ;;  %v6463_v16 = vld [vmem:[%s8820_s0 + $0x30] sm:$0xff]  ;;  %v87_v18 = vld [vmem:[%s8820_s0 + $0x38] sm:$0xff] }
   0x5   :  { %122 = vst [vmem:[#allocation1 + $0x30] ss:$2 sm:$0xff] %v83_v6  ;;  %v24_v15 = vld [vmem:[%s8821_s2 + $0x160] sm:$0xff]  ;;  %v6482_v22 = vld [vmem:[%s8821_s2 + $0x8] sm:$0xff]  ;;  %v6497_v23 = vld [vmem:[%s8821_s2 + $0x10] sm:$0xff] }
   0x6   :  { %8948 = vst [vmem:[#allocation2_spill] sm:$0xff] %v6436_v7  ;;  %v6510_v24 = vld [vmem:[%s8821_s2 + $0x18] sm:$0xff]  ;;  %v6646_v59 = vld [vmem:[%s8822_s1 + $0x30] sm:$0xff]  ;;  %v6661_v3 = vld [vmem:[%s8822_s1 + $0x28] sm:$0xff] }
   0x7   :  { %8949 = vst [vmem:[#allocation3_spill] sm:$0xff] %v6441_v8  ;;  %v6651_v60 = vld [vmem:[%s8822_s1 + $0x38] sm:$0xff] }
   0x8   :  { %8950 = vst [vmem:[#allocation4_spill] sm:$0xff] %v6463_v16 }
   0x9   :  { %v123_v10 = vld.sshfl [vmem:[#allocation1] sm:$0xff pattern:$0x75316420]  ;;  %v124_v11 = vld.sshfl [vmem:[#allocation1 + $0x8] sm:$0xff pattern:$0x75316420] }
   0xa   :  { %5746 = vmatpush.msk.msra.mxu0 %vm156_vm0, %v123_v10  ;;  %131 = vst [vmem:[#allocation1] ss:$2 sm:$0xff] %v6436_v7  ;;  %5751 = vmatpush.msk.msra.mxu1 %vm156_vm0, %v124_v11  ;;  %v125_v12 = vld.sshfl [vmem:[#allocation1 + $0x10] sm:$0xff pattern:$0x75316420] }
   0xb   :  { %5756 = vmatpush.msk.msra.mxu2 %vm156_vm0, %v125_v12  ;;  %v126_v14 = vld.sshfl [vmem:[#allocation1 + $0x18] sm:$0xff pattern:$0x75316420]  ;;  %5747 = vmatmul.msk.f32.vlgmr.msra.gmra.mxu0 %vm143_vm1, %v6446_v9  ;;  %v127_v17 = vld.sshfl [vmem:[#allocation1 + $0x20] sm:$0xff pattern:$0x75316420] }
   0xc   :  { %132 = vst [vmem:[#allocation1 + $0x10] ss:$2 sm:$0xff] %v6441_v8  ;;  %5761 = vmatpush.msk.msra.mxu3 %vm156_vm0, %v126_v14  ;;  %5752 = vmatmul.msk.f32.vlgmr.msra.gmra.mxu1 %vm143_vm1, %v6446_v9  ;;  %v128_v19 = vld.sshfl [vmem:[#allocation1 + $0x28] sm:$0xff pattern:$0x75316420]  ;;  %v6675_v14 = vld [vmem:[%s8822_s1 + $0x18] sm:$0xff] }
   0xd   :  { %5757 = vmatmul.msk.f32.vlgmr.msra.gmra.mxu2 %vm143_vm1, %v6446_v9  ;;  %5762 = vmatmul.msk.f32.vlgmr.msra.gmra.mxu3 %vm143_vm1, %v6446_v9  ;;  %v129_v20 = vld.sshfl [vmem:[#allocation1 + $0x30] sm:$0xff pattern:$0x75316420]  ;;  %133 = vst [vmem:[#allocation1 + $0x20] ss:$2 sm:$0xff] %v6463_v16 }
   0xe   :  { %90 = vperm.xlu1 %6179, %v22_v13   ;;  %100 = vperm.xlu0 %6178, %v24_v15   ;;  %v130_v21 = vld.sshfl [vmem:[#allocation1 + $0x38] sm:$0xff pattern:$0x75316420]  ;;  %v6670_v13 = vld [vmem:[%s8822_s1 + $0x10] sm:$0xff] }
   0xf   :  { %5766 = vmatpush.msk.msrb.mxu0 %vm156_vm0, %v127_v17  ;;  %5771 = vmatpush.msk.msrb.mxu1 %vm156_vm0, %v128_v19  ;;  %134 = vst [vmem:[#allocation1 + $0x30] ss:$2 sm:$0xff] %v87_v18 }
  0x10   :  { %5776 = vmatpush.msk.msrb.mxu2 %vm156_vm0, %v129_v20  ;;  %5781 = vmatpush.msk.msrb.mxu3 %vm156_vm0, %v130_v21 }
  0x11   :  { %v135_v25 = vld.sshfl [vmem:[#allocation1] sm:$0xff pattern:$0x75316420]  ;;  %v136_v26 = vld.sshfl [vmem:[#allocation1 + $0x8] sm:$0xff pattern:$0x75316420] }
  0x12   :  { %5786 = vmatpush.msk.msra.mxu0 %vm156_vm0, %v135_v25  ;;  %5791 = vmatpush.msk.msra.mxu1 %vm156_vm0, %v136_v26  ;;  %3214 = vst [vmem:[#allocation1] ss:$2 sm:$0xff] %v6407_v0 }
  0x13   :  { %5748 = vmatmul.msk.f32.gmra.mxu0 %vm143_vm1, %v6482_v22  ;;  %v137_v27 = vld.sshfl [vmem:[#allocation1 + $0x10] sm:$0xff pattern:$0x75316420]  ;;  %v138_v28 = vld.sshfl [vmem:[#allocation1 + $0x18] sm:$0xff pattern:$0x75316420] }
  0x14   :  { %5753 = vmatmul.msk.f32.gmra.mxu1 %vm143_vm1, %v6482_v22  ;;  %5796 = vmatpush.msk.msra.mxu2 %vm156_vm0, %v137_v27  ;;  %3216 = vst [vmem:[#allocation1 + $0x10] ss:$2 sm:$0xff] %v6412_v1  ;;  %v139_v29 = vld.sshfl [vmem:[#allocation1 + $0x20] sm:$0xff pattern:$0x75316420] }
  0x15   :  { %5758 = vmatmul.msk.f32.gmra.mxu2 %vm143_vm1, %v6482_v22  ;;  %5763 = vmatmul.msk.f32.gmra.mxu3 %vm143_vm1, %v6482_v22  ;;  %v140_v30 = vld.sshfl [vmem:[#allocation1 + $0x28] sm:$0xff pattern:$0x75316420]  ;;  %v6656_v1 = vld [vmem:[%s8822_s1 + $0x20] sm:$0xff] }
  0x16   :  { %5801 = vmatpush.msk.msra.mxu3 %vm156_vm0, %v138_v28  ;;  %3218 = vst [vmem:[#allocation1 + $0x20] ss:$2 sm:$0xff] %v6427_v5  ;;  %v141_v31 = vld.sshfl [vmem:[#allocation1 + $0x30] sm:$0xff pattern:$0x75316420]  ;;  %v6691_v28 = vld [vmem:[%s8822_s1] sm:$0xff] }
  0x17   :  { %v142_v32 = vld.sshfl [vmem:[#allocation1 + $0x38] sm:$0xff pattern:$0x75316420] }
  0x1b   :  { %5749 = vmatmul.msk.f32.gmra.mxu0 %vm143_vm1, %v6497_v23 }
  0x1c   :  { %5754 = vmatmul.msk.f32.gmra.mxu1 %vm143_vm1, %v6497_v23 }
  0x1d   :  { %5759 = vmatmul.msk.f32.gmra.mxu2 %vm143_vm1, %v6497_v23  ;;  %5764 = vmatmul.msk.f32.gmra.mxu3 %vm143_vm1, %v6497_v23 }
  0x23   :  { %5750 = vmatmul.msk.f32.gmra.mxu0 %vm143_vm1, %v6510_v24 }
  0x24   :  { %5755 = vmatmul.msk.f32.gmra.mxu1 %vm143_vm1, %v6510_v24 }
  0x25   :  { %5760 = vmatmul.msk.f32.gmra.mxu2 %vm143_vm1, %v6510_v24  ;;  %5765 = vmatmul.msk.f32.gmra.mxu3 %vm143_vm1, %v6510_v24 }
  0x2b   :  { %5767 = vmatmul.msk.f32.vlgmr.msrb.gmra.mxu0 %vm143_vm1, %v6446_v9 }
  0x2c   :  { %5772 = vmatmul.msk.f32.vlgmr.msrb.gmra.mxu1 %vm143_vm1, %v6446_v9  ;;  %5806 = vmatpush.msk.msrb.mxu0 %vm156_vm0, %v139_v29  ;;  %v6696_v29 = vld [vmem:[%s8822_s1 + $0x8] sm:$0xff]  ;;  %s6366_s1 = smov 32  }
  0x2d   :  { %5777 = vmatmul.msk.f32.vlgmr.msrb.gmra.mxu2 %vm143_vm1, %v6446_v9  ;;  %5782 = vmatmul.msk.f32.vlgmr.msrb.gmra.mxu3 %vm143_vm1, %v6446_v9 }
  0x2e   :  { %5811 = vmatpush.msk.msrb.mxu1 %vm156_vm0, %v140_v30  ;;  %5816 = vmatpush.msk.msrb.mxu2 %vm156_vm0, %v141_v31 }
  0x2f   :  { %5821 = vmatpush.msk.msrb.mxu3 %vm156_vm0, %v142_v32 }
  0x33   :  { %5768 = vmatmul.msk.f32.gmra.mxu0 %vm143_vm1, %v6482_v22 }
  0x34   :  { %5773 = vmatmul.msk.f32.gmra.mxu1 %vm143_vm1, %v6482_v22 }
  0x35   :  { %5778 = vmatmul.msk.f32.gmra.mxu2 %vm143_vm1, %v6482_v22  ;;  %5783 = vmatmul.msk.f32.gmra.mxu3 %vm143_vm1, %v6482_v22 }
  0x3b   :  { %5769 = vmatmul.msk.f32.gmra.mxu0 %vm143_vm1, %v6497_v23 }
  0x3c   :  { %5774 = vmatmul.msk.f32.gmra.mxu1 %vm143_vm1, %v6497_v23 }
  0x3d   :  { %5779 = vmatmul.msk.f32.gmra.mxu2 %vm143_vm1, %v6497_v23  ;;  %5784 = vmatmul.msk.f32.gmra.mxu3 %vm143_vm1, %v6497_v23 }
  0x43   :  { %5770 = vmatmul.msk.f32.gmra.mxu0 %vm143_vm1, %v6510_v24 }
  0x44   :  { %5775 = vmatmul.msk.f32.gmra.mxu1 %vm143_vm1, %v6510_v24 }
  0x45   :  { %5780 = vmatmul.msk.f32.gmra.mxu2 %vm143_vm1, %v6510_v24  ;;  %5785 = vmatmul.msk.f32.gmra.mxu3 %vm143_vm1, %v6510_v24 }
  0x4b   :  { %5787 = vmatmul.msk.f32.vlgmr.msra.gmra.mxu0 %vm143_vm1, %v6446_v9 }
  0x4c   :  { %5792 = vmatmul.msk.f32.vlgmr.msra.gmra.mxu1 %vm143_vm1, %v6446_v9 }
  0x4d   :  { %5797 = vmatmul.msk.f32.vlgmr.msra.gmra.mxu2 %vm143_vm1, %v6446_v9  ;;  %5802 = vmatmul.msk.f32.vlgmr.msra.gmra.mxu3 %vm143_vm1, %v6446_v9 }
  0x53   :  { %5788 = vmatmul.msk.f32.gmra.mxu0 %vm143_vm1, %v6482_v22 }
  0x54   :  { %5793 = vmatmul.msk.f32.gmra.mxu1 %vm143_vm1, %v6482_v22 }
  0x55   :  { %5798 = vmatmul.msk.f32.gmra.mxu2 %vm143_vm1, %v6482_v22  ;;  %5803 = vmatmul.msk.f32.gmra.mxu3 %vm143_vm1, %v6482_v22 }
  0x5b   :  { %5789 = vmatmul.msk.f32.gmra.mxu0 %vm143_vm1, %v6497_v23 }
  0x5c   :  { %5794 = vmatmul.msk.f32.gmra.mxu1 %vm143_vm1, %v6497_v23 }
  0x5d   :  { %5799 = vmatmul.msk.f32.gmra.mxu2 %vm143_vm1, %v6497_v23  ;;  %5804 = vmatmul.msk.f32.gmra.mxu3 %vm143_vm1, %v6497_v23 }
  0x63   :  { %5790 = vmatmul.msk.f32.gmra.mxu0 %vm143_vm1, %v6510_v24 }
  0x64   :  { %5795 = vmatmul.msk.f32.gmra.mxu1 %vm143_vm1, %v6510_v24 }
  0x65   :  { %5800 = vmatmul.msk.f32.gmra.mxu2 %vm143_vm1, %v6510_v24  ;;  %5805 = vmatmul.msk.f32.gmra.mxu3 %vm143_vm1, %v6510_v24 }
  0x6b   :  { %5807 = vmatmul.msk.f32.vlgmr.msrb.gmra.mxu0 %vm143_vm1, %v6446_v9 }
  0x6c   :  { %5812 = vmatmul.msk.f32.vlgmr.msrb.gmra.mxu1 %vm143_vm1, %v6446_v9 }
  0x6d   :  { %5817 = vmatmul.msk.f32.vlgmr.msrb.gmra.mxu2 %vm143_vm1, %v6446_v9  ;;  %5822 = vmatmul.msk.f32.vlgmr.msrb.gmra.mxu3 %vm143_vm1, %v6446_v9 }
  0x73   :  { %5808 = vmatmul.msk.f32.gmra.mxu0 %vm143_vm1, %v6482_v22 }
  0x74   :  { %5813 = vmatmul.msk.f32.gmra.mxu1 %vm143_vm1, %v6482_v22  ;;  %v6629_v40 = vpop.permute.xlu1 %95 }
  0x75   :  { %5818 = vmatmul.msk.f32.gmra.mxu2 %vm143_vm1, %v6482_v22  ;;  %5823 = vmatmul.msk.f32.gmra.mxu3 %vm143_vm1, %v6482_v22  ;;  %v6627_v39 = vpop.permute.xlu0 %105 }
  0x7b   :  { %5809 = vmatmul.msk.f32.gmra.mxu0 %vm143_vm1, %v6497_v23 }
  0x7c   :  { %5814 = vmatmul.msk.f32.gmra.mxu1 %vm143_vm1, %v6497_v23 }
  0x7d   :  { %5819 = vmatmul.msk.f32.gmra.mxu2 %vm143_vm1, %v6497_v23  ;;  %5824 = vmatmul.msk.f32.gmra.mxu3 %vm143_vm1, %v6497_v23 }
  0x80   :  { %v6631_v45 = vpop.permute.xlu0 %100  ;;  %v6633_v46 = vpop.permute.xlu1 %90 }
  0x83   :  { %5810 = vmatmul.msk.f32.gmra.mxu0 %vm143_vm1, %v6510_v24 }
  0x84   :  { %5815 = vmatmul.msk.f32.gmra.mxu1 %vm143_vm1, %v6510_v24 }
  0x85   :  { %5820 = vmatmul.msk.f32.gmra.mxu2 %vm143_vm1, %v6510_v24  ;;  %5825 = vmatmul.msk.f32.gmra.mxu3 %vm143_vm1, %v6510_v24 }
  0x88   :  { %v206_v33 = vpop.f32.mrf.mxu0 }
  0x89   :  { %v235_v34 = vpop.f32.mrf.mxu1  ;;  %v207_v57 = vadd.f32 %v206_v33, %v6633_v46 }
  0x8a   :  { %v236_v58 = vadd.f32 %v235_v34, %v6633_v46 }
  0x8b   :  { %v653_v10 = vmax.f32 %v207_v57, 0.0 }
  0x8c   :  { %v654_v15 = vmax.f32 %v236_v58, 0.0 }
  0x90   :  { %v264_v35 = vpop.f32.mrf.mxu2  ;;  %v293_v36 = vpop.f32.mrf.mxu3 }
  0x91   :  { %v209_v37 = vpop.f32.mrf.mxu0  ;;  %v238_v38 = vpop.f32.mrf.mxu1  ;;  %v265_v17 = vadd.f32 %v264_v35, %v6633_v46  ;;  %v294_v30 = vadd.f32 %v293_v36, %v6633_v46 }
  0x92   :  { %v210_v53 = vadd.f32 %v209_v37, %v6629_v40  ;;  %v239_v54 = vadd.f32 %v238_v38, %v6629_v40  ;;  %v717_v38 = vadd.f32 %v653_v10, %v6691_v28 }
  0x94   :  { %v669_v4 = vmax.f32 %v210_v53, 0.0  ;;  %v670_v5 = vmax.f32 %v239_v54, 0.0 }
  0x96   :  { %v719_v31 = vadd.f32 %v669_v4, %v6670_v13  ;;  %v720_v32 = vadd.f32 %v670_v5, %v6675_v14 }
  0x98   :  { %v267_v41 = vpop.f32.mrf.mxu2  ;;  %v296_v42 = vpop.f32.mrf.mxu3 }
  0x99   :  { %v212_v43 = vpop.f32.mrf.mxu0  ;;  %v241_v44 = vpop.f32.mrf.mxu1  ;;  %v268_v22 = vadd.f32 %v267_v41, %v6629_v40  ;;  %v297_v23 = vadd.f32 %v296_v42, %v6629_v40  ;;  %v718_v41 = vadd.f32 %v654_v15, %v6696_v29 }
  0x9a   :  { %v213_v47 = vadd.f32 %v212_v43, %v6631_v45  ;;  %v242_v48 = vadd.f32 %v241_v44, %v6631_v45 }
  0x9b   :  { %v671_v42 = vmax.f32 %v268_v22, 0.0  ;;  %v672_v43 = vmax.f32 %v297_v23, 0.0 }
  0x9c   :  { %v685_v61 = vmax.f32 %v213_v47, 0.0  ;;  %v686_v62 = vmax.f32 %v242_v48, 0.0  ;;  %v6708_v47 = vld [vmem:[%s8821_s2 + $0x40] sm:$0xff]  ;;  %v655_v48 = vmax.f32 %v265_v17, 0.0 }
  0x9d   :  { %v728_v57 = vadd.f32 %v672_v43, %v6675_v14 }
  0x9e   :  { %v721_v20 = vadd.f32 %v685_v61, %v6656_v1  ;;  %v722_v21 = vadd.f32 %v686_v62, %v6661_v3  ;;  %v725_v58 = vadd.f32 %v655_v48, %v6691_v28  ;;  %v6727_v62 = vld [vmem:[%s8821_s2 + $0x48] sm:$0xff] }
  0xa0   :  { %v270_v49 = vpop.f32.mrf.mxu2  ;;  %v299_v50 = vpop.f32.mrf.mxu3 }
  0xa1   :  { %v215_v51 = vpop.f32.mrf.mxu0  ;;  %v244_v52 = vpop.f32.mrf.mxu1  ;;  %v271_v11 = vadd.f32 %v270_v49, %v6631_v45  ;;  %v300_v12 = vadd.f32 %v299_v50, %v6631_v45  ;;  %v656_v49 = vmax.f32 %v294_v30, 0.0 }
  0xa2   :  { %v216_v55 = vadd.f32 %v215_v51, %v6627_v39  ;;  %v245_v56 = vadd.f32 %v244_v52, %v6627_v39 }
  0xa3   :  { %v687_v33 = vmax.f32 %v271_v11, 0.0  ;;  %v688_v34 = vmax.f32 %v300_v12, 0.0  ;;  %v726_v61 = vadd.f32 %v656_v49, %v6696_v29 }
  0xa4   :  { %v701_v63 = vmax.f32 %v216_v55, 0.0  ;;  %v702_v0 = vmax.f32 %v245_v56, 0.0  ;;  %v727_v56 = vadd.f32 %v671_v42, %v6670_v13 }
  0xa5   :  { %v729_v50 = vadd.f32 %v687_v33, %v6656_v1  ;;  %v730_v51 = vadd.f32 %v688_v34, %v6661_v3 }
  0xa6   :  { %v723_v6 = vadd.f32 %v701_v63, %v6646_v59  ;;  %v724_v9 = vadd.f32 %v702_v0, %v6651_v60 }
  0xa8   :  { %v273_v18 = vpop.f32.mrf.mxu2  ;;  %v302_v19 = vpop.f32.mrf.mxu3  ;;  %818 = vmatpush.msra.mxu0 %v723_v6  ;;  %859 = vmatpush.msra.mxu1 %v724_v9  ;;  %v6740_v6 = vld [vmem:[%s8821_s2 + $0x50] sm:$0xff] }
  0xa9   :  { %v274_v24 = vadd.f32 %v273_v18, %v6627_v39  ;;  %v303_v25 = vadd.f32 %v302_v19, %v6627_v39  ;;  %v6684_v26 = vpop.f32.mrf.mxu0  ;;  %v6686_v27 = vpop.f32.mrf.mxu1 }
  0xaa   :  { %819 = vmatpush.msra.mxu0 %v721_v20  ;;  %860 = vmatpush.msra.mxu1 %v722_v21  ;;  %v352_v22 = vadd.f32 %v6686_v27, %v6633_v46  ;;  %v323_v30 = vadd.f32 %v6684_v26, %v6633_v46 }
  0xab   :  { %v703_v35 = vmax.f32 %v274_v24, 0.0  ;;  %v704_v37 = vmax.f32 %v303_v25, 0.0 }
  0xac   :  { %820 = vmatpush.msra.mxu0 %v719_v31  ;;  %861 = vmatpush.msra.mxu1 %v720_v32  ;;  %v6763_v32 = vld [vmem:[%s8821_s2 + $0x58] sm:$0xff] }
  0xad   :  { %v731_v36 = vadd.f32 %v703_v35, %v6646_v59  ;;  %v732_v44 = vadd.f32 %v704_v37, %v6651_v60  ;;  %v658_v37 = vmax.f32 %v352_v22, 0.0 }
  0xae   :  { %821 = vmatpush.msra.mxu0 %v717_v38  ;;  %862 = vmatpush.msra.mxu1 %v718_v41 }
  0xaf   :  { %900 = vmatpush.msra.mxu2 %v731_v36  ;;  %941 = vmatpush.msra.mxu3 %v732_v44  ;;  %v657_v44 = vmax.f32 %v323_v30, 0.0 }
  0xb0   :  { %v6712_v52 = vpop.f32.mrf.mxu2  ;;  %v6714_v53 = vpop.f32.mrf.mxu3  ;;  %5826 = vmatmul.msk.f32.vlgmr.msra.gmra.mxu0 %vm781_vm2, %v6708_v47  ;;  %5834 = vmatmul.msk.f32.vlgmr.msra.gmra.mxu1 %vm781_vm2, %v6708_v47 }
  0xb1   :  { %901 = vmatpush.msra.mxu2 %v729_v50  ;;  %942 = vmatpush.msra.mxu3 %v730_v51  ;;  %v325_v54 = vpop.f32.mrf.mxu0  ;;  %v354_v55 = vpop.f32.mrf.mxu1 }
  0xb2   :  { %v355_v18 = vadd.f32 %v354_v55, %v6629_v40  ;;  %v326_v21 = vadd.f32 %v325_v54, %v6629_v40  ;;  %v381_v55 = vadd.f32 %v6712_v52, %v6633_v46 }
  0xb3   :  { %902 = vmatpush.msra.mxu2 %v727_v56  ;;  %943 = vmatpush.msra.mxu3 %v728_v57 }
  0xb4   :  { %v674_v33 = vmax.f32 %v355_v18, 0.0  ;;  %v673_v27 = vmax.f32 %v326_v21, 0.0 }
  0xb5   :  { %903 = vmatpush.msra.mxu2 %v725_v58  ;;  %944 = vmatpush.msra.mxu3 %v726_v61 }
  0xb6   :  { %5842 = vmatmul.msk.f32.vlgmr.msra.gmra.mxu2 %vm781_vm2, %v6708_v47  ;;  %5850 = vmatmul.msk.f32.vlgmr.msra.gmra.mxu3 %vm781_vm2, %v6708_v47  ;;  %v736_v57 = vadd.f32 %v674_v33, %v6675_v14 }
  0xb8   :  { %v383_v63 = vpop.f32.mrf.mxu2  ;;  %v412_v0 = vpop.f32.mrf.mxu3  ;;  %5827 = vmatmul.msk.f32.gmra.mxu0 %vm781_vm2, %v6727_v62  ;;  %5835 = vmatmul.msk.f32.gmra.mxu1 %vm781_vm2, %v6727_v62 }
  0xb9   :  { %v328_v4 = vpop.f32.mrf.mxu0  ;;  %v357_v5 = vpop.f32.mrf.mxu1  ;;  %v384_v38 = vadd.f32 %v383_v63, %v6629_v40  ;;  %v413_v56 = vadd.f32 %v412_v0, %v6629_v40 }
  0xba   :  { %v358_v9 = vadd.f32 %v357_v5, %v6631_v45  ;;  %v329_v12 = vadd.f32 %v328_v4, %v6631_v45  ;;  %v735_v4 = vadd.f32 %v673_v27, %v6670_v13  ;;  %v410_v5 = vadd.f32 %v6714_v53, %v6633_v46 }
  0xbb   :  { %v659_v53 = vmax.f32 %v381_v55, 0.0 }
  0xbc   :  { %v690_v23 = vmax.f32 %v358_v9, 0.0  ;;  %v689_v31 = vmax.f32 %v329_v12, 0.0  ;;  %v733_v12 = vadd.f32 %v657_v44, %v6691_v28 }
  0xbe   :  { %5843 = vmatmul.msk.f32.gmra.mxu2 %vm781_vm2, %v6727_v62  ;;  %5851 = vmatmul.msk.f32.gmra.mxu3 %vm781_vm2, %v6727_v62  ;;  %v738_v36 = vadd.f32 %v690_v23, %v6661_v3  ;;  %v737_v54 = vadd.f32 %v689_v31, %v6656_v1  ;;  %v741_v31 = vadd.f32 %v659_v53, %v6691_v28 }
  0xc0   :  { %v386_v10 = vpop.f32.mrf.mxu2  ;;  %v415_v11 = vpop.f32.mrf.mxu3  ;;  %5828 = vmatmul.msk.f32.gmra.mxu0 %vm781_vm2, %v6740_v6  ;;  %5836 = vmatmul.msk.f32.gmra.mxu1 %vm781_vm2, %v6740_v6 }
  0xc1   :  { %v331_v15 = vpop.f32.mrf.mxu0  ;;  %v360_v17 = vpop.f32.mrf.mxu1  ;;  %v387_v26 = vadd.f32 %v386_v10, %v6631_v45  ;;  %v416_v41 = vadd.f32 %v415_v11, %v6631_v45  ;;  %v734_v10 = vadd.f32 %v658_v37, %v6696_v29  ;;  %v675_v11 = vmax.f32 %v384_v38, 0.0  ;;  %v6836_v38 = vld [vmem:[%s8821_s2 + $0x70] sm:$0xff] }
  0xc2   :  { %v332_v19 = vadd.f32 %v331_v15, %v6627_v39  ;;  %v361_v20 = vadd.f32 %v360_v17, %v6627_v39  ;;  %v6800_v15 = vld [vmem:[%s8821_s2 + $0x60] sm:$0xff]  ;;  %v676_v17 = vmax.f32 %v413_v56, 0.0 }
  0xc3   :  { %v691_v58 = vmax.f32 %v387_v26, 0.0  ;;  %v692_v9 = vmax.f32 %v416_v41, 0.0 }
  0xc4   :  { %v705_v24 = vmax.f32 %v332_v19, 0.0  ;;  %v706_v25 = vmax.f32 %v361_v20, 0.0  ;;  %v660_v19 = vmax.f32 %v410_v5, 0.0  ;;  %v744_v30 = vadd.f32 %v676_v17, %v6675_v14 }
  0xc5   :  { %v745_v18 = vadd.f32 %v691_v58, %v6656_v1  ;;  %v746_v22 = vadd.f32 %v692_v9, %v6661_v3  ;;  %v6859_v9 = vld [vmem:[%s8821_s2 + $0x78] sm:$0xff] }
  0xc6   :  { %v739_v34 = vadd.f32 %v705_v24, %v6646_v59  ;;  %v740_v35 = vadd.f32 %v706_v25, %v6651_v60  ;;  %5844 = vmatmul.msk.f32.gmra.mxu2 %vm781_vm2, %v6740_v6  ;;  %5852 = vmatmul.msk.f32.gmra.mxu3 %vm781_vm2, %v6740_v6  ;;  %v743_v25 = vadd.f32 %v675_v11, %v6670_v13 }
  0xc7   :  { %v742_v33 = vadd.f32 %v660_v19, %v6696_v29 }
  0xc8   :  { %v389_v42 = vpop.f32.mrf.mxu2  ;;  %v418_v43 = vpop.f32.mrf.mxu3  ;;  %5829 = vmatmul.msk.f32.gmra.mxu0 %vm781_vm2, %v6763_v32  ;;  %1023 = vmatpush.msrb.mxu1 %v740_v35 }
  0xc9   :  { %v390_v48 = vadd.f32 %v389_v42, %v6627_v39  ;;  %v419_v49 = vadd.f32 %v418_v43, %v6627_v39  ;;  %982 = vmatpush.msrb.mxu0 %v739_v34  ;;  %v6779_v50 = vpop.f32.mrf.mxu0  ;;  %v6781_v51 = vpop.f32.mrf.mxu1  ;;  %5837 = vmatmul.msk.f32.gmra.mxu1 %vm781_vm2, %v6763_v32  ;;  %v6823_v34 = vld [vmem:[%s8821_s2 + $0x68] sm:$0xff] }
  0xca   :  { %1024 = vmatpush.msrb.mxu1 %v738_v36 }
  0xcb   :  { %v707_v61 = vmax.f32 %v390_v48, 0.0  ;;  %v708_v63 = vmax.f32 %v419_v49, 0.0  ;;  %983 = vmatpush.msrb.mxu0 %v737_v54 }
  0xcc   :  { %1025 = vmatpush.msrb.mxu1 %v736_v57  ;;  %v468_v57 = vadd.f32 %v6781_v51, %v6633_v46 }
  0xcd   :  { %v747_v52 = vadd.f32 %v707_v61, %v6646_v59  ;;  %v748_v0 = vadd.f32 %v708_v63, %v6651_v60  ;;  %984 = vmatpush.msrb.mxu0 %v735_v4  ;;  %v439_v4 = vadd.f32 %v6779_v50, %v6633_v46 }
  0xce   :  { %1026 = vmatpush.msrb.mxu1 %v734_v10  ;;  %5845 = vmatmul.msk.f32.gmra.mxu2 %vm781_vm2, %v6763_v32 }
  0xcf   :  { %985 = vmatpush.msrb.mxu0 %v733_v12  ;;  %1064 = vmatpush.msrb.mxu2 %v747_v52  ;;  %v662_v12 = vmax.f32 %v468_v57, 0.0 }
  0xd0   :  { %1105 = vmatpush.msrb.mxu3 %v748_v0  ;;  %v6805_v20 = vpop.f32.mrf.mxu2  ;;  %v6807_v21 = vpop.f32.mrf.mxu3  ;;  %5830 = vmatmul.msk.f32.gmra.mxu0 %vm781_vm2, %v6800_v15 }
  0xd1   :  { %1065 = vmatpush.msrb.mxu2 %v745_v18  ;;  %v441_v23 = vpop.f32.mrf.mxu0  ;;  %v470_v24 = vpop.f32.mrf.mxu1  ;;  %5838 = vmatmul.msk.f32.gmra.mxu1 %vm781_vm2, %v6800_v15 }
  0xd2   :  { %1106 = vmatpush.msrb.mxu3 %v746_v22  ;;  %v471_v49 = vadd.f32 %v470_v24, %v6629_v40  ;;  %v442_v56 = vadd.f32 %v441_v23, %v6629_v40  ;;  %v661_v22 = vmax.f32 %v439_v4, 0.0 }
  0xd3   :  { %1066 = vmatpush.msrb.mxu2 %v743_v25  ;;  %5853 = vmatmul.msk.f32.gmra.mxu3 %vm781_vm2, %v6763_v32 }
  0xd4   :  { %1107 = vmatpush.msrb.mxu3 %v744_v30  ;;  %v678_v10 = vmax.f32 %v471_v49, 0.0  ;;  %v677_v51 = vmax.f32 %v442_v56, 0.0 }
  0xd5   :  { %1067 = vmatpush.msrb.mxu2 %v741_v31 }
  0xd6   :  { %1108 = vmatpush.msrb.mxu3 %v742_v33  ;;  %5846 = vmatmul.msk.f32.gmra.mxu2 %vm781_vm2, %v6800_v15  ;;  %v497_v33 = vadd.f32 %v6805_v20, %v6633_v46  ;;  %v750_v20 = vadd.f32 %v662_v12, %v6696_v29 }
  0xd8   :  { %v499_v35 = vpop.f32.mrf.mxu2  ;;  %v528_v27 = vpop.f32.mrf.mxu3  ;;  %5831 = vmatmul.msk.f32.gmra.mxu0 %vm781_vm2, %v6823_v34  ;;  %v663_v56 = vmax.f32 %v497_v33, 0.0 }
  0xd9   :  { %v444_v26 = vpop.f32.mrf.mxu0  ;;  %v473_v37 = vpop.f32.mrf.mxu1  ;;  %5839 = vmatmul.msk.f32.gmra.mxu1 %vm781_vm2, %v6823_v34  ;;  %v500_v50 = vadd.f32 %v499_v35, %v6629_v40  ;;  %v529_v35 = vadd.f32 %v528_v27, %v6629_v40 }
  0xda   :  { %v474_v41 = vadd.f32 %v473_v37, %v6631_v45  ;;  %v445_v36 = vadd.f32 %v444_v26, %v6631_v45  ;;  %v752_v26 = vadd.f32 %v678_v10, %v6675_v14 }
  0xdb   :  { %5854 = vmatmul.msk.f32.gmra.mxu3 %vm781_vm2, %v6800_v15  ;;  %v679_v27 = vmax.f32 %v500_v50, 0.0 }
  0xdc   :  { %v694_v58 = vmax.f32 %v474_v41, 0.0  ;;  %v693_v5 = vmax.f32 %v445_v36, 0.0  ;;  %v526_v36 = vadd.f32 %v6807_v21, %v6633_v46 }
  0xdd   :  { %v759_v10 = vadd.f32 %v679_v27, %v6670_v13 }
  0xde   :  { %5847 = vmatmul.msk.f32.gmra.mxu2 %vm781_vm2, %v6823_v34  ;;  %v754_v19 = vadd.f32 %v694_v58, %v6661_v3  ;;  %v753_v31 = vadd.f32 %v693_v5, %v6656_v1  ;;  %v664_v57 = vmax.f32 %v526_v36, 0.0 }
  0xe0   :  { %v502_v42 = vpop.f32.mrf.mxu2  ;;  %v531_v43 = vpop.f32.mrf.mxu3  ;;  %5832 = vmatmul.msk.f32.gmra.mxu0 %vm781_vm2, %v6836_v38 }
  0xe1   :  { %v447_v44 = vpop.f32.mrf.mxu0  ;;  %v476_v48 = vpop.f32.mrf.mxu1  ;;  %5840 = vmatmul.msk.f32.gmra.mxu1 %vm781_vm2, %v6836_v38  ;;  %v503_v0 = vadd.f32 %v502_v42, %v6631_v45  ;;  %v532_v17 = vadd.f32 %v531_v43, %v6631_v45  ;;  %v751_v43 = vadd.f32 %v677_v51, %v6670_v13  ;;  %v758_v51 = vadd.f32 %v664_v57, %v6696_v29 }
  0xe2   :  { %v448_v54 = vadd.f32 %v447_v44, %v6627_v39  ;;  %v477_v55 = vadd.f32 %v476_v48, %v6627_v39 }
  0xe3   :  { %5855 = vmatmul.msk.f32.gmra.mxu3 %vm781_vm2, %v6823_v34  ;;  %v695_v37 = vmax.f32 %v503_v0, 0.0  ;;  %v696_v44 = vmax.f32 %v532_v17, 0.0 }
  0xe4   :  { %v709_v61 = vmax.f32 %v448_v54, 0.0  ;;  %v710_v63 = vmax.f32 %v477_v55, 0.0  ;;  %v749_v54 = vadd.f32 %v661_v22, %v6691_v28  ;;  %v680_v55 = vmax.f32 %v529_v35, 0.0 }
  0xe5   :  { %v761_v21 = vadd.f32 %v695_v37, %v6656_v1 }
  0xe6   :  { %v755_v11 = vadd.f32 %v709_v61, %v6646_v59  ;;  %v756_v52 = vadd.f32 %v710_v63, %v6651_v60  ;;  %5848 = vmatmul.msk.f32.gmra.mxu2 %vm781_vm2, %v6836_v38  ;;  %v762_v63 = vadd.f32 %v696_v44, %v6661_v3 }
  0xe8   :  { %v505_v53 = vpop.f32.mrf.mxu2  ;;  %v534_v18 = vpop.f32.mrf.mxu3  ;;  %5833 = vmatmul.msk.f32.gmra.mxu0 %vm781_vm2, %v6859_v9  ;;  %1187 = vmatpush.msra.mxu1 %v756_v52  ;;  %v757_v52 = vadd.f32 %v663_v56, %v6691_v28 }
  0xe9   :  { %v506_v23 = vadd.f32 %v505_v53, %v6627_v39  ;;  %v535_v24 = vadd.f32 %v534_v18, %v6627_v39  ;;  %1146 = vmatpush.msra.mxu0 %v755_v11  ;;  %v6873_v25 = vpop.f32.mrf.mxu0  ;;  %v6875_v30 = vpop.f32.mrf.mxu1  ;;  %5841 = vmatmul.msk.f32.gmra.mxu1 %vm781_vm2, %v6859_v9  ;;  %v760_v11 = vadd.f32 %v680_v55, %v6675_v14 }
  0xea   :  { %1188 = vmatpush.msra.mxu1 %v754_v19  ;;  %v584_v37 = vadd.f32 %v6875_v30, %v6633_v46  ;;  %v555_v36 = vadd.f32 %v6873_v25, %v6633_v46 }
  0xeb   :  { %v711_v41 = vmax.f32 %v506_v23, 0.0  ;;  %v712_v42 = vmax.f32 %v535_v24, 0.0  ;;  %1147 = vmatpush.msra.mxu0 %v753_v31  ;;  %5856 = vmatmul.msk.f32.gmra.mxu3 %vm781_vm2, %v6836_v38 }
  0xec   :  { %1189 = vmatpush.msra.mxu1 %v752_v26  ;;  %v666_v55 = vmax.f32 %v584_v37, 0.0  ;;  %v7086_v37 = vld [vmem:[%s8821_s2 + $0x38] sm:$0xff] }
  0xed   :  { %v763_v48 = vadd.f32 %v711_v41, %v6646_v59  ;;  %v764_v49 = vadd.f32 %v712_v42, %v6651_v60  ;;  %1148 = vmatpush.msra.mxu0 %v751_v43 }
  0xee   :  { %1190 = vmatpush.msra.mxu1 %v750_v20  ;;  %5849 = vmatmul.msk.f32.gmra.mxu2 %vm781_vm2, %v6859_v9 }
  0xef   :  { %1149 = vmatpush.msra.mxu0 %v749_v54  ;;  %1228 = vmatpush.msra.mxu2 %v763_v48 }
  0xf0   :  { %1269 = vmatpush.msra.mxu3 %v764_v49  ;;  %v6896_v58 = vpop.f32.mrf.mxu2  ;;  %v6898_v61 = vpop.f32.mrf.mxu3  ;;  %5858 = vmatmul.msk.f32.vlgmr.msrb.gmra.mxu0 %vm781_vm2, %v6708_v47 }
  0xf1   :  { %1229 = vmatpush.msra.mxu2 %v761_v21  ;;  %v557_v4 = vpop.f32.mrf.mxu0  ;;  %v586_v5 = vpop.f32.mrf.mxu1  ;;  %5866 = vmatmul.msk.f32.vlgmr.msrb.gmra.mxu1 %vm781_vm2, %v6708_v47 }
  0xf2   :  { %1270 = vmatpush.msra.mxu3 %v762_v63  ;;  %v587_v31 = vadd.f32 %v586_v5, %v6629_v40  ;;  %v558_v26 = vadd.f32 %v557_v4, %v6629_v40  ;;  %v665_v63 = vmax.f32 %v555_v36, 0.0 }
  0xf3   :  { %1230 = vmatpush.msra.mxu2 %v759_v10  ;;  %5857 = vmatmul.msk.f32.gmra.mxu3 %vm781_vm2, %v6859_v9 }
  0xf4   :  { %1271 = vmatpush.msra.mxu3 %v760_v11  ;;  %v682_v20 = vmax.f32 %v587_v31, 0.0  ;;  %v681_v49 = vmax.f32 %v558_v26, 0.0 }
  0xf5   :  { %1231 = vmatpush.msra.mxu2 %v757_v52 }
  0xf6   :  { %1272 = vmatpush.msra.mxu3 %v758_v51  ;;  %5874 = vmatmul.msk.f32.vlgmr.msrb.gmra.mxu2 %vm781_vm2, %v6708_v47  ;;  %v768_v52 = vadd.f32 %v682_v20, %v6675_v14  ;;  %v7118_v20 = vld [vmem:[%s8821_s2 + $0x30] sm:$0xff] }
  0xf8   :  { %v615_v0 = vpop.f32.mrf.mxu2  ;;  %v644_v12 = vpop.f32.mrf.mxu3  ;;  %5859 = vmatmul.msk.f32.gmra.mxu0 %vm781_vm2, %v6727_v62 }
  0xf9   :  { %v560_v50 = vpop.f32.mrf.mxu0  ;;  %v589_v17 = vpop.f32.mrf.mxu1  ;;  %5867 = vmatmul.msk.f32.gmra.mxu1 %vm781_vm2, %v6727_v62  ;;  %v616_v30 = vadd.f32 %v615_v0, %v6629_v40  ;;  %v645_v11 = vadd.f32 %v644_v12, %v6629_v40 }
  0xfa   :  { %v590_v53 = vadd.f32 %v589_v17, %v6631_v45  ;;  %v561_v22 = vadd.f32 %v560_v50, %v6631_v45  ;;  %v642_v17 = vadd.f32 %v6898_v61, %v6633_v46 }
  0xfb   :  { %5882 = vmatmul.msk.f32.vlgmr.msrb.gmra.mxu3 %vm781_vm2, %v6708_v47  ;;  %v683_v40 = vmax.f32 %v616_v30, 0.0 }
  0xfc   :  { %v698_v41 = vmax.f32 %v590_v53, 0.0  ;;  %v697_v44 = vmax.f32 %v561_v22, 0.0  ;;  %v684_v22 = vmax.f32 %v645_v11, 0.0  ;;  %v668_v61 = vmax.f32 %v642_v17, 0.0 }
  0xfe   :  { %5875 = vmatmul.msk.f32.gmra.mxu2 %vm781_vm2, %v6727_v62  ;;  %v770_v25 = vadd.f32 %v698_v41, %v6661_v3  ;;  %v769_v10 = vadd.f32 %v697_v44, %v6656_v1 }
 0x100   :  { %v618_v18 = vpop.f32.mrf.mxu2  ;;  %v647_v19 = vpop.f32.mrf.mxu3  ;;  %5860 = vmatmul.msk.f32.gmra.mxu0 %vm781_vm2, %v6740_v6 }
 0x101   :  { %v563_v23 = vpop.f32.mrf.mxu0  ;;  %v592_v24 = vpop.f32.mrf.mxu1  ;;  %5868 = vmatmul.msk.f32.gmra.mxu1 %vm781_vm2, %v6740_v6  ;;  %v619_v54 = vadd.f32 %v618_v18, %v6631_v45  ;;  %v648_v56 = vadd.f32 %v647_v19, %v6631_v45  ;;  %v613_v45 = vadd.f32 %v6896_v58, %v6633_v46  ;;  %v766_v58 = vadd.f32 %v666_v55, %v6696_v29 }
 0x102   :  { %v564_v33 = vadd.f32 %v563_v23, %v6627_v39  ;;  %v593_v35 = vadd.f32 %v592_v24, %v6627_v39  ;;  %v765_v19 = vadd.f32 %v665_v63, %v6691_v28  ;;  %v776_v24 = vadd.f32 %v684_v22, %v6675_v14  ;;  %v7175_v63 = vld [vmem:[%s8821_s2 + $0x20] sm:$0xff] }
 0x103   :  { %5883 = vmatmul.msk.f32.gmra.mxu3 %vm781_vm2, %v6727_v62  ;;  %v699_v51 = vmax.f32 %v619_v54, 0.0  ;;  %v700_v53 = vmax.f32 %v648_v56, 0.0  ;;  %v667_v23 = vmax.f32 %v613_v45, 0.0 }
 0x104   :  { %v713_v42 = vmax.f32 %v564_v33, 0.0  ;;  %v714_v43 = vmax.f32 %v593_v35, 0.0 }
 0x105   :  { %v777_v46 = vadd.f32 %v699_v51, %v6656_v1  ;;  %v773_v31 = vadd.f32 %v667_v23, %v6691_v28  ;;  %v774_v1 = vadd.f32 %v668_v61, %v6696_v29 }
 0x106   :  { %v771_v27 = vadd.f32 %v713_v42, %v6646_v59  ;;  %v772_v48 = vadd.f32 %v714_v43, %v6651_v60  ;;  %5876 = vmatmul.msk.f32.gmra.mxu2 %vm781_vm2, %v6740_v6 }
 0x108   :  { %v621_v21 = vpop.f32.mrf.mxu2  ;;  %v650_v57 = vpop.f32.mrf.mxu3  ;;  %5861 = vmatmul.msk.f32.gmra.mxu0 %vm781_vm2, %v6763_v32  ;;  %1351 = vmatpush.msrb.mxu1 %v772_v48 }
 0x109   :  { %v622_v4 = vadd.f32 %v621_v21, %v6627_v39  ;;  %v651_v5 = vadd.f32 %v650_v57, %v6627_v39  ;;  %1310 = vmatpush.msrb.mxu0 %v771_v27  ;;  %5869 = vmatmul.msk.f32.gmra.mxu1 %vm781_vm2, %v6763_v32  ;;  %v767_v39 = vadd.f32 %v681_v49, %v6670_v13 }
 0x10a   :  { %1352 = vmatpush.msrb.mxu1 %v770_v25 }
 0x10b   :  { %v715_v0 = vmax.f32 %v622_v4, 0.0  ;;  %v716_v50 = vmax.f32 %v651_v5, 0.0  ;;  %1311 = vmatpush.msrb.mxu0 %v769_v10  ;;  %5884 = vmatmul.msk.f32.gmra.mxu3 %vm781_vm2, %v6740_v6 }
 0x10c   :  { %1353 = vmatpush.msrb.mxu1 %v768_v52 }
 0x10d   :  { %v779_v12 = vadd.f32 %v715_v0, %v6646_v59  ;;  %v780_v18 = vadd.f32 %v716_v50, %v6651_v60  ;;  %1312 = vmatpush.msrb.mxu0 %v767_v39  ;;  %v778_v59 = vadd.f32 %v700_v53, %v6661_v3  ;;  %v775_v60 = vadd.f32 %v683_v40, %v6670_v13 }
 0x10e   :  { %1354 = vmatpush.msrb.mxu1 %v766_v58  ;;  %5877 = vmatmul.msk.f32.gmra.mxu2 %vm781_vm2, %v6763_v32  ;;  %v7256_v58 = vld [vmem:[%s8821_s2 + $0x148] sm:$0xf] }
 0x10f   :  { %1313 = vmatpush.msrb.mxu0 %v765_v19  ;;  %1392 = vmatpush.msrb.mxu2 %v779_v12  ;;  %8968 = vst [vmem:[#allocation22_spill] sm:$0xff] %v7256_v58 }
 0x110   :  { %1433 = vmatpush.msrb.mxu3 %v780_v18  ;;  %5862 = vmatmul.msk.f32.gmra.mxu0 %vm781_vm2, %v6800_v15 }
 0x111   :  { %1393 = vmatpush.msrb.mxu2 %v777_v46  ;;  %5870 = vmatmul.msk.f32.gmra.mxu1 %vm781_vm2, %v6800_v15 }
 0x112   :  { %1434 = vmatpush.msrb.mxu3 %v778_v59 }
 0x113   :  { %1394 = vmatpush.msrb.mxu2 %v775_v60  ;;  %5885 = vmatmul.msk.f32.gmra.mxu3 %vm781_vm2, %v6763_v32 }
 0x114   :  { %1435 = vmatpush.msrb.mxu3 %v776_v24 }
 0x115   :  { %1395 = vmatpush.msrb.mxu2 %v773_v31 }
 0x116   :  { %1436 = vmatpush.msrb.mxu3 %v774_v1  ;;  %5878 = vmatmul.msk.f32.gmra.mxu2 %vm781_vm2, %v6800_v15 }
 0x118   :  { %5863 = vmatmul.msk.f32.gmra.mxu0 %vm781_vm2, %v6823_v34 }
 0x119   :  { %5871 = vmatmul.msk.f32.gmra.mxu1 %vm781_vm2, %v6823_v34 }
 0x11b   :  { %5886 = vmatmul.msk.f32.gmra.mxu3 %vm781_vm2, %v6800_v15 }
 0x11e   :  { %5879 = vmatmul.msk.f32.gmra.mxu2 %vm781_vm2, %v6823_v34 }
 0x120   :  { %5864 = vmatmul.msk.f32.gmra.mxu0 %vm781_vm2, %v6836_v38 }
 0x121   :  { %5872 = vmatmul.msk.f32.gmra.mxu1 %vm781_vm2, %v6836_v38 }
 0x123   :  { %5887 = vmatmul.msk.f32.gmra.mxu3 %vm781_vm2, %v6823_v34 }
 0x126   :  { %5880 = vmatmul.msk.f32.gmra.mxu2 %vm781_vm2, %v6836_v38 }
 0x128   :  { %5865 = vmatmul.msk.f32.gmra.mxu0 %vm781_vm2, %v6859_v9 }
 0x129   :  { %5873 = vmatmul.msk.f32.gmra.mxu1 %vm781_vm2, %v6859_v9 }
 0x12b   :  { %5888 = vmatmul.msk.f32.gmra.mxu3 %vm781_vm2, %v6836_v38 }
 0x12d   :  { %v7003_v3 = vpop.f32.mrf.mxu0  ;;  %v7097_v42 = vpop.f32.mrf.mxu1 }
 0x12e   :  { %5881 = vmatmul.msk.f32.gmra.mxu2 %vm781_vm2, %v6859_v9 }
 0x130   :  { %5890 = vmatmul.msk.f32.vlgmr.msra.gmra.mxu0 %vm781_vm2, %v6708_v47 }
 0x131   :  { %5898 = vmatmul.msk.f32.vlgmr.msra.gmra.mxu1 %vm781_vm2, %v6708_v47  ;;  %1477 = vmatpush.msra.mxu0 %v7086_v37 }
 0x133   :  { %5889 = vmatmul.msk.f32.gmra.mxu3 %vm781_vm2, %v6859_v9  ;;  %1478 = vmatpush.msra.mxu0 %v7118_v20 }
 0x135   :  { %v7013_v13 = vpop.f32.mrf.mxu0  ;;  %v7121_v27 = vpop.f32.mrf.mxu1 }
 0x136   :  { %5906 = vmatmul.msk.f32.vlgmr.msra.gmra.mxu2 %vm781_vm2, %v6708_v47 }
 0x138   :  { %5891 = vmatmul.msk.f32.gmra.mxu0 %vm781_vm2, %v6727_v62 }
 0x139   :  { %5899 = vmatmul.msk.f32.gmra.mxu1 %vm781_vm2, %v6727_v62  ;;  %v7105_v43 = vpop.f32.mrf.mxu2  ;;  %v7109_v44 = vpop.f32.mrf.mxu3 }
 0x13a   :  { %8953 = vst [vmem:[#allocation7_spill] sm:$0xff] %v7105_v43 }
 0x13b   :  { %5914 = vmatmul.msk.f32.vlgmr.msra.gmra.mxu3 %vm781_vm2, %v6708_v47  ;;  %8955 = vst [vmem:[#allocation9_spill] sm:$0xff] %v7109_v44 }
 0x13d   :  { %v7023_v14 = vpop.f32.mrf.mxu0  ;;  %v7137_v55 = vpop.f32.mrf.mxu1 }
 0x13e   :  { %5907 = vmatmul.msk.f32.gmra.mxu2 %vm781_vm2, %v6727_v62 }
 0x140   :  { %5892 = vmatmul.msk.f32.gmra.mxu0 %vm781_vm2, %v6740_v6 }
 0x141   :  { %5900 = vmatmul.msk.f32.gmra.mxu1 %vm781_vm2, %v6740_v6  ;;  %v7127_v48 = vpop.f32.mrf.mxu2  ;;  %v7131_v54 = vpop.f32.mrf.mxu3 }
 0x142   :  { %8956 = vst [vmem:[#allocation10_spill] sm:$0xff] %v7131_v54 }
 0x143   :  { %5915 = vmatmul.msk.f32.gmra.mxu3 %vm781_vm2, %v6727_v62 }
 0x145   :  { %v7033_v28 = vpop.f32.mrf.mxu0 }
 0x146   :  { %1500 = vmatpush.msra.mxu1 %v7033_v28  ;;  %5908 = vmatmul.msk.f32.gmra.mxu2 %vm781_vm2, %v6740_v6  ;;  %v7162_v21 = vpop.f32.mrf.mxu1 }
 0x147   :  { %1520 = vmatpush.msra.mxu2 %v7162_v21 }
 0x148   :  { %5893 = vmatmul.msk.f32.gmra.mxu0 %vm781_vm2, %v6763_v32  ;;  %1501 = vmatpush.msra.mxu1 %v7023_v14 }
 0x149   :  { %5901 = vmatmul.msk.f32.gmra.mxu1 %vm781_vm2, %v6763_v32  ;;  %v7148_v56 = vpop.f32.mrf.mxu3  ;;  %1521 = vmatpush.msra.mxu2 %v7137_v55 }
 0x14a   :  { %1502 = vmatpush.msra.mxu1 %v7013_v13 }
 0x14b   :  { %5916 = vmatmul.msk.f32.gmra.mxu3 %vm781_vm2, %v6740_v6  ;;  %1522 = vmatpush.msra.mxu2 %v7121_v27 }
 0x14c   :  { %1503 = vmatpush.msra.mxu1 %v7003_v3 }
 0x14d   :  { %v7047_v29 = vpop.f32.mrf.mxu0  ;;  %1523 = vmatpush.msra.mxu2 %v7097_v42 }
 0x14e   :  { %8951 = vst [vmem:[#allocation5_spill] sm:$0xff] %v7047_v29  ;;  %5909 = vmatmul.msk.f32.gmra.mxu2 %vm781_vm2, %v6763_v32 }
 0x150   :  { %5894 = vmatmul.msk.f32.gmra.mxu0 %vm781_vm2, %v6800_v15 }
 0x151   :  { %5902 = vmatmul.msk.f32.gmra.mxu1 %vm781_vm2, %v6800_v15 }
 0x153   :  { %5917 = vmatmul.msk.f32.gmra.mxu3 %vm781_vm2, %v6763_v32 }
 0x155   :  { %v7057_v33 = vpop.f32.mrf.mxu0 }
 0x156   :  { %5910 = vmatmul.msk.f32.gmra.mxu2 %vm781_vm2, %v6800_v15  ;;  %v7180_v4 = vpop.f32.mrf.mxu3 }
 0x158   :  { %5895 = vmatmul.msk.f32.gmra.mxu0 %vm781_vm2, %v6823_v34 }
 0x159   :  { %5903 = vmatmul.msk.f32.gmra.mxu1 %vm781_vm2, %v6823_v34 }
 0x15b   :  { %5918 = vmatmul.msk.f32.gmra.mxu3 %vm781_vm2, %v6800_v15 }
 0x15d   :  { %v7067_v35 = vpop.f32.mrf.mxu0 }
 0x15e   :  { %5911 = vmatmul.msk.f32.gmra.mxu2 %vm781_vm2, %v6823_v34  ;;  %v7204_v45 = vpop.f32.mrf.mxu3 }
 0x15f   :  { %8961 = vst [vmem:[#allocation15_spill] sm:$0xff] %v7204_v45 }
 0x160   :  { %5896 = vmatmul.msk.f32.gmra.mxu0 %vm781_vm2, %v6836_v38 }
 0x161   :  { %5904 = vmatmul.msk.f32.gmra.mxu1 %vm781_vm2, %v6836_v38 }
 0x163   :  { %5919 = vmatmul.msk.f32.gmra.mxu3 %vm781_vm2, %v6823_v34 }
 0x165   :  { %v7077_v26 = vpop.f32.mrf.mxu0 }
 0x166   :  { %5912 = vmatmul.msk.f32.gmra.mxu2 %vm781_vm2, %v6836_v38  ;;  %v7221_v51 = vpop.f32.mrf.mxu3 }
 0x167   :  { %8965 = vst [vmem:[#allocation19_spill] sm:$0xff] %v7221_v51 }
 0x168   :  { %5897 = vmatmul.msk.f32.gmra.mxu0 %vm781_vm2, %v6859_v9 }
 0x169   :  { %5905 = vmatmul.msk.f32.gmra.mxu1 %vm781_vm2, %v6859_v9 }
 0x16b   :  { %5920 = vmatmul.msk.f32.gmra.mxu3 %vm781_vm2, %v6836_v38 }
 0x16d   :  { %v7093_v41 = vpop.f32.mrf.mxu0 }
 0x16e   :  { %8952 = vst [vmem:[#allocation6_spill] sm:$0xff] %v7093_v41  ;;  %5913 = vmatmul.msk.f32.gmra.mxu2 %vm781_vm2, %v6859_v9  ;;  %v7237_v39 = vpop.f32.mrf.mxu3 }
 0x170   :  { %5922 = vmatmul.msk.f32.vlgmr.msrb.gmra.mxu0 %vm781_vm2, %v6708_v47 }
 0x171   :  { %5930 = vmatmul.msk.f32.vlgmr.msrb.gmra.mxu1 %vm781_vm2, %v6708_v47 }
 0x173   :  { %5921 = vmatmul.msk.f32.gmra.mxu3 %vm781_vm2, %v6859_v9 }
 0x175   :  { %v7107_v36 = vpop.f32.mrf.mxu0 }
 0x176   :  { %8954 = vst [vmem:[#allocation8_spill] sm:$0xff] %v7107_v36  ;;  %5938 = vmatmul.msk.f32.vlgmr.msrb.gmra.mxu2 %vm781_vm2, %v6708_v47  ;;  %v7258_v40 = vpop.f32.mrf.mxu3 }
 0x178   :  { %5923 = vmatmul.msk.f32.gmra.mxu0 %vm781_vm2, %v6727_v62 }
 0x179   :  { %5931 = vmatmul.msk.f32.gmra.mxu1 %vm781_vm2, %v6727_v62 }
 0x17b   :  { %5946 = vmatmul.msk.f32.vlgmr.msrb.gmra.mxu3 %vm781_vm2, %v6708_v47  ;;  %v7143_v47 = vpop.f32.mrf.mxu2 }
 0x17d   :  { %v7129_v49 = vpop.f32.mrf.mxu0 }
 0x17e   :  { %5939 = vmatmul.msk.f32.gmra.mxu2 %vm781_vm2, %v6727_v62  ;;  %v7274_v19 = vpop.f32.mrf.mxu3 }
 0x17f   :  { %8972 = vst [vmem:[#allocation26_spill] sm:$0xff] %v7274_v19 }
 0x180   :  { %5924 = vmatmul.msk.f32.gmra.mxu0 %vm781_vm2, %v6740_v6 }
 0x181   :  { %5932 = vmatmul.msk.f32.gmra.mxu1 %vm781_vm2, %v6740_v6 }
 0x183   :  { %5947 = vmatmul.msk.f32.gmra.mxu3 %vm781_vm2, %v6727_v62  ;;  %v7158_v62 = vld [vmem:[%s8821_s2 + $0x28] sm:$0xff]  ;;  %v7168_v57 = vpop.f32.mrf.mxu2 }
 0x184   :  { %1479 = vmatpush.msra.mxu0 %v7158_v62  ;;  %1540 = vmatpush.msra.mxu3 %v7168_v57 }
 0x185   :  { %v7145_v30 = vpop.f32.mrf.mxu0 }
 0x186   :  { %1580 = vmatpush.msrb.mxu1 %v7145_v30  ;;  %5940 = vmatmul.msk.f32.gmra.mxu2 %vm781_vm2, %v6740_v6  ;;  %v7282_v61 = vpop.f32.mrf.mxu3 }
 0x187   :  { %1480 = vmatpush.msra.mxu0 %v7175_v63  ;;  %1541 = vmatpush.msra.mxu3 %v7143_v47  ;;  %8976 = vst [vmem:[#allocation30_spill] sm:$0xff] %v7282_v61 }
 0x188   :  { %5925 = vmatmul.msk.f32.gmra.mxu0 %vm781_vm2, %v6763_v32  ;;  %1581 = vmatpush.msrb.mxu1 %v7129_v49 }
 0x189   :  { %5933 = vmatmul.msk.f32.gmra.mxu1 %vm781_vm2, %v6763_v32  ;;  %1560 = vmatpush.msrb.mxu0 %v7180_v4 }
 0x18a   :  { %1582 = vmatpush.msrb.mxu1 %v7107_v36  ;;  %1542 = vmatpush.msra.mxu3 %v7127_v48 }
 0x18b   :  { %5948 = vmatmul.msk.f32.gmra.mxu3 %vm781_vm2, %v6740_v6  ;;  %v7193_v6 = vpop.f32.mrf.mxu1  ;;  %1561 = vmatpush.msrb.mxu0 %v7148_v56  ;;  %v7199_v5 = vpop.f32.mrf.mxu2 }
 0x18c   :  { %1583 = vmatpush.msrb.mxu1 %v7093_v41  ;;  %8958 = vst [vmem:[#allocation12_spill] sm:$0xff] %v7193_v6  ;;  %1543 = vmatpush.msra.mxu3 %v7105_v43 }
 0x18d   :  { %v7170_v25 = vpop.f32.mrf.mxu0  ;;  %8959 = vst [vmem:[#allocation13_spill] sm:$0xff] %v7199_v5  ;;  %1562 = vmatpush.msrb.mxu0 %v7131_v54 }
 0x18e   :  { %8957 = vst [vmem:[#allocation11_spill] sm:$0xff] %v7170_v25  ;;  %5941 = vmatmul.msk.f32.gmra.mxu2 %vm781_vm2, %v6763_v32 }
 0x18f   :  { %1563 = vmatpush.msrb.mxu0 %v7109_v44 }
 0x190   :  { %5926 = vmatmul.msk.f32.gmra.mxu0 %vm781_vm2, %v6800_v15 }
 0x191   :  { %5934 = vmatmul.msk.f32.gmra.mxu1 %vm781_vm2, %v6800_v15 }
 0x193   :  { %5949 = vmatmul.msk.f32.gmra.mxu3 %vm781_vm2, %v6763_v32  ;;  %v7213_v32 = vpop.f32.mrf.mxu1  ;;  %v7217_v11 = vpop.f32.mrf.mxu2 }
 0x194   :  { %8962 = vst [vmem:[#allocation16_spill] sm:$0xff] %v7213_v32 }
 0x195   :  { %v7201_v10 = vpop.f32.mrf.mxu0  ;;  %8963 = vst [vmem:[#allocation17_spill] sm:$0xff] %v7217_v11 }
 0x196   :  { %8960 = vst [vmem:[#allocation14_spill] sm:$0xff] %v7201_v10  ;;  %5942 = vmatmul.msk.f32.gmra.mxu2 %vm781_vm2, %v6800_v15 }
 0x198   :  { %5927 = vmatmul.msk.f32.gmra.mxu0 %vm781_vm2, %v6823_v34 }
 0x199   :  { %5935 = vmatmul.msk.f32.gmra.mxu1 %vm781_vm2, %v6823_v34 }
 0x19b   :  { %5950 = vmatmul.msk.f32.gmra.mxu3 %vm781_vm2, %v6800_v15  ;;  %v7229_v0 = vpop.f32.mrf.mxu1  ;;  %v7233_v15 = vpop.f32.mrf.mxu2 }
 0x19d   :  { %v7219_v52 = vpop.f32.mrf.mxu0 }
 0x19e   :  { %8964 = vst [vmem:[#allocation18_spill] sm:$0xff] %v7219_v52  ;;  %5943 = vmatmul.msk.f32.gmra.mxu2 %vm781_vm2, %v6823_v34 }
 0x1a0   :  { %5928 = vmatmul.msk.f32.gmra.mxu0 %vm781_vm2, %v6836_v38 }
 0x1a1   :  { %5936 = vmatmul.msk.f32.gmra.mxu1 %vm781_vm2, %v6836_v38 }
 0x1a3   :  { %5951 = vmatmul.msk.f32.gmra.mxu3 %vm781_vm2, %v6823_v34  ;;  %v7245_v17 = vpop.f32.mrf.mxu1  ;;  %v7249_v34 = vpop.f32.mrf.mxu2 }
 0x1a5   :  { %v7235_v50 = vpop.f32.mrf.mxu0 }
 0x1a6   :  { %8966 = vst [vmem:[#allocation20_spill] sm:$0xff] %v7235_v50  ;;  %5944 = vmatmul.msk.f32.gmra.mxu2 %vm781_vm2, %v6836_v38 }
 0x1a8   :  { %5929 = vmatmul.msk.f32.gmra.mxu0 %vm781_vm2, %v6859_v9 }
 0x1a9   :  { %5937 = vmatmul.msk.f32.gmra.mxu1 %vm781_vm2, %v6859_v9 }
 0x1ab   :  { %5952 = vmatmul.msk.f32.gmra.mxu3 %vm781_vm2, %v6836_v38  ;;  %v7266_v38 = vpop.f32.mrf.mxu1  ;;  %v7270_v12 = vpop.f32.mrf.mxu2 }
 0x1ac   :  { %8969 = vst [vmem:[#allocation23_spill] sm:$0xff] %v7266_v38 }
 0x1ad   :  { %v7251_v53 = vpop.f32.mrf.mxu0  ;;  %8970 = vst [vmem:[#allocation24_spill] sm:$0xff] %v7270_v12 }
 0x1ae   :  { %8967 = vst [vmem:[#allocation21_spill] sm:$0xff] %v7251_v53  ;;  %5945 = vmatmul.msk.f32.gmra.mxu2 %vm781_vm2, %v6859_v9 }
 0x1b0   :  { %5954 = vmatmul.msk.f32.vlgmr.msra.gmra.mxu0 %vm781_vm2, %v7256_v58 }
 0x1b3   :  { %5953 = vmatmul.msk.f32.gmra.mxu3 %vm781_vm2, %v6859_v9  ;;  %v7276_v22 = vpop.f32.mrf.mxu1  ;;  %v7278_v23 = vpop.f32.mrf.mxu2 }
 0x1b4   :  { %8973 = vst [vmem:[#allocation27_spill] sm:$0xff] %v7276_v22  ;;  %v7290_v9 = vpop.f32.mrf.mxu3 }
 0x1b5   :  { %v7272_v18 = vpop.f32.mrf.mxu0  ;;  %8974 = vst [vmem:[#allocation28_spill] sm:$0xff] %v7278_v23 }
 0x1b6   :  { %8971 = vst [vmem:[#allocation25_spill] sm:$0xff] %v7272_v18 }
 0x1b7   :  { %8979 = vst [vmem:[#allocation33_spill] sm:$0xff] %v7290_v9 }
 0x1bb   :  { %v7284_v59 = vpop.f32.mrf.mxu1  ;;  %v7286_v60 = vpop.f32.mrf.mxu2 }
 0x1bc   :  { %8977 = vst [vmem:[#allocation31_spill] sm:$0xff] %v7286_v60  ;;  %v7301_v53 = vpop.f32.mrf.mxu3 }
 0x1bd   :  { %v7280_v46 = vpop.f32.mrf.mxu0  ;;  %8982 = vst [vmem:[#allocation36_spill] sm:$0xff] %v7301_v53  ;;  %1640 = vmatpush.msra.mxu0 %v7301_v53 }
 0x1be   :  { %8975 = vst [vmem:[#allocation29_spill] sm:$0xff] %v7280_v46 }
 0x1bf   :  { %1641 = vmatpush.msra.mxu0 %v7290_v9 }
 0x1c1   :  { %1642 = vmatpush.msra.mxu0 %v7282_v61 }
 0x1c3   :  { %v7292_v31 = vpop.f32.mrf.mxu1  ;;  %v7295_v1 = vpop.f32.mrf.mxu2  ;;  %1643 = vmatpush.msra.mxu0 %v7274_v19 }
 0x1c4   :  { %1600 = vmatpush.msrb.mxu2 %v7292_v31  ;;  %8980 = vst [vmem:[#allocation34_spill] sm:$0xff] %v7295_v1  ;;  %1620 = vmatpush.msrb.mxu3 %v7295_v1  ;;  %v7324_v7 = vpop.f32.mrf.mxu3 }
 0x1c5   :  { %v7288_v24 = vpop.f32.mrf.mxu0  ;;  %8989 = vst [vmem:[#allocation43_spill] sm:$0xff] %v7324_v7 }
 0x1c6   :  { %8978 = vst [vmem:[#allocation32_spill] sm:$0xff] %v7288_v24  ;;  %1601 = vmatpush.msrb.mxu2 %v7284_v59  ;;  %1621 = vmatpush.msrb.mxu3 %v7286_v60 }
 0x1c8   :  { %1602 = vmatpush.msrb.mxu2 %v7276_v22  ;;  %1622 = vmatpush.msrb.mxu3 %v7278_v23 }
 0x1ca   :  { %1603 = vmatpush.msrb.mxu2 %v7266_v38  ;;  %1623 = vmatpush.msrb.mxu3 %v7270_v12 }
 0x1cb   :  { %v7318_v24 = vpop.f32.mrf.mxu1  ;;  %v7322_v8 = vpop.f32.mrf.mxu2 }
 0x1cc   :  { %8986 = vst [vmem:[#allocation40_spill] sm:$0xff] %v7318_v24 }
 0x1cd   :  { %v7297_v2 = vpop.f32.mrf.mxu0  ;;  %8988 = vst [vmem:[#allocation42_spill] sm:$0xff] %v7322_v8 }
 0x1ce   :  { %8981 = vst [vmem:[#allocation35_spill] sm:$0xff] %v7297_v2 }
 0x1d3   :  { %v7326_v9 = vpop.f32.mrf.mxu1  ;;  %v7330_v61 = vpop.f32.mrf.mxu2 }
 0x1d4   :  { %8990 = vst [vmem:[#allocation44_spill] sm:$0xff] %v7326_v9 }
 0x1d5   :  { %v7311_v2 = vpop.f32.mrf.mxu0  ;;  %8992 = vst [vmem:[#allocation46_spill] sm:$0xff] %v7330_v61 }
 0x1d6   :  { %8983 = vst [vmem:[#allocation37_spill] sm:$0xff] %v7311_v2  ;;  %v7332_v2 = vpop.f32.mrf.mxu3 }
 0x1d7   :  { %8993 = vst [vmem:[#allocation47_spill] sm:$0xff] %v7332_v2 }
 0x1db   :  { %v7334_v19 = vpop.f32.mrf.mxu1 }
 0x1dc   :  { %8994 = vst [vmem:[#allocation48_spill] sm:$0xff] %v7334_v19 }
 0x1dd   :  { %v7314_v18 = vpop.f32.mrf.mxu0 }
 0x1de   :  { %8984 = vst [vmem:[#allocation38_spill] sm:$0xff] %v7314_v18  ;;  %v7340_v58 = vpop.f32.mrf.mxu3 }
 0x1df   :  { %8997 = vst [vmem:[#allocation51_spill] sm:$0xff] %v7340_v58 }
 0x1e5   :  { %v7316_v46 = vpop.f32.mrf.mxu0 }
 0x1e6   :  { %8985 = vst [vmem:[#allocation39_spill] sm:$0xff] %v7316_v46  ;;  %v7338_v46 = vpop.f32.mrf.mxu2  ;;  %v7348_v60 = vpop.f32.mrf.mxu3 }
 0x1e7   :  { %8996 = vst [vmem:[#allocation50_spill] sm:$0xff] %v7338_v46 }
 0x1e8   :  { %9001 = vst [vmem:[#allocation55_spill] sm:$0xff] %v7348_v60 }
 0x1ed   :  { %v7320_v16 = vpop.f32.mrf.mxu0 }
 0x1ee   :  { %8987 = vst [vmem:[#allocation41_spill] sm:$0xff] %v7320_v16  ;;  %v7342_v16 = vpop.f32.mrf.mxu1  ;;  %v7346_v23 = vpop.f32.mrf.mxu2 }
 0x1ef   :  { %8998 = vst [vmem:[#allocation52_spill] sm:$0xff] %v7342_v16  ;;  %v7356_v41 = vpop.f32.mrf.mxu3 }
 0x1f0   :  { %9000 = vst [vmem:[#allocation54_spill] sm:$0xff] %v7346_v23 }
 0x1f1   :  { %9005 = vst [vmem:[#allocation59_spill] sm:$0xff] %v7356_v41 }
 0x1f5   :  { %v7328_v53 = vpop.f32.mrf.mxu0 }
 0x1f6   :  { %8991 = vst [vmem:[#allocation45_spill] sm:$0xff] %v7328_v53  ;;  %v7350_v53 = vpop.f32.mrf.mxu1  ;;  %v7354_v38 = vpop.f32.mrf.mxu2 }
 0x1f7   :  { %9002 = vst [vmem:[#allocation56_spill] sm:$0xff] %v7350_v53  ;;  %v7364_v22 = vpop.f32.mrf.mxu3 }
 0x1f8   :  { %9004 = vst [vmem:[#allocation58_spill] sm:$0xff] %v7354_v38 }
 0x1f9   :  { %9009 = vst [vmem:[#allocation63_spill] sm:$0xff] %v7364_v22 }
 0x1fd   :  { %v7336_v18 = vpop.f32.mrf.mxu0 }
 0x1fe   :  { %8995 = vst [vmem:[#allocation49_spill] sm:$0xff] %v7336_v18  ;;  %v7360_v44 = vpop.f32.mrf.mxu1  ;;  %v7362_v43 = vpop.f32.mrf.mxu2 }
 0x1ff   :  { %9007 = vst [vmem:[#allocation61_spill] sm:$0xff] %v7360_v44 }
 0x200   :  { %9008 = vst [vmem:[#allocation62_spill] sm:$0xff] %v7362_v43 }
 0x205   :  { %v7344_v12 = vpop.f32.mrf.mxu0 }
 0x206   :  { %8999 = vst [vmem:[#allocation53_spill] sm:$0xff] %v7344_v12  ;;  %v7368_v36 = vpop.f32.mrf.mxu1  ;;  %v7372_v53 = vpop.f32.mrf.mxu2 }
 0x207   :  { %9011 = vst [vmem:[#allocation65_spill] sm:$0xff] %v7368_v36 }
 0x208   :  { %9013 = vst [vmem:[#allocation67_spill] sm:$0xff] %v7372_v53 }
 0x20d   :  { %v7352_v1 = vpop.f32.mrf.mxu0 }
 0x20e   :  { %9003 = vst [vmem:[#allocation57_spill] sm:$0xff] %v7352_v1  ;;  %v7374_v1 = vpop.f32.mrf.mxu3  ;;  %v7376_v38 = vpop.f32.mrf.mxu1 }
 0x20f   :  { %9014 = vst [vmem:[#allocation68_spill] sm:$0xff] %v7374_v1 }
 0x210   :  { %9015 = vst [vmem:[#allocation69_spill] sm:$0xff] %v7376_v38 }
 0x215   :  { %v7358_v18 = vpop.f32.mrf.mxu0 }
 0x216   :  { %9006 = vst [vmem:[#allocation60_spill] sm:$0xff] %v7358_v18  ;;  %v7388_v18 = vpop.f32.mrf.mxu2 }
 0x217   :  { %9017 = vst [vmem:[#allocation71_spill] sm:$0xff] %v7388_v18 }
 0x21d   :  { %v7366_v12 = vpop.f32.mrf.mxu0 }
 0x21e   :  { %9010 = vst [vmem:[#allocation64_spill] sm:$0xff] %v7366_v12  ;;  %v7392_v12 = vpop.f32.mrf.mxu3 }
 0x21f   :  { %9018 = vst [vmem:[#allocation72_spill] sm:$0xff] %v7392_v12 }
 0x225   :  { %v7370_v54 = vpop.f32.mrf.mxu0 }
 0x226   :  { %9012 = vst [vmem:[#allocation66_spill] sm:$0xff] %v7370_v54  ;;  %v7396_v54 = vpop.f32.mrf.mxu1  ;;  %v7416_v22 = vpop.f32.mrf.mxu3 }
 0x227   :  { %9019 = vst [vmem:[#allocation73_spill] sm:$0xff] %v7396_v54  ;;  %v7414_v54 = vpop.f32.mrf.mxu2 }
 0x228   :  { %9020 = vst [vmem:[#allocation74_spill] sm:$0xff] %v7414_v54 }
 0x229   :  { %9021 = vst [vmem:[#allocation75_spill] sm:$0xff] %v7416_v22 }
 0x22d   :  { %v7378_v41 = vpop.f32.mrf.mxu0 }
 0x22e   :  { %9016 = vst [vmem:[#allocation70_spill] sm:$0xff] %v7378_v41  ;;  %5955 = vmatmul.msk.f32.vlgmr.msra.gmra.mxu1 %vm781_vm2, %v7378_v41  ;;  %5956 = vmatmul.msk.f32.vlgmr.msra.gmra.mxu2 %vm781_vm2, %v7378_v41  ;;  %v7422_v43 = vpop.f32.mrf.mxu1  ;;  %v7434_v54 = vpop.f32.mrf.mxu3 }
 0x22f   :  { %5957 = vmatmul.msk.f32.vlgmr.msra.gmra.mxu3 %vm781_vm2, %v7378_v41  ;;  %5958 = vmatmul.msk.f32.vlgmr.msrb.gmra.mxu0 %vm781_vm2, %v7378_v41  ;;  %9022 = vst [vmem:[#allocation76_spill] sm:$0xff] %v7422_v43  ;;  %v7432_v22 = vpop.f32.mrf.mxu2 }
 0x230   :  { %1847 = vmatpush.xpose.msra.mxu1 %v7077_v26  ;;  %1867 = vmatpush.xpose.msra.mxu2 %v7245_v17  ;;  %9023 = vst [vmem:[#allocation77_spill] sm:$0xff] %v7432_v22 }
 0x231   :  { %1887 = vmatpush.xpose.msra.mxu3 %v7249_v34  ;;  %1907 = vmatpush.xpose.msrb.mxu0 %v7258_v40  ;;  %9024 = vst [vmem:[#allocation78_spill] sm:$0xff] %v7434_v54 }
 0x234   :  { %1848 = vmatpush.xpose.msra.mxu1 %v7067_v35  ;;  %1868 = vmatpush.xpose.msra.mxu2 %v7229_v0 }
 0x235   :  { %1888 = vmatpush.xpose.msra.mxu3 %v7233_v15  ;;  %1908 = vmatpush.xpose.msrb.mxu0 %v7237_v39 }
 0x236   :  { %5959 = vmatmul.msk.f32.vlgmr.msrb.gmra.mxu1 %vm781_vm2, %v7378_v41  ;;  %5960 = vmatmul.msk.f32.vlgmr.msrb.gmra.mxu2 %vm781_vm2, %v7378_v41  ;;  %v7440_v43 = vpop.f32.mrf.mxu1  ;;  %v7448_v54 = vpop.f32.mrf.mxu3 }
 0x237   :  { %5961 = vmatmul.msk.f32.vlgmr.msrb.gmra.mxu3 %vm781_vm2, %v7378_v41  ;;  %5962 = vmatmul.msk.f32.vlgmr.msra.gmra.mxu0 %vm781_vm2, %v7378_v41  ;;  %9025 = vst [vmem:[#allocation79_spill] sm:$0xff] %v7440_v43  ;;  %v7446_v22 = vpop.f32.mrf.mxu2 }
 0x238   :  { %1849 = vmatpush.xpose.msra.mxu1 %v7057_v33  ;;  %1869 = vmatpush.xpose.msra.mxu2 %v7213_v32  ;;  %9026 = vst [vmem:[#allocation80_spill] sm:$0xff] %v7446_v22 }
 0x239   :  { %1889 = vmatpush.xpose.msra.mxu3 %v7217_v11  ;;  %1909 = vmatpush.xpose.msrb.mxu0 %v7221_v51  ;;  %9027 = vst [vmem:[#allocation81_spill] sm:$0xff] %v7448_v54 }
 0x23c   :  { %1850 = vmatpush.xpose.msra.mxu1 %v7047_v29  ;;  %1870 = vmatpush.xpose.msra.mxu2 %v7193_v6 }
 0x23d   :  { %1890 = vmatpush.xpose.msra.mxu3 %v7199_v5  ;;  %1910 = vmatpush.xpose.msrb.mxu0 %v7204_v45 }
 0x23e   :  { %v7450_v1 = vpop.f32.mrf.mxu1  ;;  %v7454_v12 = vpop.f32.mrf.mxu3 }
 0x23f   :  { %9028 = vst [vmem:[#allocation82_spill] sm:$0xff] %v7450_v1  ;;  %v7452_v53 = vpop.f32.mrf.mxu2 }
 0x240   :  { %1927 = vmatpush.xpose.msrb.mxu1 %v7235_v50  ;;  %1947 = vmatpush.xpose.msrb.mxu2 %v7342_v16  ;;  %9029 = vst [vmem:[#allocation83_spill] sm:$0xff] %v7452_v53 }
 0x241   :  { %1967 = vmatpush.xpose.msrb.mxu3 %v7346_v23  ;;  %1987 = vmatpush.xpose.msra.mxu0 %v7348_v60  ;;  %9030 = vst [vmem:[#allocation84_spill] sm:$0xff] %v7454_v12 }
 0x244   :  { %1928 = vmatpush.xpose.msrb.mxu1 %v7219_v52  ;;  %1948 = vmatpush.xpose.msrb.mxu2 %v7334_v19 }
 0x245   :  { %1968 = vmatpush.xpose.msrb.mxu3 %v7338_v46  ;;  %1988 = vmatpush.xpose.msra.mxu0 %v7340_v58 }
 0x246   :  { %v7456_v18 = vpop.f32.mrf.mxu1  ;;  %v7460_v41 = vpop.f32.mrf.mxu3 }
 0x247   :  { %9031 = vst [vmem:[#allocation85_spill] sm:$0xff] %v7456_v18  ;;  %v7458_v43 = vpop.f32.mrf.mxu2 }
 0x248   :  { %1929 = vmatpush.xpose.msrb.mxu1 %v7201_v10  ;;  %1949 = vmatpush.xpose.msrb.mxu2 %v7326_v9  ;;  %9032 = vst [vmem:[#allocation86_spill] sm:$0xff] %v7458_v43 }
 0x249   :  { %1969 = vmatpush.xpose.msrb.mxu3 %v7330_v61  ;;  %1989 = vmatpush.xpose.msra.mxu0 %v7332_v2  ;;  %9033 = vst [vmem:[#allocation87_spill] sm:$0xff] %v7460_v41 }
 0x24c   :  { %1930 = vmatpush.xpose.msrb.mxu1 %v7170_v25  ;;  %1950 = vmatpush.xpose.msrb.mxu2 %v7318_v24 }
 0x24d   :  { %1970 = vmatpush.xpose.msrb.mxu3 %v7322_v8  ;;  %1990 = vmatpush.xpose.msra.mxu0 %v7324_v7 }
 0x24e   :  { %v7462_v44 = vpop.f32.mrf.mxu1  ;;  %v7466_v38 = vpop.f32.mrf.mxu3 }
 0x24f   :  { %9034 = vst [vmem:[#allocation88_spill] sm:$0xff] %v7462_v44  ;;  %v7464_v36 = vpop.f32.mrf.mxu2 }
 0x250   :  { %9035 = vst [vmem:[#allocation89_spill] sm:$0xff] %v7464_v36 }
 0x251   :  { %9036 = vst [vmem:[#allocation90_spill] sm:$0xff] %v7466_v38 }
 0x256   :  { %v7468_v22 = vpop.f32.mrf.mxu1  ;;  %v7472_v1 = vpop.f32.mrf.mxu3 }
 0x257   :  { %9037 = vst [vmem:[#allocation91_spill] sm:$0xff] %v7468_v22  ;;  %v7470_v54 = vpop.f32.mrf.mxu2 }
 0x258   :  { %9038 = vst [vmem:[#allocation92_spill] sm:$0xff] %v7470_v54 }
 0x259   :  { %9039 = vst [vmem:[#allocation93_spill] sm:$0xff] %v7472_v1 }
 0x25e   :  { %v7474_v53 = vpop.f32.mrf.mxu1  ;;  %v7478_v18 = vpop.f32.mrf.mxu3 }
 0x25f   :  { %9040 = vst [vmem:[#allocation94_spill] sm:$0xff] %v7474_v53  ;;  %v7476_v12 = vpop.f32.mrf.mxu2 }
 0x260   :  { %9041 = vst [vmem:[#allocation95_spill] sm:$0xff] %v7476_v12 }
 0x261   :  { %9042 = vst [vmem:[#allocation96_spill] sm:$0xff] %v7478_v18 }
 0x266   :  { %v7480_v43 = vpop.f32.mrf.mxu1  ;;  %v7484_v44 = vpop.f32.mrf.mxu3 }
 0x267   :  { %9043 = vst [vmem:[#allocation97_spill] sm:$0xff] %v7480_v43  ;;  %v7482_v41 = vpop.f32.mrf.mxu2 }
 0x268   :  { %9044 = vst [vmem:[#allocation98_spill] sm:$0xff] %v7482_v41 }
 0x269   :  { %9045 = vst [vmem:[#allocation99_spill] sm:$0xff] %v7484_v44 }
 0x26e   :  { %v7486_v36 = vpop.f32.mrf.mxu1  ;;  %v7490_v22 = vpop.f32.mrf.mxu3 }
 0x26f   :  { %9046 = vst [vmem:[#allocation100_spill] sm:$0xff] %v7486_v36  ;;  %v7488_v38 = vpop.f32.mrf.mxu2 }
 0x270   :  { %9047 = vst [vmem:[#allocation101_spill] sm:$0xff] %v7488_v38 }
 0x271   :  { %9048 = vst [vmem:[#allocation102_spill] sm:$0xff] %v7490_v22 }
 0x276   :  { %v7492_v54 = vpop.f32.mrf.mxu1  ;;  %v7496_v53 = vpop.f32.mrf.mxu3 }
 0x277   :  { %9049 = vst [vmem:[#allocation103_spill] sm:$0xff] %v7492_v54  ;;  %v7494_v1 = vpop.f32.mrf.mxu2 }
 0x278   :  { %9050 = vst [vmem:[#allocation104_spill] sm:$0xff] %v7494_v1 }
 0x279   :  { %9051 = vst [vmem:[#allocation105_spill] sm:$0xff] %v7496_v53 }
 0x27e   :  { %v7498_v12 = vpop.f32.mrf.mxu1  ;;  %v7502_v43 = vpop.f32.mrf.mxu3 }
 0x27f   :  { %9052 = vst [vmem:[#allocation106_spill] sm:$0xff] %v7498_v12  ;;  %v7500_v18 = vpop.f32.mrf.mxu2 }
 0x280   :  { %9053 = vst [vmem:[#allocation107_spill] sm:$0xff] %v7500_v18 }
 0x281   :  { %9054 = vst [vmem:[#allocation108_spill] sm:$0xff] %v7502_v43 }
 0x2ab   :  { %v1505_v41 = vpop.f32.mrf.mxu1 }
 0x2ac   :  { %v1648_v44 = vmul.f32 0.17677669, %v1505_v41  ;;  %v1565_v7 = vpop.f32.mrf.mxu0 }
 0x2ad   :  { %v1651_v36 = vmul.f32 0.17677669, %v1565_v7 }
 0x2ae   :  { %v1656_v38 = vsel %vm156_vm0, %v1648_v44, -inf }
 0x2af   :  { %v1657_v8 = vrot.slane %v1656_v38, 4  ;;  %v1677_v22 = vsel %vm156_vm0, %v1651_v36, -inf }
 0x2b0   :  { %v1678_v54 = vrot.slane %v1677_v22, 4 }
 0x2b1   :  { %v1658_v24 = vmax.f32 %v1656_v38, %v1657_v8  ;;  %v1525_v1 = vpop.f32.mrf.mxu2 }
 0x2b2   :  { %v1679_v25 = vmax.f32 %v1677_v22, %v1678_v54  ;;  %v1649_v53 = vmul.f32 0.17677669, %v1525_v1  ;;  %v1545_v2 = vpop.f32.mrf.mxu3 }
 0x2b3   :  { %v1659_v12 = vrot.slane %v1658_v24, 2  ;;  %v1650_v61 = vmul.f32 0.17677669, %v1545_v2  ;;  %v1585_v18 = vpop.f32.mrf.mxu1 }
 0x2b4   :  { %v1680_v9 = vrot.slane %v1679_v25, 2  ;;  %v1663_v43 = vsel %vm156_vm0, %v1649_v53, -inf  ;;  %v7507_v41 = vmul.f32 0.17677669, %v1585_v18  ;;  %v1645_v7 = vpop.f32.mrf.mxu0 }
 0x2b5   :  { %v1660_v10 = vmax.f32 %v1658_v24, %v1659_v12  ;;  %v1664_v58 = vrot.slane %v1663_v43, 4  ;;  %v1670_v46 = vsel %vm156_vm0, %v1650_v61, -inf  ;;  %v7510_v19 = vmul.f32 0.17677669, %v1645_v7 }
 0x2b6   :  { %v1681_v8 = vmax.f32 %v1679_v25, %v1680_v9  ;;  %v1671_v38 = vrot.slane %v1670_v46, 4  ;;  %v1684_v54 = vsel %vm156_vm0, %v7507_v41, -inf }
 0x2b7   :  { %v1661_v22 = vrot.slane %v1660_v10, 1  ;;  %v1665_v2 = vmax.f32 %v1663_v43, %v1664_v58  ;;  %v1685_v1 = vrot.slane %v1684_v54, 4  ;;  %v1705_v52 = vsel %vm156_vm0, %v7510_v19, -inf }
 0x2b8   :  { %v1682_v18 = vrot.slane %v1681_v8, 1  ;;  %v1672_v60 = vmax.f32 %v1670_v46, %v1671_v38  ;;  %v1706_v23 = vrot.slane %v1705_v52, 4 }
 0x2b9   :  { %v1662_v12 = vmax.f32 %v1660_v10, %v1661_v22  ;;  %v1666_v24 = vrot.slane %v1665_v2, 2  ;;  %v1686_v16 = vmax.f32 %v1684_v54, %v1685_v1  ;;  %v1605_v50 = vpop.f32.mrf.mxu2 }
 0x2ba   :  { %v1683_v7 = vmax.f32 %v1681_v8, %v1682_v18  ;;  %v1673_v45 = vrot.slane %v1672_v60, 2  ;;  %v1707_v25 = vmax.f32 %v1705_v52, %v1706_v23  ;;  %v1653_v9 = vmul.f32 0.17677669, %v1605_v50  ;;  %v1625_v5 = vpop.f32.mrf.mxu3 }
 0x2bb   :  { %v1712_v6 = vsub.f32 %v1648_v44, %v1662_v12  ;;  %v1667_v29 = vmax.f32 %v1665_v2, %v1666_v24  ;;  %v1687_v51 = vrot.slane %v1686_v16, 2  ;;  %v7516_v43 = vmul.f32 0.17677669, %v1625_v5 }
 0x2bc   :  { %v1715_v58 = vsub.f32 %v1651_v36, %v1683_v7  ;;  %v1674_v11 = vmax.f32 %v1672_v60, %v1673_v45  ;;  %v1708_v32 = vrot.slane %v1707_v25, 2  ;;  %v1691_v46 = vsel %vm156_vm0, %v1653_v9, -inf }
 0x2bd   :  { %v1720_v38 = vmul.f32 1.442695, %v1712_v6  ;;  %v1668_v10 = vrot.slane %v1667_v29, 1  ;;  %v1688_v22 = vmax.f32 %v1686_v16, %v1687_v51  ;;  %v1692_v54 = vrot.slane %v1691_v46, 4 }
 0x2be   :  { %v1726_v1 = vmul.f32 1.442695, %v1715_v58  ;;  %v1675_v8 = vrot.slane %v1674_v11, 1  ;;  %v1709_v18 = vmax.f32 %v1707_v25, %v1708_v32  ;;  %v1698_v52 = vsel %vm156_vm0, %v7516_v43, -inf }
 0x2bf   :  { %6184 = vpow2.f32 %v1720_v38  ;;  %v1669_v44 = vmax.f32 %v1667_v29, %v1668_v10  ;;  %v1689_v50 = vrot.slane %v1688_v22, 1  ;;  %v1693_v5 = vmax.f32 %v1691_v46, %v1692_v54 }
 0x2c0   :  { %6186 = vpow2.f32 %v1726_v1  ;;  %v1676_v36 = vmax.f32 %v1674_v11, %v1675_v8  ;;  %v1710_v45 = vrot.slane %v1709_v18, 1  ;;  %v1699_v23 = vrot.slane %v1698_v52, 4 }
 0x2c1   :  { %v1713_v60 = vsub.f32 %v1649_v53, %v1669_v44  ;;  %v1690_v2 = vmax.f32 %v1688_v22, %v1689_v50  ;;  %v1694_v6 = vrot.slane %v1693_v5, 2 }
 0x2c2   :  { %v1714_v12 = vsub.f32 %v1650_v61, %v1676_v36  ;;  %v1711_v16 = vmax.f32 %v1709_v18, %v1710_v45  ;;  %v1700_v51 = vmax.f32 %v1698_v52, %v1699_v23 }
 0x2c3   :  { %v1722_v24 = vmul.f32 1.442695, %v1713_v60  ;;  %v1716_v32 = vsub.f32 %v7507_v41, %v1690_v2  ;;  %v1695_v7 = vmax.f32 %v1693_v5, %v1694_v6 }
 0x2c4   :  { %v1724_v25 = vmul.f32 1.442695, %v1714_v12  ;;  %v1719_v58 = vsub.f32 %v7510_v19, %v1711_v16  ;;  %v1701_v29 = vrot.slane %v1700_v51, 2 }
 0x2c5   :  { %v7523_v38 = vpop.eup %6184  ;;  %6188 = vpow2.f32 %v1722_v24  ;;  %v1728_v11 = vmul.f32 1.442695, %v1716_v32  ;;  %v1696_v46 = vrot.slane %v1695_v7, 1 }
 0x2c6   :  { %v7525_v10 = vpop.eup %6186  ;;  %v1736_v53 = vsel %vm156_vm0, %v7523_v38, 0.0  ;;  %6190 = vpow2.f32 %v1724_v25  ;;  %v1734_v61 = vmul.f32 1.442695, %v1719_v58  ;;  %v1702_v22 = vmax.f32 %v1700_v51, %v1701_v29 }
 0x2c7   :  { %v1737_v54 = vrot.slane %v1736_v53, 4  ;;  %v1757_v41 = vsel %vm156_vm0, %v7525_v10, 0.0  ;;  %6192 = vpow2.f32 %v1728_v11  ;;  %v1697_v19 = vmax.f32 %v1695_v7, %v1696_v46 }
 0x2c8   :  { %v1758_v1 = vrot.slane %v1757_v41, 4  ;;  %6194 = vpow2.f32 %v1734_v61  ;;  %v1703_v8 = vrot.slane %v1702_v22, 1 }
 0x2c9   :  { %v1738_v18 = vadd.f32 %v1737_v54, %v1736_v53  ;;  %v1717_v52 = vsub.f32 %v1653_v9, %v1697_v19 }
 0x2ca   :  { %v1759_v44 = vadd.f32 %v1758_v1, %v1757_v41  ;;  %v1704_v50 = vmax.f32 %v1702_v22, %v1703_v8 }
 0x2cb   :  { %v7531_v5 = vpop.eup %6188  ;;  %v1739_v36 = vrot.slane %v1738_v18, 2  ;;  %v1730_v45 = vmul.f32 1.442695, %v1717_v52 }
 0x2cc   :  { %v7533_v23 = vpop.eup %6190  ;;  %v1760_v60 = vrot.slane %v1759_v44, 2  ;;  %v1743_v2 = vsel %vm156_vm0, %v7531_v5, 0.0  ;;  %v1718_v6 = vsub.f32 %v7516_v43, %v1704_v50 }
 0x2cd   :  { %v7538_v12 = vpop.eup %6192  ;;  %v1740_v16 = vadd.f32 %v1739_v36, %v1738_v18  ;;  %v1744_v51 = vrot.slane %v1743_v2, 4  ;;  %v1750_v9 = vsel %vm156_vm0, %v7533_v23, 0.0  ;;  %6196 = vpow2.f32 %v1730_v45 }
 0x2ce   :  { %v7542_v24 = vpop.eup %6194  ;;  %v1761_v32 = vadd.f32 %v1760_v60, %v1759_v44  ;;  %v1751_v7 = vrot.slane %v1750_v9, 4  ;;  %v1764_v25 = vsel %vm156_vm0, %v7538_v12, 0.0  ;;  %v1732_v58 = vmul.f32 1.442695, %v1718_v6 }
 0x2cf   :  { %v1741_v29 = vrot.slane %v1740_v16, 1  ;;  %v1745_v11 = vadd.f32 %v1744_v51, %v1743_v2  ;;  %v1765_v46 = vrot.slane %v1764_v25, 4  ;;  %v1785_v43 = vsel %vm156_vm0, %v7542_v24, 0.0 }
 0x2d0   :  { %v1762_v53 = vrot.slane %v1761_v32, 1  ;;  %v1752_v61 = vadd.f32 %v1751_v7, %v1750_v9  ;;  %v1786_v22 = vrot.slane %v1785_v43, 4  ;;  %6198 = vpow2.f32 %v1732_v58 }
 0x2d1   :  { %v1742_v54 = vadd.f32 %v1741_v29, %v1740_v16  ;;  %v1746_v41 = vrot.slane %v1745_v11, 2  ;;  %v1766_v19 = vadd.f32 %v1765_v46, %v1764_v25 }
 0x2d2   :  { %v1753_v1 = vrot.slane %v1752_v61, 2  ;;  %v1787_v8 = vadd.f32 %v1786_v22, %v1785_v43  ;;  %v1763_v50 = vadd.f32 %v1762_v53, %v1761_v32 }
 0x2d3   :  { %v6197_v18 = vpop.eup %6196  ;;  %v1747_v52 = vadd.f32 %v1746_v41, %v1745_v11  ;;  %v1767_v44 = vrot.slane %v1766_v19, 2  ;;  %6200 = vrcp.f32 %v1742_v54 }
 0x2d4   :  { %v1754_v36 = vadd.f32 %v1753_v1, %v1752_v61  ;;  %v1771_v45 = vsel %vm156_vm0, %v6197_v18, 0.0  ;;  %v1788_v60 = vrot.slane %v1787_v8, 2  ;;  %6202 = vrcp.f32 %v1763_v50 }
 0x2d5   :  { %v1748_v2 = vrot.slane %v1747_v52, 1  ;;  %v1768_v6 = vadd.f32 %v1767_v44, %v1766_v19  ;;  %v1772_v51 = vrot.slane %v1771_v45, 4 }
 0x2d6   :  { %v6199_v9 = vpop.eup %6198  ;;  %v1755_v7 = vrot.slane %v1754_v36, 1  ;;  %v1789_v58 = vadd.f32 %v1788_v60, %v1787_v8 }
 0x2d7   :  { %v1749_v16 = vadd.f32 %v1748_v2, %v1747_v52  ;;  %v1769_v29 = vrot.slane %v1768_v6, 1  ;;  %v1773_v25 = vadd.f32 %v1772_v51, %v1771_v45  ;;  %v1778_v46 = vsel %vm156_vm0, %v6199_v9, 0.0 }
 0x2d8   :  { %v1756_v11 = vadd.f32 %v1755_v7, %v1754_v36  ;;  %v1779_v43 = vrot.slane %v1778_v46, 4  ;;  %v1790_v22 = vrot.slane %v1789_v58, 1 }
 0x2d9   :  { %6204 = vrcp.f32 %v1749_v16  ;;  %v1774_v32 = vrot.slane %v1773_v25, 2  ;;  %v1770_v53 = vadd.f32 %v1769_v29, %v1768_v6  ;;  %v6201_v54 = vpop.eup %6200 }
 0x2da   :  { %6206 = vrcp.f32 %v1756_v11  ;;  %v1780_v61 = vadd.f32 %v1779_v43, %v1778_v46  ;;  %v6203_v8 = vpop.eup %6202  ;;  %v1800_v52 = vmul.f32 %v6201_v54, %v7523_v38  ;;  %v1791_v45 = vadd.f32 %v1790_v22, %v1789_v58 }
 0x2db   :  { %v1775_v41 = vadd.f32 %v1774_v32, %v1773_v25  ;;  %6208 = vrcp.f32 %v1770_v53  ;;  %v1803_v16 = vmul.f32 %v6203_v8, %v7525_v10 }
 0x2dc   :  { %v1781_v19 = vrot.slane %v1780_v61, 2  ;;  %v1808_v25 = vsel %vm156_vm0, %v1800_v52, 0.0 }
 0x2dd   :  { %v1776_v1 = vrot.slane %v1775_v41, 1  ;;  %v1813_v43 = vsel %vm156_vm0, %v1803_v16, 0.0 }
 0x2de   :  { %v1782_v44 = vadd.f32 %v1781_v19, %v1780_v61 }
 0x2df   :  { %v6205_v60 = vpop.eup %6204  ;;  %v1777_v50 = vadd.f32 %v1776_v1, %v1775_v41 }
 0x2e0   :  { %v6207_v36 = vpop.eup %6206  ;;  %v1801_v2 = vmul.f32 %v6205_v60, %v7531_v5  ;;  %v1783_v51 = vrot.slane %v1782_v44, 1 }
 0x2e1   :  { %v6209_v6 = vpop.eup %6208  ;;  %v1802_v7 = vmul.f32 %v6207_v36, %v7533_v23  ;;  %6210 = vrcp.f32 %v1777_v50 }
 0x2e2   :  { %v1784_v29 = vadd.f32 %v1783_v51, %v1782_v44  ;;  %6212 = vrcp.f32 %v1791_v45  ;;  %v1809_v38 = vsel %vm156_vm0, %v1801_v2, 0.0  ;;  %v1804_v58 = vmul.f32 %v6209_v6, %v7538_v12 }
 0x2e3   :  { %v1810_v46 = vadd.f32 %v1809_v38, %v1808_v25  ;;  %v1811_v11 = vsel %vm156_vm0, %v1802_v7, 0.0 }
 0x2e4   :  { %6214 = vrcp.f32 %v1784_v29  ;;  %v1815_v10 = vsel %vm156_vm0, %v1804_v58, 0.0 }
 0x2e5   :  { %v1812_v5 = vadd.f32 %v1811_v11, %v1810_v46  ;;  %v9062_v11 = vld [vmem:[#allocation34_spill] sm:$0xff] }
 0x2e7   :  { %v6211_v32 = vpop.eup %6210  ;;  %v1814_v23 = vadd.f32 %v1813_v43, %v1812_v5  ;;  %v9063_v5 = vld [vmem:[#allocation31_spill] sm:$0xff]  ;;  %v9064_v43 = vld [vmem:[#allocation28_spill] sm:$0xff] }
 0x2e8   :  { %v6213_v53 = vpop.eup %6212  ;;  %v1805_v61 = vmul.f32 %v6211_v32, %v6197_v18  ;;  %v9065_v32 = vld [vmem:[#allocation24_spill] sm:$0xff] }
 0x2e9   :  { %v1816_v22 = vadd.f32 %v1815_v10, %v1814_v23  ;;  %v1807_v1 = vmul.f32 %v6213_v53, %v7542_v24  ;;  %v7567_v24 = vld [vmem:[%s8821_s2 + $0x98] sm:$0xff] }
 0x2ea   :  { %v6215_v54 = vpop.eup %6214  ;;  %v1817_v41 = vsel %vm156_vm0, %v1805_v61, 0.0  ;;  %v7624_v23 = vld [vmem:[%s8821_s2 + $0x198] ss:$0 sm:$0xff] }
 0x2eb   :  { %v1806_v19 = vmul.f32 %v6215_v54, %v6199_v9  ;;  %v1818_v8 = vadd.f32 %v1817_v41, %v1816_v22  ;;  %v1821_v45 = vsel %vm156_vm0, %v1807_v1, 0.0  ;;  %v7574_v9 = vld [vmem:[%s8821_s2 + $0x90] sm:$0xff]  ;;  %v9067_v54 = vld [vmem:[#allocation36_spill] sm:$0xff]  ;;  %v9068_v41 = vld [vmem:[#allocation33_spill] sm:$0xff] }
 0x2ed   :  { %v1819_v12 = vsel %vm156_vm0, %v1806_v19, 0.0 }
 0x2ee   :  { %v1820_v44 = vadd.f32 %v1819_v12, %v1818_v8  ;;  %v9079_v12 = vld [vmem:[#allocation52_spill] sm:$0xff] }
 0x2f0   :  { %v1822_v60 = vadd.f32 %v1821_v45, %v1820_v44  ;;  %v9080_v44 = vld [vmem:[#allocation54_spill] sm:$0xff] }
 0x2f1   :  { %v9082_v45 = vld [vmem:[#allocation18_spill] sm:$0xff] }
 0x2f2   :  { %1823 = vadd.xlane.f32.xlu2 %v1822_v60  ;;  %v9083_v60 = vld [vmem:[#allocation48_spill] sm:$0xff] }
 0x365   :  { %v1824_v50 = vpop.xlane.xlu2 %1823 }
 0x366   :  { %v1825_v36 = vadd.f32 1e-08, %v1824_v50  ;;  %v9084_v50 = vld [vmem:[#allocation50_spill] sm:$0xff] }
 0x368   :  { %6216 = vrcp.f32 %v1825_v36  ;;  %v9085_v36 = vld [vmem:[#allocation51_spill] sm:$0xff] }
 0x36e   :  { %v6217_v18 = vpop.eup %6216 }
 0x36f   :  { %v1827_v51 = vmul.f32 %v6217_v18, %v1800_v52  ;;  %v1828_v6 = vmul.f32 %v6217_v18, %v1801_v2  ;;  %v1829_v29 = vmul.f32 %v6217_v18, %v1802_v7  ;;  %v1830_v25 = vmul.f32 %v6217_v18, %v1803_v16  ;;  %v7583_v52 = vld [vmem:[%s8821_s2 + $0x88] sm:$0xff] }
 0x371   :  { %1851 = vmatmul.f32.vlgmr.msra.gmra.mxu1 %v1827_v51  ;;  %1871 = vmatmul.f32.vlgmr.msra.gmra.mxu2 %v1828_v6  ;;  %v9087_v51 = vld [vmem:[#allocation44_spill] sm:$0xff]  ;;  %v9088_v6 = vld [vmem:[#allocation46_spill] sm:$0xff] }
 0x372   :  { %1891 = vmatmul.f32.vlgmr.msra.gmra.mxu3 %v1829_v29  ;;  %1911 = vmatmul.f32.vlgmr.msrb.gmra.mxu0 %v1830_v25  ;;  %v9089_v29 = vld [vmem:[#allocation47_spill] sm:$0xff] }
 0x373   :  { %2059 = vmatpush.msra.mxu3 %v7033_v28  ;;  %2079 = vmatpush.msrb.mxu0 %v7162_v21  ;;  %v7592_v28 = vld [vmem:[%s8821_s2 + $0x80] sm:$0xff]  ;;  %v9090_v25 = vld [vmem:[#allocation11_spill] sm:$0xff] }
 0x374   :  { %2010 = vmatpush.msra.mxu1 %v7567_v24  ;;  %2036 = vmatpush.msra.mxu2 %v7086_v37  ;;  %v1832_v37 = vmul.f32 %v6217_v18, %v1805_v61  ;;  %v9066_v61 = vld [vmem:[#allocation22_spill] sm:$0xff] }
 0x375   :  { %2060 = vmatpush.msra.mxu3 %v7023_v14  ;;  %2080 = vmatpush.msrb.mxu0 %v7137_v55  ;;  %v1831_v14 = vmul.f32 %v6217_v18, %v1804_v58  ;;  %v9058_v55 = vld [vmem:[#allocation7_spill] sm:$0xff] }
 0x376   :  { %2011 = vmatpush.msra.mxu1 %v7574_v9  ;;  %2037 = vmatpush.msra.mxu2 %v7118_v20  ;;  %v1834_v20 = vmul.f32 %v6217_v18, %v1807_v1  ;;  %v9070_v1 = vld [vmem:[#allocation26_spill] sm:$0xff] }
 0x377   :  { %2061 = vmatpush.msra.mxu3 %v7013_v13  ;;  %2081 = vmatpush.msrb.mxu0 %v7121_v27  ;;  %v1833_v13 = vmul.f32 %v6217_v18, %v1806_v19  ;;  %v9057_v27 = vld [vmem:[#allocation27_spill] sm:$0xff]  ;;  %v9069_v19 = vld [vmem:[#allocation30_spill] sm:$0xff] }
 0x378   :  { %2012 = vmatpush.msra.mxu1 %v7583_v52  ;;  %2038 = vmatpush.msra.mxu2 %v7158_v62  ;;  %v9060_v62 = vld [vmem:[#allocation6_spill] sm:$0xff] }
 0x379   :  { %2062 = vmatpush.msra.mxu3 %v7003_v3  ;;  %2082 = vmatpush.msrb.mxu0 %v7097_v42  ;;  %v9055_v3 = vld [vmem:[#allocation10_spill] sm:$0xff]  ;;  %v9056_v42 = vld [vmem:[#allocation8_spill] sm:$0xff] }
 0x37a   :  { %2013 = vmatpush.msra.mxu1 %v7592_v28  ;;  %2039 = vmatpush.msra.mxu2 %v7175_v63  ;;  %v9086_v18 = vld [vmem:[#allocation14_spill] sm:$0xff] }
 0x37b   :  { %1931 = vmatmul.f32.vlgmr.msrb.gmra.mxu1 %v1831_v14  ;;  %1951 = vmatmul.f32.vlgmr.msrb.gmra.mxu2 %v1832_v37  ;;  %v9091_v14 = vld [vmem:[#allocation40_spill] sm:$0xff]  ;;  %v9092_v37 = vld [vmem:[#allocation42_spill] sm:$0xff] }
 0x37c   :  { %1971 = vmatmul.f32.vlgmr.msrb.gmra.mxu3 %v1833_v13  ;;  %1991 = vmatmul.f32.vlgmr.msra.gmra.mxu0 %v1834_v20  ;;  %v9093_v13 = vld [vmem:[#allocation43_spill] sm:$0xff] }
 0x37d   :  { %2099 = vmatpush.msrb.mxu1 %v7168_v57  ;;  %2119 = vmatpush.msrb.mxu2 %v7180_v4 }
 0x37e   :  { %2139 = vmatpush.msrb.mxu3 %v7145_v30  ;;  %2159 = vmatpush.msra.mxu0 %v7292_v31  ;;  %v9059_v30 = vld [vmem:[#allocation9_spill] sm:$0xff] }
 0x37f   :  { %2100 = vmatpush.msrb.mxu1 %v7143_v47  ;;  %2120 = vmatpush.msrb.mxu2 %v7148_v56  ;;  %v9061_v47 = vld [vmem:[#allocation23_spill] sm:$0xff] }
 0x380   :  { %2140 = vmatpush.msrb.mxu3 %v7129_v49  ;;  %2160 = vmatpush.msra.mxu0 %v7284_v59 }
 0x381   :  { %2101 = vmatpush.msrb.mxu1 %v7127_v48  ;;  %2121 = vmatpush.msrb.mxu2 %v9055_v3 }
 0x382   :  { %2141 = vmatpush.msrb.mxu3 %v9056_v42  ;;  %2161 = vmatpush.msra.mxu0 %v9057_v27 }
 0x383   :  { %2102 = vmatpush.msrb.mxu1 %v9058_v55  ;;  %2122 = vmatpush.msrb.mxu2 %v9059_v30 }
 0x384   :  { %2142 = vmatpush.msrb.mxu3 %v9060_v62  ;;  %2162 = vmatpush.msra.mxu0 %v9061_v47 }
 0x3ee   :  { %v1852_v56 = vpop.f32.mrf.mxu1 }
 0x3ef   :  { %v1912_v48 = vpop.f32.mrf.mxu0 }
 0x3f4   :  { %v1872_v49 = vpop.f32.mrf.mxu2 }
 0x3f5   :  { %v1873_v21 = vadd.f32 %v1872_v49, %v1852_v56  ;;  %v1892_v57 = vpop.f32.mrf.mxu3 }
 0x3f7   :  { %v1893_v63 = vadd.f32 %v1892_v57, %v1873_v21 }
 0x3f8   :  { %v1932_v59 = vpop.f32.mrf.mxu1 }
 0x3f9   :  { %v1913_v4 = vadd.f32 %v1912_v48, %v1893_v63  ;;  %v1992_v46 = vpop.f32.mrf.mxu0 }
 0x3fb   :  { %v1933_v31 = vadd.f32 %v1932_v59, %v1913_v4 }
 0x3fe   :  { %v1952_v2 = vpop.f32.mrf.mxu2 }
 0x3ff   :  { %v1953_v7 = vadd.f32 %v1952_v2, %v1933_v31  ;;  %v1972_v16 = vpop.f32.mrf.mxu3 }
 0x401   :  { %v1973_v38 = vadd.f32 %v1972_v16, %v1953_v7 }
 0x403   :  { %v1993_v58 = vadd.f32 %v1992_v46, %v1973_v38 }
 0x405   :  { %5963 = vmatmul.msk.f32.vlgmr.msra.gmra.mxu1 %vm781_vm2, %v1993_v58 }
 0x406   :  { %2179 = vmatpush.msra.mxu1 %v9062_v11 }
 0x408   :  { %2180 = vmatpush.msra.mxu1 %v9063_v5 }
 0x40a   :  { %2181 = vmatpush.msra.mxu1 %v9064_v43 }
 0x40c   :  { %2182 = vmatpush.msra.mxu1 %v9065_v32 }
 0x482   :  { %v2015_v53 = vpop.f32.mrf.mxu1 }
 0x483   :  { %v2018_v10 = vadd.f32 %v2015_v53, %v9066_v61 }
 0x485   :  { %v7628_v22 = vadd.f32 %v7624_v23, %v2018_v10 }
 0x487   :  { %5964 = vmatmul.msk.f32.vlgmr.msra.gmra.mxu2 %vm781_vm2, %v7628_v22 }
 0x488   :  { %2199 = vmatpush.msra.mxu2 %v9067_v54 }
 0x48a   :  { %2200 = vmatpush.msra.mxu2 %v9068_v41 }
 0x48c   :  { %2201 = vmatpush.msra.mxu2 %v9069_v19 }
 0x48e   :  { %2202 = vmatpush.msra.mxu2 %v9070_v1 }
 0x50a   :  { %v2041_v8 = vpop.f32.mrf.mxu2 }
 0x50b   :  { %5965 = vmatmul.msk.f32.vlgmr.msra.gmra.mxu3 %vm781_vm2, %v2041_v8  ;;  %5966 = vmatmul.msk.f32.vlgmr.msrb.gmra.mxu0 %vm781_vm2, %v2041_v8 }
 0x50c   :  { %5967 = vmatmul.msk.f32.vlgmr.msrb.gmra.mxu1 %vm781_vm2, %v2041_v8  ;;  %5968 = vmatmul.msk.f32.vlgmr.msrb.gmra.mxu2 %vm781_vm2, %v2041_v8 }
 0x50d   :  { %2412 = vmatpush.xpose.msra.mxu3 %v7077_v26  ;;  %2432 = vmatpush.xpose.msrb.mxu0 %v7245_v17  ;;  %v9071_v26 = vld [vmem:[#allocation16_spill] sm:$0xff]  ;;  %v9072_v17 = vld [vmem:[#allocation17_spill] sm:$0xff] }
 0x50e   :  { %2461 = vmatpush.xpose.msrb.mxu1 %v7249_v34  ;;  %2481 = vmatpush.xpose.msrb.mxu2 %v7258_v40  ;;  %v9077_v34 = vld [vmem:[#allocation15_spill] sm:$0xff]  ;;  %v9078_v40 = vld [vmem:[#allocation20_spill] sm:$0xff] }
 0x511   :  { %2413 = vmatpush.xpose.msra.mxu3 %v7067_v35  ;;  %2433 = vmatpush.xpose.msrb.mxu0 %v7229_v0  ;;  %v9073_v35 = vld [vmem:[#allocation19_spill] sm:$0xff]  ;;  %v9074_v0 = vld [vmem:[#allocation5_spill] sm:$0xff] }
 0x512   :  { %2462 = vmatpush.xpose.msrb.mxu1 %v7233_v15  ;;  %2482 = vmatpush.xpose.msrb.mxu2 %v7237_v39  ;;  %v9075_v15 = vld [vmem:[#allocation12_spill] sm:$0xff]  ;;  %v9076_v39 = vld [vmem:[#allocation13_spill] sm:$0xff] }
 0x513   :  { %5969 = vmatmul.msk.f32.vlgmr.msrb.gmra.mxu3 %vm781_vm2, %v2041_v8  ;;  %5970 = vmatmul.msk.f32.vlgmr.msra.gmra.mxu0 %vm781_vm2, %v2041_v8 }
 0x514   :  { %5971 = vmatmul.msk.f32.vlgmr.msra.gmra.mxu1 %vm781_vm2, %v2041_v8  ;;  %5972 = vmatmul.msk.f32.vlgmr.msra.gmra.mxu2 %vm781_vm2, %v2041_v8 }
 0x515   :  { %2414 = vmatpush.xpose.msra.mxu3 %v7057_v33  ;;  %2434 = vmatpush.xpose.msrb.mxu0 %v9071_v26  ;;  %v9081_v33 = vld [vmem:[#allocation55_spill] sm:$0xff] }
 0x516   :  { %2463 = vmatpush.xpose.msrb.mxu1 %v9072_v17  ;;  %2483 = vmatpush.xpose.msrb.mxu2 %v9073_v35 }
 0x519   :  { %2415 = vmatpush.xpose.msra.mxu3 %v9074_v0  ;;  %2435 = vmatpush.xpose.msrb.mxu0 %v9075_v15 }
 0x51a   :  { %2464 = vmatpush.xpose.msrb.mxu1 %v9076_v39  ;;  %2484 = vmatpush.xpose.msrb.mxu2 %v9077_v34 }
 0x51d   :  { %2510 = vmatpush.xpose.msrb.mxu3 %v9078_v40  ;;  %2530 = vmatpush.xpose.msra.mxu0 %v9079_v12 }
 0x51e   :  { %2559 = vmatpush.xpose.msra.mxu1 %v9080_v44  ;;  %2579 = vmatpush.xpose.msra.mxu2 %v9081_v33 }
 0x521   :  { %2511 = vmatpush.xpose.msrb.mxu3 %v9082_v45  ;;  %2531 = vmatpush.xpose.msra.mxu0 %v9083_v60 }
 0x522   :  { %2560 = vmatpush.xpose.msra.mxu1 %v9084_v50  ;;  %2580 = vmatpush.xpose.msra.mxu2 %v9085_v36 }
 0x525   :  { %2512 = vmatpush.xpose.msrb.mxu3 %v9086_v18  ;;  %2532 = vmatpush.xpose.msra.mxu0 %v9087_v51 }
 0x526   :  { %2561 = vmatpush.xpose.msra.mxu1 %v9088_v6  ;;  %2581 = vmatpush.xpose.msra.mxu2 %v9089_v29 }
 0x529   :  { %2513 = vmatpush.xpose.msrb.mxu3 %v9090_v25  ;;  %2533 = vmatpush.xpose.msra.mxu0 %v9091_v14 }
 0x52a   :  { %2562 = vmatpush.xpose.msra.mxu1 %v9092_v37  ;;  %2582 = vmatpush.xpose.msra.mxu2 %v9093_v13 }
 0x588   :  { %v2084_v20 = vpop.f32.mrf.mxu0 }
 0x589   :  { %v2208_v3 = vmul.f32 0.17677669, %v2084_v20  ;;  %v2104_v42 = vpop.f32.mrf.mxu1 }
 0x58a   :  { %v2209_v27 = vmul.f32 0.17677669, %v2104_v42 }
 0x58b   :  { %v2222_v55 = vsel %vm156_vm0, %v2208_v3, -inf }
 0x58c   :  { %v2223_v30 = vrot.slane %v2222_v55, 4  ;;  %v2229_v62 = vsel %vm156_vm0, %v2209_v27, -inf }
 0x58d   :  { %v2230_v47 = vrot.slane %v2229_v62, 4 }
 0x58e   :  { %v2224_v56 = vmax.f32 %v2222_v55, %v2223_v30  ;;  %v2064_v49 = vpop.f32.mrf.mxu3 }
 0x58f   :  { %v2231_v21 = vmax.f32 %v2229_v62, %v2230_v47  ;;  %v2207_v57 = vmul.f32 0.17677669, %v2064_v49  ;;  %v2124_v63 = vpop.f32.mrf.mxu2 }
 0x590   :  { %v2225_v48 = vrot.slane %v2224_v56, 2  ;;  %v2210_v4 = vmul.f32 0.17677669, %v2124_v63  ;;  %v2164_v59 = vpop.f32.mrf.mxu0 }
 0x591   :  { %v2232_v31 = vrot.slane %v2231_v21, 2  ;;  %v2215_v2 = vsel %vm156_vm0, %v2207_v57, -inf  ;;  %v7679_v7 = vmul.f32 0.17677669, %v2164_v59  ;;  %v2184_v16 = vpop.f32.mrf.mxu1 }
 0x592   :  { %v2226_v38 = vmax.f32 %v2224_v56, %v2225_v48  ;;  %v2216_v46 = vrot.slane %v2215_v2, 4  ;;  %v2236_v58 = vsel %vm156_vm0, %v2210_v4, -inf  ;;  %v7682_v11 = vmul.f32 0.17677669, %v2184_v16 }
 0x593   :  { %v2233_v5 = vmax.f32 %v2231_v21, %v2232_v31  ;;  %v2237_v43 = vrot.slane %v2236_v58, 4  ;;  %v2250_v32 = vsel %vm156_vm0, %v7679_v7, -inf }
 0x594   :  { %v2227_v53 = vrot.slane %v2226_v38, 1  ;;  %v2217_v61 = vmax.f32 %v2215_v2, %v2216_v46  ;;  %v2251_v10 = vrot.slane %v2250_v32, 4  ;;  %v2257_v54 = vsel %vm156_vm0, %v7682_v11, -inf }
 0x595   :  { %v2234_v41 = vrot.slane %v2233_v5, 1  ;;  %v2238_v19 = vmax.f32 %v2236_v58, %v2237_v43  ;;  %v2258_v1 = vrot.slane %v2257_v54, 4 }
 0x596   :  { %v2228_v8 = vmax.f32 %v2226_v38, %v2227_v53  ;;  %v2218_v26 = vrot.slane %v2217_v61, 2  ;;  %v2252_v17 = vmax.f32 %v2250_v32, %v2251_v10  ;;  %v2144_v35 = vpop.f32.mrf.mxu3 }
 0x597   :  { %v2235_v0 = vmax.f32 %v2233_v5, %v2234_v41  ;;  %v2239_v15 = vrot.slane %v2238_v19, 2  ;;  %v2259_v39 = vmax.f32 %v2257_v54, %v2258_v1  ;;  %v2211_v34 = vmul.f32 0.17677669, %v2144_v35  ;;  %v2204_v40 = vpop.f32.mrf.mxu2 }
 0x598   :  { %v2272_v12 = vsub.f32 %v2208_v3, %v2228_v8  ;;  %v2219_v44 = vmax.f32 %v2217_v61, %v2218_v26  ;;  %v2253_v33 = vrot.slane %v2252_v17, 2  ;;  %v7688_v45 = vmul.f32 0.17677669, %v2204_v40 }
 0x599   :  { %v2273_v60 = vsub.f32 %v2209_v27, %v2235_v0  ;;  %v2240_v50 = vmax.f32 %v2238_v19, %v2239_v15  ;;  %v2260_v36 = vrot.slane %v2259_v39, 2  ;;  %v2243_v18 = vsel %vm156_vm0, %v2211_v34, -inf }
 0x59a   :  { %v2281_v51 = vmul.f32 1.442695, %v2272_v12  ;;  %v2220_v6 = vrot.slane %v2219_v44, 1  ;;  %v2254_v29 = vmax.f32 %v2252_v17, %v2253_v33  ;;  %v2244_v25 = vrot.slane %v2243_v18, 4 }
 0x59b   :  { %v2283_v14 = vmul.f32 1.442695, %v2273_v60  ;;  %v2241_v37 = vrot.slane %v2240_v50, 1  ;;  %v2261_v13 = vmax.f32 %v2259_v39, %v2260_v36  ;;  %v2264_v20 = vsel %vm156_vm0, %v7688_v45, -inf }
 0x59c   :  { %6218 = vpow2.f32 %v2281_v51  ;;  %v2221_v3 = vmax.f32 %v2219_v44, %v2220_v6  ;;  %v2255_v42 = vrot.slane %v2254_v29, 1  ;;  %v2245_v55 = vmax.f32 %v2243_v18, %v2244_v25 }
 0x59d   :  { %6220 = vpow2.f32 %v2283_v14  ;;  %v2242_v27 = vmax.f32 %v2240_v50, %v2241_v37  ;;  %v2262_v30 = vrot.slane %v2261_v13, 1  ;;  %v2265_v62 = vrot.slane %v2264_v20, 4 }
 0x59e   :  { %v2271_v47 = vsub.f32 %v2207_v57, %v2221_v3  ;;  %v2256_v56 = vmax.f32 %v2254_v29, %v2255_v42  ;;  %v2246_v49 = vrot.slane %v2245_v55, 2 }
 0x59f   :  { %v2274_v21 = vsub.f32 %v2210_v4, %v2242_v27  ;;  %v2263_v63 = vmax.f32 %v2261_v13, %v2262_v30  ;;  %v2266_v48 = vmax.f32 %v2264_v20, %v2265_v62 }
 0x5a0   :  { %v2279_v59 = vmul.f32 1.442695, %v2271_v47  ;;  %v2276_v31 = vsub.f32 %v7679_v7, %v2256_v56  ;;  %v2247_v2 = vmax.f32 %v2245_v55, %v2246_v49 }
 0x5a1   :  { %v2285_v16 = vmul.f32 1.442695, %v2274_v21  ;;  %v2277_v38 = vsub.f32 %v7682_v11, %v2263_v63  ;;  %v2267_v46 = vrot.slane %v2266_v48, 2 }
 0x5a2   :  { %v7695_v58 = vpop.eup %6218  ;;  %6222 = vpow2.f32 %v2279_v59  ;;  %v2289_v5 = vmul.f32 1.442695, %v2276_v31  ;;  %v2248_v43 = vrot.slane %v2247_v2, 1 }
 0x5a3   :  { %v7697_v32 = vpop.eup %6220  ;;  %v2302_v57 = vsel %vm156_vm0, %v7695_v58, 0.0  ;;  %6224 = vpow2.f32 %v2285_v16  ;;  %v2291_v4 = vmul.f32 1.442695, %v2277_v38  ;;  %v2268_v53 = vmax.f32 %v2266_v48, %v2267_v46 }
 0x5a4   :  { %v2303_v61 = vrot.slane %v2302_v57, 4  ;;  %v2309_v7 = vsel %vm156_vm0, %v7697_v32, 0.0  ;;  %6226 = vpow2.f32 %v2289_v5  ;;  %v2249_v11 = vmax.f32 %v2247_v2, %v2248_v43 }
 0x5a5   :  { %v2310_v10 = vrot.slane %v2309_v7, 4  ;;  %6228 = vpow2.f32 %v2291_v4  ;;  %v2269_v54 = vrot.slane %v2268_v53, 1 }
 0x5a6   :  { %v2304_v41 = vadd.f32 %v2303_v61, %v2302_v57  ;;  %v2275_v19 = vsub.f32 %v2211_v34, %v2249_v11 }
 0x5a7   :  { %v2311_v1 = vadd.f32 %v2310_v10, %v2309_v7  ;;  %v2270_v8 = vmax.f32 %v2268_v53, %v2269_v54 }
 0x5a8   :  { %v7703_v26 = vpop.eup %6222  ;;  %v2305_v17 = vrot.slane %v2304_v41, 2  ;;  %v2287_v35 = vmul.f32 1.442695, %v2275_v19 }
 0x5a9   :  { %v7705_v0 = vpop.eup %6224  ;;  %v2312_v15 = vrot.slane %v2311_v1, 2  ;;  %v2295_v39 = vsel %vm156_vm0, %v7703_v26, 0.0  ;;  %v2278_v40 = vsub.f32 %v7688_v45, %v2270_v8 }
 0x5aa   :  { %v7710_v12 = vpop.eup %6226  ;;  %v2306_v44 = vadd.f32 %v2305_v17, %v2304_v41  ;;  %v2296_v33 = vrot.slane %v2295_v39, 4  ;;  %v2316_v34 = vsel %vm156_vm0, %v7705_v0, 0.0  ;;  %6230 = vpow2.f32 %v2287_v35 }
 0x5ab   :  { %v7714_v60 = vpop.eup %6228  ;;  %v2313_v50 = vadd.f32 %v2312_v15, %v2311_v1  ;;  %v2317_v36 = vrot.slane %v2316_v34, 4  ;;  %v2330_v18 = vsel %vm156_vm0, %v7710_v12, 0.0  ;;  %v2293_v51 = vmul.f32 1.442695, %v2278_v40 }
 0x5ac   :  { %v2307_v6 = vrot.slane %v2306_v44, 1  ;;  %v2297_v29 = vadd.f32 %v2296_v33, %v2295_v39  ;;  %v2331_v25 = vrot.slane %v2330_v18, 4  ;;  %v2337_v45 = vsel %vm156_vm0, %v7714_v60, 0.0 }
 0x5ad   :  { %v2314_v14 = vrot.slane %v2313_v50, 1  ;;  %v2318_v37 = vadd.f32 %v2317_v36, %v2316_v34  ;;  %v2338_v13 = vrot.slane %v2337_v45, 4  ;;  %6232 = vpow2.f32 %v2293_v51 }
 0x5ae   :  { %v2308_v20 = vadd.f32 %v2307_v6, %v2306_v44  ;;  %v2298_v3 = vrot.slane %v2297_v29, 2  ;;  %v2332_v42 = vadd.f32 %v2331_v25, %v2330_v18 }
 0x5af   :  { %v2315_v55 = vadd.f32 %v2314_v14, %v2313_v50  ;;  %v2319_v27 = vrot.slane %v2318_v37, 2  ;;  %v2339_v30 = vadd.f32 %v2338_v13, %v2337_v45 }
 0x5b0   :  { %v7720_v62 = vpop.eup %6230  ;;  %6234 = vrcp.f32 %v2308_v20  ;;  %v2299_v47 = vadd.f32 %v2298_v3, %v2297_v29  ;;  %v2333_v56 = vrot.slane %v2332_v42, 2 }
 0x5b1   :  { %v2320_v49 = vadd.f32 %v2319_v27, %v2318_v37  ;;  %v2340_v21 = vrot.slane %v2339_v30, 2  ;;  %v2323_v63 = vsel %vm156_vm0, %v7720_v62, 0.0  ;;  %6236 = vrcp.f32 %v2315_v55 }
 0x5b2   :  { %v2300_v48 = vrot.slane %v2299_v47, 1  ;;  %v2334_v59 = vadd.f32 %v2333_v56, %v2332_v42  ;;  %v2324_v31 = vrot.slane %v2323_v63, 4 }
 0x5b3   :  { %v7724_v2 = vpop.eup %6232  ;;  %v2321_v16 = vrot.slane %v2320_v49, 1  ;;  %v2341_v38 = vadd.f32 %v2340_v21, %v2339_v30 }
 0x5b4   :  { %v2301_v46 = vadd.f32 %v2300_v48, %v2299_v47  ;;  %v2335_v5 = vrot.slane %v2334_v59, 1  ;;  %v2325_v43 = vadd.f32 %v2324_v31, %v2323_v63  ;;  %v2344_v57 = vsel %vm156_vm0, %v7724_v2, 0.0 }
 0x5b5   :  { %v2322_v4 = vadd.f32 %v2321_v16, %v2320_v49  ;;  %v2345_v53 = vrot.slane %v2344_v57, 4  ;;  %v2342_v61 = vrot.slane %v2341_v38, 1 }
 0x5b6   :  { %v6235_v7 = vpop.eup %6234  ;;  %6238 = vrcp.f32 %v2301_v46  ;;  %v2336_v11 = vadd.f32 %v2335_v5, %v2334_v59  ;;  %v2326_v10 = vrot.slane %v2325_v43, 2 }
 0x5b7   :  { %6240 = vrcp.f32 %v2322_v4  ;;  %v2346_v54 = vadd.f32 %v2345_v53, %v2344_v57  ;;  %v6237_v19 = vpop.eup %6236  ;;  %v7729_v8 = vmul.f32 %v6235_v7, %v7695_v58  ;;  %v2343_v17 = vadd.f32 %v2342_v61, %v2341_v38 }
 0x5b8   :  { %6242 = vrcp.f32 %v2336_v11  ;;  %v2327_v41 = vadd.f32 %v2326_v10, %v2325_v43  ;;  %v7732_v44 = vmul.f32 %v6237_v19, %v7697_v32  ;;  %v50_v10 = vld [vmem:[%s8821_s2 + $0xd8] sm:$0xff] }
 0x5b9   :  { %v2347_v1 = vrot.slane %v2346_v54, 2  ;;  %v2375_v50 = vrot.slane %v7729_v8, 4  ;;  %6244 = vrcp.f32 %v2343_v17  ;;  %v2392_v32 = vsel %vm156_vm0, %v7729_v8, 0.0  ;;  %v55_v19 = vld [vmem:[%s8821_s2 + $0xf8] sm:$0xff]  ;;  %v45_v17 = vld [vmem:[%s8821_s2 + $0xb0] sm:$0xff] }
 0x5ba   :  { %v2328_v35 = vrot.slane %v2327_v41, 1  ;;  %v2440_v25 = vsel %vm156_vm0, %v7732_v44, 0.0 }
 0x5bb   :  { %v2348_v15 = vadd.f32 %v2347_v1, %v2346_v54  ;;  %v49_v1 = vld [vmem:[%s8821_s2 + $0xd0] sm:$0xff] }
 0x5bc   :  { %v6239_v39 = vpop.eup %6238  ;;  %v2329_v40 = vadd.f32 %v2328_v35, %v2327_v41  ;;  %v46_v41 = vld [vmem:[%s8821_s2 + $0xb8] sm:$0xff]  ;;  %v54_v35 = vld [vmem:[%s8821_s2 + $0xf0] sm:$0xff] }
 0x5bd   :  { %v6241_v33 = vpop.eup %6240  ;;  %v7735_v34 = vmul.f32 %v6239_v39, %v7703_v26  ;;  %v2349_v36 = vrot.slane %v2348_v15, 1  ;;  %v53_v39 = vld [vmem:[%s8821_s2 + $0xe8] sm:$0xff] }
 0x5be   :  { %v6243_v18 = vpop.eup %6242  ;;  %6246 = vrcp.f32 %v2329_v40  ;;  %v7739_v58 = vmul.f32 %v6241_v33, %v7705_v0  ;;  %v47_v40 = vld [vmem:[%s8821_s2 + $0xc0] sm:$0xff] }
 0x5bf   :  { %v2391_v51 = vsel %vm156_vm0, %v7735_v34, 0.0  ;;  %v2379_v6 = vsel %vm156_vm0, %v7735_v34, %v2375_v50  ;;  %v2350_v26 = vadd.f32 %v2349_v36, %v2348_v15  ;;  %v7756_v37 = vmul.f32 %v6243_v18, %v7710_v12  ;;  %v6245_v20 = vpop.eup %6244  ;;  %v48_v15 = vld [vmem:[%s8821_s2 + $0xc8] sm:$0xff]  ;;  %v52_v50 = vld [vmem:[%s8821_s2 + $0xe0] sm:$0xff] }
 0x5c0   :  { %v2376_v29 = vrot.slane %v7739_v58, 4  ;;  %v2441_v45 = vsel %vm156_vm0, %v7739_v58, 0.0  ;;  %v2393_v0 = vadd.f32 %v2392_v32, %v2391_v51  ;;  %2387 = vst [vmem:[%s8823_s4] sm:$0xff] %v2379_v6  ;;  %v7768_v27 = vmul.f32 %v6245_v20, %v7714_v60 }
 0x5c1   :  { %v2442_v14 = vadd.f32 %v2441_v45, %v2440_v25  ;;  %6248 = vrcp.f32 %v2350_v26  ;;  %v2377_v55 = vrot.slane %v7756_v37, 4  ;;  %v2490_v47 = vsel %vm156_vm0, %v7756_v37, 0.0 }
 0x5c2   :  { %v2380_v13 = vsel %vm156_vm0, %v7732_v44, %v2376_v29  ;;  %2394 = vadd.xlane.f32.xlu0 %v2393_v0  ;;  %v2538_v21 = vsel %vm156_vm0, %v7768_v27, 0.0 }
 0x5c3   :  { %2443 = vadd.xlane.f32.xlu2 %v2442_v14  ;;  %2388 = vst [vmem:[%s8823_s4 + $0x8] sm:$0xff] %v2380_v13 }
 0x5c4   :  { %v6247_v3 = vpop.eup %6246 }
 0x5c5   :  { %v7764_v42 = vmul.f32 %v6247_v3, %v7720_v62 }
 0x5c7   :  { %v6249_v12 = vpop.eup %6248  ;;  %v2489_v30 = vsel %vm156_vm0, %v7764_v42, 0.0  ;;  %v2381_v56 = vsel %vm156_vm0, %v7764_v42, %v2377_v55 }
 0x5c8   :  { %v7777_v49 = vmul.f32 %v6249_v12, %v7724_v2  ;;  %v2491_v62 = vadd.f32 %v2490_v47, %v2489_v30  ;;  %2389 = vst [vmem:[%s8823_s4 + $0x10] sm:$0xff] %v2381_v56 }
 0x5ca   :  { %v2378_v60 = vrot.slane %v7777_v49, 4  ;;  %v2539_v63 = vsel %vm156_vm0, %v7777_v49, 0.0 }
 0x5cb   :  { %v2540_v48 = vadd.f32 %v2539_v63, %v2538_v21  ;;  %2492 = vadd.xlane.f32.xlu2 %v2491_v62 }
 0x5cc   :  { %v2382_v59 = vsel %vm156_vm0, %v7768_v27, %v2378_v60 }
 0x5cd   :  { %2541 = vadd.xlane.f32.xlu1 %v2540_v48  ;;  %2390 = vst [vmem:[%s8823_s4 + $0x18] sm:$0xff] %v2382_v59 }
 0x635   :  { %v2395_v31 = vpop.xlane.xlu0 %2394 }
 0x636   :  { %v2444_v2 = vpop.xlane.xlu2 %2443  ;;  %v2396_v16 = vadd.f32 1e-08, %v2395_v31 }
 0x637   :  { %v2445_v38 = vadd.f32 1e-08, %v2444_v2 }
 0x638   :  { %6250 = vrcp.f32 %v2396_v16 }
 0x639   :  { %6252 = vrcp.f32 %v2445_v38 }
 0x63e   :  { %v6251_v46 = vpop.eup %6250  ;;  %v2493_v5 = vpop.xlane.xlu2 %2492 }
 0x63f   :  { %v6253_v43 = vpop.eup %6252  ;;  %v2398_v57 = vmul.f32 %v6251_v46, %v7735_v34  ;;  %v2399_v4 = vmul.f32 %v6251_v46, %v7729_v8  ;;  %v2494_v53 = vadd.f32 1e-08, %v2493_v5  ;;  %v6182_v46 = vld [vmem:[%s8821_s2 + $0x1a0] ss:$0 sm:$0xff] }
 0x640   :  { %v2447_v61 = vmul.f32 %v6253_v43, %v7732_v44  ;;  %v2448_v7 = vmul.f32 %v6253_v43, %v7739_v58  ;;  %v2542_v11 = vpop.xlane.xlu1 %2541 }
 0x641   :  { %v2543_v54 = vadd.f32 1e-08, %v2542_v11  ;;  %6254 = vrcp.f32 %v2494_v53  ;;  %2416 = vmatmul.f32.vlgmr.msra.gmra.mxu3 %v2398_v57  ;;  %2436 = vmatmul.f32.vlgmr.msrb.gmra.mxu0 %v2399_v4 }
 0x642   :  { %2465 = vmatmul.f32.vlgmr.msrb.gmra.mxu1 %v2447_v61  ;;  %2485 = vmatmul.f32.vlgmr.msrb.gmra.mxu2 %v2448_v7  ;;  %v6183_v7 = vld [vmem:[%s8821_s2 + $0x1a8] ss:$0 sm:$0xff] }
 0x643   :  { %6256 = vrcp.f32 %v2543_v54  ;;  %2613 = vmatpush.msra.mxu3 %v7567_v24  ;;  %2679 = vmatpush.msrb.mxu0 %v50_v10  ;;  %v44_v24 = vld [vmem:[%s8821_s2 + $0xa8] sm:$0xff] }
 0x644   :  { %2707 = vmatpush.msrb.mxu1 %v46_v41  ;;  %2742 = vmatpush.msrb.mxu2 %v55_v19 }
 0x645   :  { %2614 = vmatpush.msra.mxu3 %v7574_v9  ;;  %2680 = vmatpush.msrb.mxu0 %v49_v1  ;;  %v43_v9 = vld [vmem:[%s8821_s2 + $0xa0] sm:$0xff] }
 0x646   :  { %2708 = vmatpush.msrb.mxu1 %v45_v17  ;;  %2743 = vmatpush.msrb.mxu2 %v54_v35  ;;  %v66_v35 = vld [vmem:[%s8821_s2 + $0x178] sm:$0xff] }
 0x647   :  { %v6255_v33 = vpop.eup %6254  ;;  %2615 = vmatpush.msra.mxu3 %v7583_v52  ;;  %2681 = vmatpush.msrb.mxu0 %v48_v15  ;;  %v9098_v15 = vmov 0  }
 0x648   :  { %v2496_v36 = vmul.f32 %v6255_v33, %v7764_v42  ;;  %v2497_v18 = vmul.f32 %v6255_v33, %v7756_v37  ;;  %2709 = vmatpush.msrb.mxu1 %v44_v24  ;;  %2744 = vmatpush.msrb.mxu2 %v53_v39  ;;  %v67_v24 = vld [vmem:[%s8821_s2 + $0x180] sm:$0xff] }
 0x649   :  { %v6257_v51 = vpop.eup %6256  ;;  %2616 = vmatpush.msra.mxu3 %v7592_v28  ;;  %2682 = vmatpush.msrb.mxu0 %v47_v40 }
 0x64a   :  { %v2545_v52 = vmul.f32 %v6257_v51, %v7768_v27  ;;  %v2546_v32 = vmul.f32 %v6257_v51, %v7777_v49  ;;  %2710 = vmatpush.msrb.mxu1 %v43_v9  ;;  %2745 = vmatpush.msrb.mxu2 %v52_v50  ;;  %v61_v9 = vld [vmem:[%s8821_s2 + $0x120] sm:$0xff] }
 0x64b   :  { %2514 = vmatmul.f32.vlgmr.msrb.gmra.mxu3 %v2496_v36  ;;  %2534 = vmatmul.f32.vlgmr.msra.gmra.mxu0 %v2497_v18  ;;  %v62_v18 = vld [vmem:[%s8821_s2 + $0x128] sm:$0xff] }
 0x64c   :  { %2563 = vmatmul.f32.vlgmr.msra.gmra.mxu1 %v2545_v52  ;;  %2583 = vmatmul.f32.vlgmr.msra.gmra.mxu2 %v2546_v32  ;;  %v3219_v52 = vld.sshfl [vmem:[#allocation1] sm:$0xff pattern:$0x75316420]  ;;  %v3220_v32 = vld.sshfl [vmem:[#allocation1 + $0x8] sm:$0xff pattern:$0x75316420] }
 0x64d   :  { %5981 = vmatpush.msk.msrb.mxu3 %vm156_vm0, %v7735_v34  ;;  %5983 = vmatpush.msk.msra.mxu0 %vm156_vm0, %v7729_v8 }
 0x64e   :  { %5985 = vmatpush.msk.msra.mxu1 %vm156_vm0, %v7732_v44  ;;  %5987 = vmatpush.msk.msra.mxu2 %vm156_vm0, %v7739_v58 }
 0x6be   :  { %v2437_v25 = vpop.f32.mrf.mxu0 }
 0x6bf   :  { %v2466_v28 = vpop.f32.mrf.mxu1 }
 0x6c4   :  { %v2417_v6 = vpop.f32.mrf.mxu3 }
 0x6c5   :  { %v2486_v26 = vpop.f32.mrf.mxu2  ;;  %v2438_v45 = vadd.f32 %v2437_v25, %v2417_v6  ;;  %v63_v6 = vld [vmem:[%s8821_s2 + $0x130] sm:$0xff] }
 0x6c6   :  { %v2487_v29 = vadd.f32 %v2486_v26, %v2466_v28  ;;  %v9099_v28 = vld [vmem:[#allocation2_spill] sm:$0xff] }
 0x6c7   :  { %5346 = vst [vmem:[#allocation1] ss:$2 sm:$0xff] %v9099_v28 }
 0x6c8   :  { %v2588_v0 = vrot.slane %v2487_v29, 4  ;;  %v2535_v20 = vpop.f32.mrf.mxu0 }
 0x6c9   :  { %v2564_v8 = vpop.f32.mrf.mxu1 }
 0x6ca   :  { %v2593_v14 = vsel %vm156_vm0, %v2438_v45, %v2588_v0 }
 0x6cb   :  { %5973 = vmatmul.msk.f32.vlgmr.msra.gmra.mxu3 %vm781_vm2, %v2593_v14 }
 0x6cc   :  { %5989 = vmatpush.msk.msra.mxu3 %vm156_vm0, %v7764_v42 }
 0x6ce   :  { %v2515_v34 = vpop.f32.mrf.mxu3 }
 0x6cf   :  { %v2584_v44 = vpop.f32.mrf.mxu2  ;;  %v2536_v58 = vadd.f32 %v2535_v20, %v2515_v34 }
 0x6d0   :  { %v2585_v13 = vadd.f32 %v2584_v44, %v2564_v8 }
 0x6d2   :  { %v2591_v3 = vrot.slane %v2585_v13, 4  ;;  %v64_v13 = vld [vmem:[%s8821_s2 + $0x138] sm:$0xff] }
 0x6d4   :  { %v2594_v55 = vsel %vm156_vm0, %v2536_v58, %v2591_v3  ;;  %v3222_v3 = vld.sshfl [vmem:[#allocation1 + $0x18] sm:$0xff pattern:$0x75316420] }
 0x6d5   :  { %5974 = vmatmul.msk.f32.gmra.mxu3 %vm781_vm2, %v2594_v55  ;;  %v3221_v55 = vld.sshfl [vmem:[#allocation1 + $0x10] sm:$0xff pattern:$0x75316420] }
 0x74e   :  { %v2618_v27 = vpop.f32.mrf.mxu3 }
 0x74f   :  { %v2627_v12 = vrot.slane %v2618_v27, 4  ;;  %v2624_v30 = vadd.f32 %v2618_v27, %v7628_v22  ;;  %v9100_v27 = vld [vmem:[#allocation3_spill] sm:$0xff] }
 0x750   :  { %5348 = vst [vmem:[#allocation1 + $0x10] ss:$2 sm:$0xff] %v9100_v27 }
 0x751   :  { %v2629_v47 = vadd.f32 %v2627_v12, %v7628_v22  ;;  %v7860_v42 = vadd.f32 %v7624_v23, %v2624_v30  ;;  %v3223_v12 = vld.sshfl [vmem:[#allocation1 + $0x20] sm:$0xff pattern:$0x75316420] }
 0x752   :  { %v57_v30 = vld [vmem:[%s8821_s2 + $0x100] sm:$0xff] }
 0x753   :  { %v7857_v56 = vadd.f32 %v7624_v23, %v2629_v47  ;;  %9095 = vst [vmem:[#allocation8_spill] sm:$0xff] %v7860_v42  ;;  %v3224_v47 = vld.sshfl [vmem:[#allocation1 + $0x28] sm:$0xff pattern:$0x75316420] }
 0x755   :  { %9094 = vst [vmem:[#allocation10_spill] sm:$0xff] %v7857_v56  ;;  %v2656_v49 = vrot.slane %v7857_v56, 4 }
 0x757   :  { %v2658_v62 = vsel %vm156_vm0, %v7860_v42, %v2656_v49  ;;  %v9101_v49 = vld [vmem:[#allocation4_spill] sm:$0xff]  ;;  %v9167_v42 = vld [vmem:[#allocation101_spill] sm:$0xff] }
 0x758   :  { %v2621_v60 = vpop.f32.mrf.mxu3  ;;  %5977 = vmatmul.msk.f32.vlgmr.msrb.gmra.mxu1 %vm781_vm2, %v2658_v62  ;;  %5350 = vst [vmem:[#allocation1 + $0x20] ss:$2 sm:$0xff] %v9101_v49  ;;  %v68_v62 = vld [vmem:[%s8821_s2 + $0x188] sm:$0xff] }
 0x759   :  { %v2631_v21 = vadd.f32 %v2621_v60, %v7628_v22  ;;  %v2634_v59 = vrot.slane %v2621_v60, 4  ;;  %v58_v60 = vld [vmem:[%s8821_s2 + $0x108] sm:$0xff] }
 0x75b   :  { %v7868_v63 = vadd.f32 %v7624_v23, %v2631_v21  ;;  %v2636_v2 = vadd.f32 %v2634_v59, %v7628_v22  ;;  %v65_v21 = vld [vmem:[%s8821_s2 + $0x170] sm:$0xff]  ;;  %v60_v59 = vld [vmem:[%s8821_s2 + $0x118] sm:$0xff] }
 0x75d   :  { %9096 = vst [vmem:[#allocation27_spill] sm:$0xff] %v7868_v63  ;;  %v2659_v48 = vrot.slane %v7868_v63, 4  ;;  %v7880_v16 = vadd.f32 %v7624_v23, %v2636_v2 }
 0x75f   :  { %v2661_v31 = vsel %vm156_vm0, %v7857_v56, %v2659_v48  ;;  %9097 = vst [vmem:[#allocation7_spill] sm:$0xff] %v7880_v16  ;;  %v59_v48 = vld [vmem:[%s8821_s2 + $0x110] sm:$0xff]  ;;  %v9168_v56 = vld [vmem:[#allocation102_spill] sm:$0xff] }
 0x760   :  { %5975 = vmatmul.msk.f32.vlgmr.msrb.gmra.mxu0 %vm781_vm2, %v2661_v31  ;;  %5978 = vmatmul.msk.f32.gmra.mxu1 %vm781_vm2, %v7868_v63  ;;  %v9169_v63 = vld [vmem:[#allocation98_spill] sm:$0xff] }
 0x761   :  { %5991 = vmatpush.msk.msrb.mxu0 %vm156_vm0, %v7756_v37 }
 0x768   :  { %5976 = vmatmul.msk.f32.gmra.mxu0 %vm781_vm2, %v7880_v16  ;;  %v9170_v16 = vld [vmem:[#allocation99_spill] sm:$0xff] }
 0x7d5   :  { %v2712_v38 = vpop.f32.mrf.mxu1 }
 0x7dd   :  { %v2684_v5 = vpop.f32.mrf.mxu0  ;;  %v2715_v37 = vpop.f32.mrf.mxu1 }
 0x7de   :  { %v2713_v43 = vadd.f32 %v2712_v38, %v2684_v5 }
 0x7e0   :  { %v2719_v57 = vadd.f32 %v6182_v46, %v2713_v43 }
 0x7e2   :  { %v2721_v4 = vmax.f32 %v2719_v57, 0.0 }
 0x7e4   :  { %5979 = vmatmul.msk.f32.vlgmr.msrb.gmra.mxu2 %vm781_vm2, %v2721_v4 }
 0x7e5   :  { %v2687_v53 = vpop.f32.mrf.mxu0 }
 0x7e6   :  { %v2716_v22 = vadd.f32 %v2715_v37, %v2687_v53 }
 0x7e8   :  { %v2720_v61 = vadd.f32 %v6182_v46, %v2716_v22 }
 0x7ea   :  { %v2722_v23 = vmax.f32 %v2720_v61, 0.0 }
 0x7ec   :  { %5980 = vmatmul.msk.f32.gmra.mxu2 %vm781_vm2, %v2722_v23 }
 0x867   :  { %v2747_v11 = vpop.f32.mrf.mxu2 }
 0x868   :  { %v2748_v10 = vadd.f32 %v6183_v7, %v2747_v11 }
 0x86a   :  { %v2753_v54 = vmul.f32 20.0, %v2748_v10 }
 0x86c   :  { %2755 = vxpose.xlu2.b32.start.end [1/1] (short) (narrow) %v2753_v54, 8  ;;  %v2835_v41 = vrot.slane %v2753_v54, 4 }
 0x86e   :  { %2837 = vxpose.xlu0.b32.start.end [1/1] (short) (narrow) %v2835_v41, 8 }
 0x86f   :  { %v2750_v19 = vpop.f32.mrf.mxu2 }
 0x870   :  { %v2751_v1 = vadd.f32 %v6183_v7, %v2750_v19 }
 0x872   :  { %v2754_v17 = vmul.f32 20.0, %v2751_v1 }
 0x874   :  { %2916 = vxpose.xlu1.b32.start.end [1/1] (short) (narrow) %v2754_v17, 8 }
 0x8ce   :  { %3430 = vperm.xlu1 %6179, %v66_v35   ;;  %6180 = vset.pattern.permute.xlu2 %v9098_v15 }
 0x8d5   :  { %3440 = vperm.xlu2 %6180, %v68_v62  }
 0x8dc   :  { %3435 = vperm.xlu0 %6178, %v67_v24  }
 0x8dd   :  { %3425 = vperm.xlu2 %6180, %v65_v21  }
 0x905   :  { %v2771_v39 = vpop.trf.xlu2 }
 0x906   :  { %5982 = vmatmul.msk.f32.vlgmr.msrb.gmra.mxu3 %vm143_vm1, %v2771_v39  ;;  %5984 = vmatmul.msk.f32.vlgmr.msra.gmra.mxu0 %vm143_vm1, %v2771_v39 }
 0x912   :  { %v2853_v40 = vpop.trf.xlu0 }
 0x913   :  { %5986 = vmatmul.msk.f32.vlgmr.msra.gmra.mxu1 %vm143_vm1, %v2853_v40  ;;  %5988 = vmatmul.msk.f32.vlgmr.msra.gmra.mxu2 %vm143_vm1, %v2853_v40 }
 0x918   :  { %v2932_v33 = vpop.trf.xlu1 }
 0x919   :  { %5990 = vmatmul.msk.f32.vlgmr.msra.gmra.mxu3 %vm143_vm1, %v2932_v33  ;;  %5992 = vmatmul.msk.f32.vlgmr.msrb.gmra.mxu0 %vm143_vm1, %v2932_v33 }
 0x940   :  { %v8048_v27 = vpop.permute.xlu1 %3430 }
 0x941   :  { %9104 = vst [vmem:[#allocation23_spill] sm:$0xff] %v8048_v27 }
 0x983   :  { %v2831_v50 = vpop.f32.mrf.mxu0 }
 0x984   :  { %5998 = vmatpush.msk.msrb.mxu2 %vm3005_vm3, %v2831_v50  ;;  %v3001_v26 = vrot.slane %v2831_v50, 6 }
 0x985   :  { %5999 = vmatmul.msk.f32.vlgmr.msrb.gmra.mxu2 %vm3015_vm4, %v61_v9 }
 0x989   :  { %v2811_v36 = vpop.f32.mrf.mxu3 }
 0x98a   :  { %5993 = vmatpush.msk.msrb.mxu1 %vm3005_vm3, %v2811_v36  ;;  %v3006_v14 = vsel %vm3005_vm3, %v2811_v36, %v3001_v26 }
 0x98b   :  { %5994 = vmatmul.msk.f32.vlgmr.msrb.gmra.mxu1 %vm3015_vm4, %v61_v9 }
 0x98d   :  { %6000 = vmatmul.msk.f32.gmra.mxu2 %vm3015_vm4, %v62_v18 }
 0x990   :  { %v2893_v51 = vpop.f32.mrf.mxu1 }
 0x991   :  { %6003 = vmatpush.msk.msrb.mxu3 %vm3005_vm3, %v2893_v51  ;;  %v3002_v45 = vrot.slane %v2893_v51, 4 }
 0x992   :  { %6004 = vmatmul.msk.f32.vlgmr.msrb.gmra.mxu3 %vm3015_vm4, %v61_v9 }
 0x993   :  { %5995 = vmatmul.msk.f32.gmra.mxu1 %vm3015_vm4, %v62_v18  ;;  %6023 = vmatpush.msk.msra.mxu3 %vm156_vm0, %v3219_v52 }
 0x995   :  { %6001 = vmatmul.msk.f32.gmra.mxu2 %vm3015_vm4, %v63_v6  ;;  %6043 = vmatpush.msk.msrb.mxu3 %vm156_vm0, %v3223_v12 }
 0x996   :  { %v2913_v29 = vpop.f32.mrf.mxu2  ;;  %v2992_v25 = vpop.f32.mrf.mxu0 }
 0x997   :  { %v3003_v0 = vrot.slane %v2913_v29, 2  ;;  %6008 = vmatpush.msk.msra.mxu0 %vm3005_vm3, %v2913_v29  ;;  %6018 = vmatpush.msk.msra.mxu2 %vm3005_vm3, %v2992_v25  ;;  %v3004_v34 = vrot.slane %v2992_v25, 6 }
 0x998   :  { %6009 = vmatmul.msk.f32.vlgmr.msra.gmra.mxu0 %vm3015_vm4, %v61_v9 }
 0x999   :  { %v3008_v8 = vsel %vm3007_vm5, %v3002_v45, %v3003_v0  ;;  %6028 = vmatpush.msk.msrb.mxu0 %vm156_vm0, %v3220_v32  ;;  %6038 = vmatpush.msk.msrb.mxu2 %vm156_vm0, %v3222_v3 }
 0x99a   :  { %v3009_v44 = vsel %vm156_vm0, %v3006_v14, %v3008_v8  ;;  %6005 = vmatmul.msk.f32.gmra.mxu3 %vm3015_vm4, %v62_v18  ;;  %v8042_v14 = vpop.permute.xlu0 %3435 }
 0x99b   :  { %5996 = vmatmul.msk.f32.gmra.mxu1 %vm3015_vm4, %v63_v6  ;;  %3013 = vst [vmem:[%s8824_s5] sm:$0xff] %v3009_v44  ;;  %6048 = vmatpush.msk.msra.mxu0 %vm156_vm0, %v3224_v47 }
 0x99c   :  { %v2972_v20 = vpop.f32.mrf.mxu3  ;;  %9103 = vst [vmem:[#allocation6_spill] sm:$0xff] %v8042_v14 }
 0x99d   :  { %6002 = vmatmul.msk.f32.gmra.mxu2 %vm3015_vm4, %v64_v13  ;;  %v3010_v58 = vsel %vm3005_vm3, %v2972_v20, %v3004_v34  ;;  %6013 = vmatpush.msk.msra.mxu1 %vm3005_vm3, %v2972_v20 }
 0x99e   :  { %3014 = vst [vmem:[%s8824_s5 + $0x8] sm:$0xf] %v3010_v58 }
 0x99f   :  { %6033 = vmatpush.msk.msrb.mxu1 %vm156_vm0, %v3221_v55 }
 0x9a0   :  { %6010 = vmatmul.msk.f32.gmra.mxu0 %vm3015_vm4, %v62_v18 }
 0x9a2   :  { %6006 = vmatmul.msk.f32.gmra.mxu3 %vm3015_vm4, %v63_v6 }
 0x9a3   :  { %5997 = vmatmul.msk.f32.gmra.mxu1 %vm3015_vm4, %v64_v13 }
 0x9a5   :  { %6019 = vmatmul.msk.f32.vlgmr.msra.gmra.mxu2 %vm3015_vm4, %v61_v9 }
 0x9a8   :  { %6011 = vmatmul.msk.f32.gmra.mxu0 %vm3015_vm4, %v63_v6 }
 0x9aa   :  { %6007 = vmatmul.msk.f32.gmra.mxu3 %vm3015_vm4, %v64_v13 }
 0x9ab   :  { %6014 = vmatmul.msk.f32.vlgmr.msra.gmra.mxu1 %vm3015_vm4, %v61_v9 }
 0x9ad   :  { %6020 = vmatmul.msk.f32.gmra.mxu2 %vm3015_vm4, %v62_v18 }
 0x9b0   :  { %6012 = vmatmul.msk.f32.gmra.mxu0 %vm3015_vm4, %v64_v13 }
 0x9b2   :  { %6024 = vmatmul.msk.f32.vlgmr.msra.gmra.mxu3 %vm143_vm1, %v57_v30 }
 0x9b3   :  { %6015 = vmatmul.msk.f32.gmra.mxu1 %vm3015_vm4, %v62_v18  ;;  %v8040_v18 = vpop.permute.xlu2 %3440 }
 0x9b4   :  { %9102 = vst [vmem:[#allocation9_spill] sm:$0xff] %v8040_v18 }
 0x9b5   :  { %6021 = vmatmul.msk.f32.gmra.mxu2 %vm3015_vm4, %v63_v6 }
 0x9b8   :  { %6029 = vmatmul.msk.f32.vlgmr.msrb.gmra.mxu0 %vm143_vm1, %v57_v30 }
 0x9ba   :  { %6025 = vmatmul.msk.f32.gmra.mxu3 %vm143_vm1, %v58_v60 }
 0x9bb   :  { %6016 = vmatmul.msk.f32.gmra.mxu1 %vm3015_vm4, %v63_v6  ;;  %v8050_v12 = vpop.permute.xlu2 %3425 }
 0x9bc   :  { %9105 = vst [vmem:[#allocation34_spill] sm:$0xff] %v8050_v12 }
 0x9bd   :  { %6022 = vmatmul.msk.f32.gmra.mxu2 %vm3015_vm4, %v64_v13 }
 0x9c0   :  { %6030 = vmatmul.msk.f32.gmra.mxu0 %vm143_vm1, %v58_v60 }
 0x9c2   :  { %6026 = vmatmul.msk.f32.gmra.mxu3 %vm143_vm1, %v59_v48 }
 0x9c3   :  { %6017 = vmatmul.msk.f32.gmra.mxu1 %vm3015_vm4, %v64_v13 }
 0x9c5   :  { %6039 = vmatmul.msk.f32.vlgmr.msrb.gmra.mxu2 %vm143_vm1, %v57_v30 }
 0x9c8   :  { %6031 = vmatmul.msk.f32.gmra.mxu0 %vm143_vm1, %v59_v48 }
 0x9ca   :  { %6027 = vmatmul.msk.f32.gmra.mxu3 %vm143_vm1, %v60_v59 }
 0x9cb   :  { %6034 = vmatmul.msk.f32.vlgmr.msrb.gmra.mxu1 %vm143_vm1, %v57_v30 }
 0x9cd   :  { %6040 = vmatmul.msk.f32.gmra.mxu2 %vm143_vm1, %v58_v60 }
 0x9d0   :  { %6032 = vmatmul.msk.f32.gmra.mxu0 %vm143_vm1, %v60_v59 }
 0x9d2   :  { %6044 = vmatmul.msk.f32.vlgmr.msrb.gmra.mxu3 %vm143_vm1, %v57_v30 }
 0x9d3   :  { %6035 = vmatmul.msk.f32.gmra.mxu1 %vm143_vm1, %v58_v60 }
 0x9d5   :  { %6041 = vmatmul.msk.f32.gmra.mxu2 %vm143_vm1, %v59_v48 }
 0x9d8   :  { %6049 = vmatmul.msk.f32.vlgmr.msra.gmra.mxu0 %vm143_vm1, %v57_v30 }
 0x9da   :  { %6045 = vmatmul.msk.f32.gmra.mxu3 %vm143_vm1, %v58_v60 }
 0x9db   :  { %6036 = vmatmul.msk.f32.gmra.mxu1 %vm143_vm1, %v59_v48 }
 0x9dd   :  { %6042 = vmatmul.msk.f32.gmra.mxu2 %vm143_vm1, %v60_v59 }
 0x9e0   :  { %6050 = vmatmul.msk.f32.gmra.mxu0 %vm143_vm1, %v58_v60 }
 0x9e2   :  { %6046 = vmatmul.msk.f32.gmra.mxu3 %vm143_vm1, %v59_v48 }
 0x9e3   :  { %6037 = vmatmul.msk.f32.gmra.mxu1 %vm143_vm1, %v60_v59 }
 0x9e8   :  { %6051 = vmatmul.msk.f32.gmra.mxu0 %vm143_vm1, %v59_v48 }
 0x9ea   :  { %6047 = vmatmul.msk.f32.gmra.mxu3 %vm143_vm1, %v60_v59 }
 0x9f0   :  { %6052 = vmatmul.msk.f32.gmra.mxu0 %vm143_vm1, %v60_v59 }
 0xa08   :  { %v3057_v31 = vpop.f32.mrf.mxu1  ;;  %v3086_v2 = vpop.f32.mrf.mxu2 }
 0xa10   :  { %v3060_v38 = vpop.f32.mrf.mxu1  ;;  %v3089_v46 = vpop.f32.mrf.mxu2 }
 0xa15   :  { %v8008_v5 = vpop.f32.mrf.mxu3  ;;  %v8010_v43 = vpop.f32.mrf.mxu0 }
 0xa18   :  { %v3063_v57 = vpop.f32.mrf.mxu1  ;;  %v3092_v4 = vpop.f32.mrf.mxu2 }
 0xa1d   :  { %v8012_v37 = vpop.f32.mrf.mxu3  ;;  %v8014_v53 = vpop.f32.mrf.mxu0 }
 0xa20   :  { %v3066_v22 = vpop.f32.mrf.mxu1  ;;  %v3095_v61 = vpop.f32.mrf.mxu2 }
 0xa25   :  { %v8016_v23 = vpop.f32.mrf.mxu3  ;;  %v8018_v7 = vpop.f32.mrf.mxu0 }
 0xa28   :  { %v8020_v11 = vpop.f32.mrf.mxu1  ;;  %v8022_v10 = vpop.f32.mrf.mxu2 }
 0xa2d   :  { %v8024_v54 = vpop.f32.mrf.mxu3  ;;  %v8026_v41 = vpop.f32.mrf.mxu0 }
 0xa30   :  { %v8028_v19 = vpop.f32.mrf.mxu1  ;;  %v8030_v1 = vpop.f32.mrf.mxu2 }
 0xa35   :  { %v3266_v17 = vpop.f32.mrf.mxu3  ;;  %v3295_v35 = vpop.f32.mrf.mxu0 }
 0xa36   :  { %v3267_v8 = vadd.f32 %v3266_v17, %v3057_v31  ;;  %v3296_v34 = vadd.f32 %v3295_v35, %v3086_v2  ;;  %v8063_v17 = vld [vmem:[%s8821_s2 + $0x140] sm:$0xf] }
 0xa38   :  { %v8032_v15 = vpop.f32.mrf.mxu1  ;;  %v8034_v24 = vpop.f32.mrf.mxu2  ;;  %v3443_v48 = vadd.f32 %v8050_v12, %v3267_v8  ;;  %v3444_v59 = vadd.f32 %v8050_v12, %v3296_v34 }
 0xa3d   :  { %v3269_v39 = vpop.f32.mrf.mxu3  ;;  %v3298_v40 = vpop.f32.mrf.mxu0 }
 0xa3e   :  { %v3270_v29 = vadd.f32 %v3269_v39, %v3060_v38  ;;  %v3299_v25 = vadd.f32 %v3298_v40, %v3089_v46 }
 0xa40   :  { %v8036_v33 = vpop.f32.mrf.mxu1  ;;  %v8038_v9 = vpop.f32.mrf.mxu2  ;;  %v3449_v30 = vadd.f32 %v8048_v27, %v3270_v29  ;;  %v3450_v47 = vadd.f32 %v8048_v27, %v3299_v25 }
 0xa42   :  { %v3473_v38 = vmax.f32 %v3449_v30, 0.0  ;;  %v3474_v46 = vmax.f32 %v3450_v47, 0.0 }
 0xa45   :  { %v3272_v50 = vpop.f32.mrf.mxu3  ;;  %v3301_v36 = vpop.f32.mrf.mxu0 }
 0xa46   :  { %v3273_v32 = vadd.f32 %v3272_v50, %v3063_v57  ;;  %v3302_v28 = vadd.f32 %v3301_v36, %v3092_v4 }
 0xa48   :  { %v3324_v51 = vpop.f32.mrf.mxu1  ;;  %v3353_v52 = vpop.f32.mrf.mxu2  ;;  %v3455_v44 = vadd.f32 %v8042_v14, %v3273_v32  ;;  %v3456_v13 = vadd.f32 %v8042_v14, %v3302_v28 }
 0xa49   :  { %v3325_v25 = vadd.f32 %v3324_v51, %v8008_v5 }
 0xa4a   :  { %v3479_v60 = vmax.f32 %v3455_v44, 0.0  ;;  %v3480_v21 = vmax.f32 %v3456_v13, 0.0 }
 0xa4b   :  { %v3445_v5 = vadd.f32 %v8050_v12, %v3325_v25  ;;  %v9117_v25 = vld [vmem:[#allocation49_spill] sm:$0xff] }
 0xa4d   :  { %v3275_v6 = vpop.f32.mrf.mxu3  ;;  %v3304_v26 = vpop.f32.mrf.mxu0 }
 0xa4e   :  { %v3276_v45 = vadd.f32 %v3275_v6, %v3066_v22  ;;  %v3305_v0 = vadd.f32 %v3304_v26, %v3095_v61  ;;  %v3467_v22 = vmax.f32 %v3443_v48, 0.0  ;;  %v3468_v61 = vmax.f32 %v3444_v59, 0.0  ;;  %v9107_v48 = vld [vmem:[#allocation69_spill] sm:$0xff] }
 0xa50   :  { %v3461_v20 = vadd.f32 %v8040_v18, %v3276_v45  ;;  %v3462_v58 = vadd.f32 %v8040_v18, %v3305_v0  ;;  %v3327_v3 = vpop.f32.mrf.mxu1  ;;  %v3356_v55 = vpop.f32.mrf.mxu2  ;;  %v3354_v45 = vadd.f32 %v3353_v52, %v8010_v43 }
 0xa51   :  { %v3328_v28 = vadd.f32 %v3327_v3, %v8012_v37  ;;  %v3357_v6 = vadd.f32 %v3356_v55, %v8014_v53 }
 0xa52   :  { %v3485_v49 = vmax.f32 %v3461_v20, 0.0  ;;  %v3486_v62 = vmax.f32 %v3462_v58, 0.0  ;;  %v3446_v43 = vadd.f32 %v8050_v12, %v3354_v45  ;;  %v3469_v58 = vmax.f32 %v3445_v5, 0.0  ;;  %v9118_v45 = vld [vmem:[#allocation91_spill] sm:$0xff] }
 0xa53   :  { %v3451_v37 = vadd.f32 %v8048_v27, %v3328_v28  ;;  %v3452_v53 = vadd.f32 %v8048_v27, %v3357_v6  ;;  %v9115_v28 = vld [vmem:[#allocation94_spill] sm:$0xff]  ;;  %v9127_v5 = vld [vmem:[#allocation67_spill] sm:$0xff] }
 0xa54   :  { %3511 = vmatpush.msra.mxu1 %v3485_v49  ;;  %3531 = vmatpush.msra.mxu2 %v3486_v62  ;;  %v3470_v3 = vmax.f32 %v3446_v43, 0.0  ;;  %v9116_v6 = vld [vmem:[#allocation70_spill] sm:$0xff]  ;;  %v9128_v43 = vld [vmem:[#allocation68_spill] sm:$0xff] }
 0xa55   :  { %v8056_v31 = vpop.f32.mrf.mxu3  ;;  %v8058_v2 = vpop.f32.mrf.mxu0  ;;  %v3475_v13 = vmax.f32 %v3451_v37, 0.0  ;;  %v3476_v20 = vmax.f32 %v3452_v53, 0.0  ;;  %v9121_v37 = vld [vmem:[#allocation71_spill] sm:$0xff]  ;;  %v9122_v53 = vld [vmem:[#allocation72_spill] sm:$0xff] }
 0xa56   :  { %3512 = vmatpush.msra.mxu1 %v3479_v60  ;;  %3532 = vmatpush.msra.mxu2 %v3480_v21  ;;  %v9106_v21 = vld [vmem:[#allocation32_spill] sm:$0xff] }
 0xa58   :  { %v3330_v57 = vpop.f32.mrf.mxu1  ;;  %v3359_v4 = vpop.f32.mrf.mxu2  ;;  %3513 = vmatpush.msra.mxu1 %v3473_v38  ;;  %3533 = vmatpush.msra.mxu2 %v3474_v46  ;;  %v9108_v46 = vld [vmem:[#allocation29_spill] sm:$0xff] }
 0xa59   :  { %v3331_v40 = vadd.f32 %v3330_v57, %v8016_v23  ;;  %v3360_v50 = vadd.f32 %v3359_v4, %v8018_v7  ;;  %v9109_v57 = vld [vmem:[#allocation65_spill] sm:$0xff]  ;;  %v3383_v4 = vadd.f32 %v8056_v31, %v8020_v11 }
 0xa5a   :  { %3514 = vmatpush.msra.mxu1 %v3467_v22  ;;  %3534 = vmatpush.msra.mxu2 %v3468_v61  ;;  %v9110_v61 = vld [vmem:[#allocation25_spill] sm:$0xff] }
 0xa5b   :  { %6053 = vmatmul.msk.f32.vlgmr.msra.gmra.mxu1 %vm781_vm2, %v8063_v17  ;;  %6054 = vmatmul.msk.f32.vlgmr.msra.gmra.mxu2 %vm781_vm2, %v8063_v17  ;;  %v3457_v0 = vadd.f32 %v8042_v14, %v3331_v40  ;;  %v3458_v23 = vadd.f32 %v8042_v14, %v3360_v50  ;;  %v9112_v50 = vld [vmem:[#allocation21_spill] sm:$0xff] }
 0xa5d   :  { %v3385_v35 = vpop.f32.mrf.mxu3  ;;  %v3414_v39 = vpop.f32.mrf.mxu0  ;;  %v3481_v51 = vmax.f32 %v3457_v0, 0.0  ;;  %v3482_v52 = vmax.f32 %v3458_v23, 0.0 }
 0xa60   :  { %v3333_v36 = vpop.f32.mrf.mxu1  ;;  %v3362_v32 = vpop.f32.mrf.mxu2 }
 0xa61   :  { %v3334_v26 = vadd.f32 %v3333_v36, %v8024_v54  ;;  %v3363_v29 = vadd.f32 %v3362_v32, %v8026_v41  ;;  %v9113_v36 = vld [vmem:[#allocation56_spill] sm:$0xff]  ;;  %v9114_v32 = vld [vmem:[#allocation53_spill] sm:$0xff] }
 0xa63   :  { %v3463_v7 = vadd.f32 %v8040_v18, %v3334_v26  ;;  %v3464_v8 = vadd.f32 %v8040_v18, %v3363_v29 }
 0xa65   :  { %v3487_v34 = vmax.f32 %v3463_v7, 0.0  ;;  %v3488_v54 = vmax.f32 %v3464_v8, 0.0  ;;  %v3388_v44 = vpop.f32.mrf.mxu3  ;;  %v3417_v41 = vpop.f32.mrf.mxu0  ;;  %v9119_v7 = vld [vmem:[#allocation45_spill] sm:$0xff]  ;;  %v9120_v8 = vld [vmem:[#allocation88_spill] sm:$0xff] }
 0xa66   :  { %v3389_v55 = vadd.f32 %v3388_v44, %v8032_v15  ;;  %v3418_v30 = vadd.f32 %v3417_v41, %v8034_v24  ;;  %v3386_v15 = vadd.f32 %v3385_v35, %v8028_v19  ;;  %v3415_v24 = vadd.f32 %v3414_v39, %v8030_v1  ;;  %v9111_v35 = vld [vmem:[#allocation61_spill] sm:$0xff]  ;;  %v9125_v44 = vld [vmem:[#allocation39_spill] sm:$0xff]  ;;  %v9126_v41 = vld [vmem:[#allocation82_spill] sm:$0xff] }
 0xa67   :  { %3551 = vmatpush.msra.mxu3 %v3487_v34  ;;  %3571 = vmatpush.msrb.mxu0 %v3488_v54  ;;  %v3412_v19 = vadd.f32 %v8058_v2, %v8022_v10  ;;  %v3447_v10 = vadd.f32 %v8050_v12, %v3383_v4  ;;  %v9123_v34 = vld [vmem:[#allocation41_spill] sm:$0xff]  ;;  %v9148_v4 = vld [vmem:[#allocation84_spill] sm:$0xff] }
 0xa68   :  { %v3460_v38 = vadd.f32 %v8042_v14, %v3418_v30  ;;  %v3453_v39 = vadd.f32 %v8048_v27, %v3386_v15  ;;  %v3454_v40 = vadd.f32 %v8048_v27, %v3415_v24  ;;  %v9124_v54 = vld [vmem:[#allocation85_spill] sm:$0xff]  ;;  %v9137_v30 = vld [vmem:[#allocation92_spill] sm:$0xff]  ;;  %v9142_v15 = vld [vmem:[#allocation90_spill] sm:$0xff] }
 0xa69   :  { %3552 = vmatpush.msra.mxu3 %v3481_v51  ;;  %3572 = vmatpush.msrb.mxu0 %v3482_v52  ;;  %v3448_v2 = vadd.f32 %v8050_v12, %v3412_v19  ;;  %v3471_v0 = vmax.f32 %v3447_v10, 0.0  ;;  %v9130_v51 = vld [vmem:[#allocation63_spill] sm:$0xff]  ;;  %v9131_v52 = vld [vmem:[#allocation38_spill] sm:$0xff]  ;;  %v9164_v27 = vld [vmem:[#allocation108_spill] sm:$0xff] }
 0xa6a   :  { %v3484_v31 = vmax.f32 %v3460_v38, 0.0  ;;  %v3477_v26 = vmax.f32 %v3453_v39, 0.0  ;;  %v3478_v29 = vmax.f32 %v3454_v40, 0.0  ;;  %v9143_v24 = vld [vmem:[#allocation86_spill] sm:$0xff]  ;;  %v9147_v38 = vld [vmem:[#allocation83_spill] sm:$0xff]  ;;  %v9152_v39 = vld [vmem:[#allocation81_spill] sm:$0xff] }
 0xa6b   :  { %3553 = vmatpush.msra.mxu3 %v3475_v13  ;;  %3573 = vmatpush.msrb.mxu0 %v3476_v20  ;;  %v3472_v23 = vmax.f32 %v3448_v2, 0.0  ;;  %v9132_v13 = vld [vmem:[#allocation79_spill] sm:$0xff]  ;;  %v9133_v20 = vld [vmem:[#allocation58_spill] sm:$0xff]  ;;  %v9153_v40 = vld [vmem:[#allocation64_spill] sm:$0xff] }
 0xa6c   :  { %v9149_v19 = vld [vmem:[#allocation66_spill] sm:$0xff]  ;;  %v9157_v2 = vld [vmem:[#allocation60_spill] sm:$0xff]  ;;  %v9163_v12 = vld [vmem:[#allocation107_spill] sm:$0xff] }
 0xa6d   :  { %v3391_v47 = vpop.f32.mrf.mxu3  ;;  %v3420_v49 = vpop.f32.mrf.mxu0  ;;  %3554 = vmatpush.msra.mxu3 %v3469_v58  ;;  %3574 = vmatpush.msrb.mxu0 %v3470_v3  ;;  %v9134_v58 = vld [vmem:[#allocation59_spill] sm:$0xff]  ;;  %v9156_v10 = vld [vmem:[#allocation78_spill] sm:$0xff] }
 0xa6e   :  { %v3392_v62 = vadd.f32 %v3391_v47, %v8036_v33  ;;  %v3421_v60 = vadd.f32 %v3420_v49, %v8038_v9  ;;  %6055 = vmatmul.msk.f32.vlgmr.msra.gmra.mxu3 %vm781_vm2, %v8063_v17  ;;  %6056 = vmatmul.msk.f32.vlgmr.msrb.gmra.mxu0 %vm781_vm2, %v8063_v17  ;;  %v3459_v9 = vadd.f32 %v8042_v14, %v3389_v55  ;;  %v9135_v3 = vld [vmem:[#allocation95_spill] sm:$0xff]  ;;  %v9136_v55 = vld [vmem:[#allocation96_spill] sm:$0xff]  ;;  %v9138_v47 = vld [vmem:[#allocation93_spill] sm:$0xff] }
 0xa6f   :  { %3649 = vmatpush.msrb.mxu3 %v9106_v21  ;;  %3669 = vmatpush.msra.mxu0 %v9107_v48  ;;  %v9139_v49 = vld [vmem:[#allocation37_spill] sm:$0xff] }
 0xa70   :  { %v3465_v59 = vadd.f32 %v8040_v18, %v3392_v62  ;;  %v3466_v33 = vadd.f32 %v8040_v18, %v3421_v60  ;;  %v3483_v11 = vmax.f32 %v3459_v9, 0.0  ;;  %v9140_v62 = vld [vmem:[#allocation76_spill] sm:$0xff]  ;;  %v9141_v60 = vld [vmem:[#allocation89_spill] sm:$0xff] }
 0xa71   :  { %3650 = vmatpush.msrb.mxu3 %v9108_v46  ;;  %3670 = vmatpush.msra.mxu0 %v9109_v57  ;;  %v9146_v9 = vld [vmem:[#allocation73_spill] sm:$0xff]  ;;  %v9165_v18 = vld [vmem:[#allocation104_spill] sm:$0xff] }
 0xa72   :  { %v3489_v22 = vmax.f32 %v3465_v59, 0.0  ;;  %v3490_v1 = vmax.f32 %v3466_v33, 0.0  ;;  %v9144_v59 = vld [vmem:[#allocation87_spill] sm:$0xff]  ;;  %v9166_v14 = vld [vmem:[#allocation105_spill] sm:$0xff] }
 0xa73   :  { %3651 = vmatpush.msrb.mxu3 %v9110_v61  ;;  %3671 = vmatpush.msra.mxu0 %v9111_v35  ;;  %v9145_v33 = vld [vmem:[#allocation35_spill] sm:$0xff] }
 0xa74   :  { %3591 = vmatpush.msrb.mxu1 %v3489_v22  ;;  %3611 = vmatpush.msrb.mxu2 %v3490_v1  ;;  %v9150_v22 = vld [vmem:[#allocation106_spill] sm:$0xff]  ;;  %v9151_v1 = vld [vmem:[#allocation80_spill] sm:$0xff] }
 0xa75   :  { %3652 = vmatpush.msrb.mxu3 %v9112_v50  ;;  %3672 = vmatpush.msra.mxu0 %v9113_v36 }
 0xa76   :  { %3592 = vmatpush.msrb.mxu1 %v3483_v11  ;;  %3612 = vmatpush.msrb.mxu2 %v3484_v31  ;;  %v9154_v11 = vld [vmem:[#allocation103_spill] sm:$0xff]  ;;  %v9155_v31 = vld [vmem:[#allocation77_spill] sm:$0xff] }
 0xa77   :  { %3729 = vmatpush.msra.mxu3 %v9114_v32  ;;  %3749 = vmatpush.msrb.mxu0 %v9115_v28 }
 0xa78   :  { %6059 = vmatmul.msk.f32.vlgmr.msrb.gmra.mxu3 %vm781_vm2, %v9116_v6  ;;  %6060 = vmatmul.msk.f32.vlgmr.msra.gmra.mxu0 %vm781_vm2, %v9116_v6 }
 0xa79   :  { %3730 = vmatpush.msra.mxu3 %v9117_v25  ;;  %3750 = vmatpush.msrb.mxu0 %v9118_v45 }
 0xa7a   :  { %3593 = vmatpush.msrb.mxu1 %v3477_v26  ;;  %3613 = vmatpush.msrb.mxu2 %v3478_v29  ;;  %v9158_v26 = vld [vmem:[#allocation100_spill] sm:$0xff]  ;;  %v9159_v29 = vld [vmem:[#allocation74_spill] sm:$0xff] }
 0xa7b   :  { %3731 = vmatpush.msra.mxu3 %v9119_v7  ;;  %3751 = vmatpush.msrb.mxu0 %v9120_v8 }
 0xa7c   :  { %3594 = vmatpush.msrb.mxu1 %v3471_v0  ;;  %3614 = vmatpush.msrb.mxu2 %v3472_v23  ;;  %v9160_v0 = vld [vmem:[#allocation75_spill] sm:$0xff]  ;;  %v9162_v23 = vld [vmem:[#allocation97_spill] sm:$0xff] }
 0xa7d   :  { %6057 = vmatmul.msk.f32.vlgmr.msrb.gmra.mxu1 %vm781_vm2, %v8063_v17  ;;  %6058 = vmatmul.msk.f32.vlgmr.msrb.gmra.mxu2 %vm781_vm2, %v8063_v17  ;;  %v9129_v17 = vld [vmem:[#allocation62_spill] sm:$0xff] }
 0xa7e   :  { %3689 = vmatpush.msra.mxu1 %v9121_v37  ;;  %3709 = vmatpush.msra.mxu2 %v9122_v53 }
 0xa7f   :  { %3732 = vmatpush.msra.mxu3 %v9123_v34  ;;  %3752 = vmatpush.msrb.mxu0 %v9124_v54 }
 0xa80   :  { %3690 = vmatpush.msra.mxu1 %v9127_v5  ;;  %3710 = vmatpush.msra.mxu2 %v9128_v43 }
 0xa81   :  { %3996 = vmatpush.xpose.msrb.mxu3 %v9125_v44  ;;  %4016 = vmatpush.xpose.msra.mxu0 %v9126_v41 }
 0xa82   :  { %6063 = vmatmul.msk.f32.vlgmr.msra.gmra.mxu3 %vm781_vm2, %v9116_v6  ;;  %6064 = vmatmul.msk.f32.vlgmr.msrb.gmra.mxu0 %vm781_vm2, %v9116_v6 }
 0xa83   :  { %3691 = vmatpush.msra.mxu1 %v9129_v17  ;;  %3711 = vmatpush.msra.mxu2 %v9130_v51 }
 0xa85   :  { %3997 = vmatpush.xpose.msrb.mxu3 %v9131_v52  ;;  %4017 = vmatpush.xpose.msra.mxu0 %v9132_v13 }
 0xa86   :  { %3692 = vmatpush.msra.mxu1 %v9133_v20  ;;  %3712 = vmatpush.msra.mxu2 %v9134_v58 }
 0xa87   :  { %6061 = vmatmul.msk.f32.vlgmr.msra.gmra.mxu1 %vm781_vm2, %v9116_v6  ;;  %6062 = vmatmul.msk.f32.vlgmr.msra.gmra.mxu2 %vm781_vm2, %v9116_v6 }
 0xa88   :  { %3769 = vmatpush.msrb.mxu1 %v9135_v3  ;;  %3789 = vmatpush.msrb.mxu2 %v9136_v55 }
 0xa89   :  { %3998 = vmatpush.xpose.msrb.mxu3 %v9139_v49  ;;  %4018 = vmatpush.xpose.msra.mxu0 %v9140_v62 }
 0xa8a   :  { %3770 = vmatpush.msrb.mxu1 %v9137_v30  ;;  %3790 = vmatpush.msrb.mxu2 %v9138_v47 }
 0xa8c   :  { %3771 = vmatpush.msrb.mxu1 %v9141_v60  ;;  %3791 = vmatpush.msrb.mxu2 %v9142_v15 }
 0xa8d   :  { %3999 = vmatpush.xpose.msrb.mxu3 %v9145_v33  ;;  %4019 = vmatpush.xpose.msra.mxu0 %v9146_v9 }
 0xa8e   :  { %3772 = vmatpush.msrb.mxu1 %v9143_v24  ;;  %3792 = vmatpush.msrb.mxu2 %v9144_v59 }
 0xa8f   :  { %6065 = vmatmul.msk.f32.vlgmr.msrb.gmra.mxu1 %vm781_vm2, %v9116_v6  ;;  %6066 = vmatmul.msk.f32.vlgmr.msrb.gmra.mxu2 %vm781_vm2, %v9116_v6  ;;  %v9161_v6 = vld [vmem:[#allocation57_spill] sm:$0xff] }
 0xa90   :  { %4036 = vmatpush.xpose.msra.mxu1 %v9147_v38  ;;  %4056 = vmatpush.xpose.msra.mxu2 %v9148_v4 }
 0xa91   :  { %4076 = vmatpush.xpose.msra.mxu3 %v9149_v19  ;;  %4096 = vmatpush.xpose.msrb.mxu0 %v9150_v22 }
 0xa94   :  { %4037 = vmatpush.xpose.msra.mxu1 %v9151_v1  ;;  %4057 = vmatpush.xpose.msra.mxu2 %v9152_v39 }
 0xa95   :  { %4077 = vmatpush.xpose.msra.mxu3 %v9153_v40  ;;  %4097 = vmatpush.xpose.msrb.mxu0 %v9154_v11 }
 0xa98   :  { %4038 = vmatpush.xpose.msra.mxu1 %v9155_v31  ;;  %4058 = vmatpush.xpose.msra.mxu2 %v9156_v10 }
 0xa99   :  { %4078 = vmatpush.xpose.msra.mxu3 %v9157_v2  ;;  %4098 = vmatpush.xpose.msrb.mxu0 %v9158_v26 }
 0xa9c   :  { %4039 = vmatpush.xpose.msra.mxu1 %v9159_v29  ;;  %4059 = vmatpush.xpose.msra.mxu2 %v9160_v0 }
 0xa9d   :  { %4079 = vmatpush.xpose.msra.mxu3 %v9161_v6  ;;  %4099 = vmatpush.xpose.msrb.mxu0 %v9162_v23 }
 0xaa0   :  { %4116 = vmatpush.xpose.msrb.mxu1 %v9163_v12  ;;  %4136 = vmatpush.xpose.msrb.mxu2 %v9164_v27 }
 0xaa4   :  { %4117 = vmatpush.xpose.msrb.mxu1 %v9165_v18  ;;  %4137 = vmatpush.xpose.msrb.mxu2 %v9166_v14 }
 0xaa8   :  { %4118 = vmatpush.xpose.msrb.mxu1 %v9167_v42  ;;  %4138 = vmatpush.xpose.msrb.mxu2 %v9168_v56 }
 0xaac   :  { %4119 = vmatpush.xpose.msrb.mxu1 %v9169_v63  ;;  %4139 = vmatpush.xpose.msrb.mxu2 %v9170_v16 }
 0xad8   :  { %v8193_v6 = vpop.f32.mrf.mxu1 }
 0xad9   :  { %9172 = vst [vmem:[#allocation28_spill] sm:$0xff] %v8193_v6 }
 0xade   :  { %v8197_v40 = vpop.f32.mrf.mxu2 }
 0xadf   :  { %9174 = vst [vmem:[#allocation22_spill] sm:$0xff] %v8197_v40 }
 0xaeb   :  { %v8191_v26 = vpop.f32.mrf.mxu0 }
 0xaec   :  { %9171 = vst [vmem:[#allocation31_spill] sm:$0xff] %v8191_v26 }
 0xaf1   :  { %v8195_v23 = vpop.f32.mrf.mxu3 }
 0xaf2   :  { %9173 = vst [vmem:[#allocation24_spill] sm:$0xff] %v8195_v23 }
 0xaf5   :  { %v3674_v2 = vpop.f32.mrf.mxu0 }
 0xaf6   :  { %v3798_v11 = vmul.f32 0.17677669, %v3674_v2 }
 0xaf8   :  { %v3812_v14 = vsel %vm156_vm0, %v3798_v11, -inf }
 0xaf9   :  { %v3813_v18 = vrot.slane %v3812_v14, 4 }
 0xafa   :  { %v8200_v42 = vpop.f32.mrf.mxu1 }
 0xafb   :  { %9175 = vst [vmem:[#allocation36_spill] sm:$0xff] %v8200_v42  ;;  %v3814_v56 = vmax.f32 %v3812_v14, %v3813_v18  ;;  %v3654_v27 = vpop.f32.mrf.mxu3 }
 0xafc   :  { %v3797_v63 = vmul.f32 0.17677669, %v3654_v27 }
 0xafd   :  { %v3815_v12 = vrot.slane %v3814_v56, 2 }
 0xafe   :  { %v3805_v16 = vsel %vm156_vm0, %v3797_v63, -inf }
 0xaff   :  { %v3816_v26 = vmax.f32 %v3814_v56, %v3815_v12  ;;  %v3806_v22 = vrot.slane %v3805_v16, 4  ;;  %v3754_v6 = vpop.f32.mrf.mxu0 }
 0xb00   :  { %v3802_v19 = vmul.f32 0.17677669, %v3754_v6  ;;  %v8203_v23 = vpop.f32.mrf.mxu2 }
 0xb01   :  { %9176 = vst [vmem:[#allocation33_spill] sm:$0xff] %v8203_v23  ;;  %v3817_v2 = vrot.slane %v3816_v26, 1  ;;  %v3807_v0 = vmax.f32 %v3805_v16, %v3806_v22 }
 0xb02   :  { %v3840_v40 = vsel %vm156_vm0, %v3802_v19, -inf }
 0xb03   :  { %v3818_v29 = vmax.f32 %v3816_v26, %v3817_v2  ;;  %v3808_v9 = vrot.slane %v3807_v0, 2  ;;  %v3841_v33 = vrot.slane %v3840_v40, 4 }
 0xb04   :  { %v3694_v42 = vpop.f32.mrf.mxu1 }
 0xb05   :  { %v3862_v18 = vsub.f32 %v3798_v11, %v3818_v29  ;;  %v3809_v14 = vmax.f32 %v3807_v0, %v3808_v9  ;;  %v3842_v27 = vmax.f32 %v3840_v40, %v3841_v33  ;;  %v3799_v10 = vmul.f32 0.17677669, %v3694_v42  ;;  %v3734_v31 = vpop.f32.mrf.mxu3 }
 0xb06   :  { %v3801_v62 = vmul.f32 0.17677669, %v3734_v31 }
 0xb07   :  { %v3871_v56 = vmul.f32 1.442695, %v3862_v18  ;;  %v3810_v12 = vrot.slane %v3809_v14, 1  ;;  %v3843_v49 = vrot.slane %v3842_v27, 2  ;;  %v3819_v6 = vsel %vm156_vm0, %v3799_v10, -inf }
 0xb08   :  { %v3820_v23 = vrot.slane %v3819_v6, 4  ;;  %v3833_v16 = vsel %vm156_vm0, %v3801_v62, -inf }
 0xb09   :  { %6258 = vpow2.f32 %v3871_v56  ;;  %v3811_v22 = vmax.f32 %v3809_v14, %v3810_v12  ;;  %v3844_v26 = vmax.f32 %v3842_v27, %v3843_v49  ;;  %v3834_v2 = vrot.slane %v3833_v16, 4 }
 0xb0a   :  { %v3821_v39 = vmax.f32 %v3819_v6, %v3820_v23  ;;  %v3714_v1 = vpop.f32.mrf.mxu2 }
 0xb0b   :  { %v3861_v11 = vsub.f32 %v3797_v63, %v3811_v22  ;;  %v3845_v9 = vrot.slane %v3844_v26, 1  ;;  %v3835_v33 = vmax.f32 %v3833_v16, %v3834_v2  ;;  %v3800_v42 = vmul.f32 0.17677669, %v3714_v1 }
 0xb0c   :  { %v3822_v40 = vrot.slane %v3821_v39, 2  ;;  %v3774_v13 = vpop.f32.mrf.mxu1 }
 0xb0d   :  { %v3869_v31 = vmul.f32 1.442695, %v3861_v11  ;;  %v3846_v29 = vmax.f32 %v3844_v26, %v3845_v9  ;;  %v3836_v0 = vrot.slane %v3835_v33, 2  ;;  %v3826_v18 = vsel %vm156_vm0, %v3800_v42, -inf }
 0xb0e   :  { %v3823_v52 = vmax.f32 %v3821_v39, %v3822_v40  ;;  %v3827_v4 = vrot.slane %v3826_v18, 4  ;;  %v3803_v38 = vmul.f32 0.17677669, %v3774_v13 }
 0xb0f   :  { %v8209_v56 = vpop.eup %6258  ;;  %6260 = vpow2.f32 %v3869_v31  ;;  %v3866_v49 = vsub.f32 %v3802_v19, %v3846_v29  ;;  %v3837_v23 = vmax.f32 %v3835_v33, %v3836_v0 }
 0xb10   :  { %v3892_v63 = vsel %vm156_vm0, %v8209_v56, 0.0  ;;  %v3824_v14 = vrot.slane %v3823_v52, 1  ;;  %v3828_v1 = vmax.f32 %v3826_v18, %v3827_v4  ;;  %v3847_v27 = vsel %vm156_vm0, %v3803_v38, -inf }
 0xb11   :  { %v3893_v12 = vrot.slane %v3892_v63, 4  ;;  %v3879_v6 = vmul.f32 1.442695, %v3866_v49  ;;  %v3838_v16 = vrot.slane %v3837_v23, 1  ;;  %v3848_v22 = vrot.slane %v3847_v27, 4 }
 0xb12   :  { %v3825_v26 = vmax.f32 %v3823_v52, %v3824_v14  ;;  %v3829_v39 = vrot.slane %v3828_v1, 2  ;;  %v3794_v11 = vpop.f32.mrf.mxu2 }
 0xb13   :  { %6262 = vpow2.f32 %v3879_v6  ;;  %v3839_v13 = vmax.f32 %v3837_v23, %v3838_v16  ;;  %v3849_v2 = vmax.f32 %v3847_v27, %v3848_v22  ;;  %v3804_v33 = vmul.f32 0.17677669, %v3794_v11 }
 0xb14   :  { %v3863_v9 = vsub.f32 %v3799_v10, %v3825_v26  ;;  %v3830_v19 = vmax.f32 %v3828_v1, %v3829_v39  ;;  %v3894_v31 = vadd.f32 %v3893_v12, %v3892_v63 }
 0xb15   :  { %v8214_v40 = vpop.eup %6260  ;;  %v3865_v29 = vsub.f32 %v3801_v62, %v3839_v13  ;;  %v3850_v4 = vrot.slane %v3849_v2, 2  ;;  %v3854_v52 = vsel %vm156_vm0, %v3804_v33, -inf }
 0xb16   :  { %v3885_v0 = vsel %vm156_vm0, %v8214_v40, 0.0  ;;  %v3873_v18 = vmul.f32 1.442695, %v3863_v9  ;;  %v3831_v49 = vrot.slane %v3830_v19, 1  ;;  %v3855_v10 = vrot.slane %v3854_v52, 4 }
 0xb17   :  { %v3886_v14 = vrot.slane %v3885_v0, 4  ;;  %v3877_v6 = vmul.f32 1.442695, %v3865_v29  ;;  %v3851_v23 = vmax.f32 %v3849_v2, %v3850_v4  ;;  %v3895_v62 = vrot.slane %v3894_v31, 2 }
 0xb18   :  { %6264 = vpow2.f32 %v3873_v18  ;;  %v3832_v27 = vmax.f32 %v3830_v19, %v3831_v49  ;;  %v3856_v26 = vmax.f32 %v3854_v52, %v3855_v10 }
 0xb19   :  { %v8219_v1 = vpop.eup %6262  ;;  %v3887_v16 = vadd.f32 %v3886_v14, %v3885_v0  ;;  %6266 = vpow2.f32 %v3877_v6  ;;  %v3852_v63 = vrot.slane %v3851_v23, 1  ;;  %v3896_v49 = vadd.f32 %v3895_v62, %v3894_v31 }
 0xb1a   :  { %v3920_v12 = vsel %vm156_vm0, %v8219_v1, 0.0  ;;  %v3864_v22 = vsub.f32 %v3800_v42, %v3832_v27  ;;  %v3857_v29 = vrot.slane %v3856_v26, 2 }
 0xb1b   :  { %v3888_v39 = vrot.slane %v3887_v16, 2  ;;  %v3921_v13 = vrot.slane %v3920_v12, 4  ;;  %v3853_v11 = vmax.f32 %v3851_v23, %v3852_v63 }
 0xb1c   :  { %v3875_v9 = vmul.f32 1.442695, %v3864_v22  ;;  %v3858_v0 = vmax.f32 %v3856_v26, %v3857_v29 }
 0xb1d   :  { %v3889_v2 = vadd.f32 %v3888_v39, %v3887_v16  ;;  %v3922_v4 = vadd.f32 %v3921_v13, %v3920_v12  ;;  %v3867_v19 = vsub.f32 %v3803_v38, %v3853_v11  ;;  %v3897_v38 = vrot.slane %v3896_v49, 1 }
 0xb1e   :  { %v8223_v18 = vpop.eup %6264  ;;  %6268 = vpow2.f32 %v3875_v9  ;;  %v3859_v10 = vrot.slane %v3858_v0, 1 }
 0xb1f   :  { %v8225_v14 = vpop.eup %6266  ;;  %v3890_v6 = vrot.slane %v3889_v2, 1  ;;  %v3899_v42 = vsel %vm156_vm0, %v8223_v18, 0.0  ;;  %v3881_v52 = vmul.f32 1.442695, %v3867_v19  ;;  %v3923_v16 = vrot.slane %v3922_v4, 2 }
 0xb20   :  { %v3900_v27 = vrot.slane %v3899_v42, 4  ;;  %v3913_v23 = vsel %vm156_vm0, %v8225_v14, 0.0  ;;  %v3860_v31 = vmax.f32 %v3858_v0, %v3859_v10  ;;  %v3898_v19 = vadd.f32 %v3897_v38, %v3896_v49 }
 0xb21   :  { %v3914_v63 = vrot.slane %v3913_v23, 4  ;;  %6270 = vpow2.f32 %v3881_v52  ;;  %v3891_v62 = vadd.f32 %v3890_v6, %v3889_v2  ;;  %v3924_v11 = vadd.f32 %v3923_v16, %v3922_v4 }
 0xb22   :  { %v3901_v12 = vadd.f32 %v3900_v27, %v3899_v42  ;;  %v3868_v13 = vsub.f32 %v3804_v33, %v3860_v31 }
 0xb23   :  { %v3915_v22 = vadd.f32 %v3914_v63, %v3913_v23  ;;  %6272 = vrcp.f32 %v3891_v62  ;;  %v3925_v2 = vrot.slane %v3924_v11, 1 }
 0xb24   :  { %v6269_v26 = vpop.eup %6268  ;;  %v3902_v39 = vrot.slane %v3901_v12, 2  ;;  %v3883_v59 = vmul.f32 1.442695, %v3868_v13 }
 0xb25   :  { %v3916_v9 = vrot.slane %v3915_v22, 2  ;;  %v3906_v29 = vsel %vm156_vm0, %v6269_v26, 0.0  ;;  %v3926_v63 = vadd.f32 %v3925_v2, %v3924_v11 }
 0xb26   :  { %v3903_v41 = vadd.f32 %v3902_v39, %v3901_v12  ;;  %v3907_v44 = vrot.slane %v3906_v29, 4  ;;  %6274 = vpow2.f32 %v3883_v59 }
 0xb27   :  { %v6271_v15 = vpop.eup %6270  ;;  %v3917_v47 = vadd.f32 %v3916_v9, %v3915_v22  ;;  %6276 = vrcp.f32 %v3898_v19 }
 0xb28   :  { %v3904_v52 = vrot.slane %v3903_v41, 1  ;;  %v3908_v55 = vadd.f32 %v3907_v44, %v3906_v29  ;;  %v3927_v0 = vsel %vm156_vm0, %v6271_v15, 0.0 }
 0xb29   :  { %v3918_v6 = vrot.slane %v3917_v47, 1  ;;  %v3928_v42 = vrot.slane %v3927_v0, 4  ;;  %v6273_v10 = vpop.eup %6272 }
 0xb2a   :  { %v3905_v33 = vadd.f32 %v3904_v52, %v3903_v41  ;;  %v3909_v4 = vrot.slane %v3908_v55, 2  ;;  %v3949_v39 = vmul.f32 %v6273_v10, %v8214_v40 }
 0xb2b   :  { %v3929_v27 = vadd.f32 %v3928_v42, %v3927_v0  ;;  %v3919_v49 = vadd.f32 %v3918_v6, %v3917_v47 }
 0xb2c   :  { %6278 = vrcp.f32 %v3905_v33  ;;  %v3910_v23 = vadd.f32 %v3909_v4, %v3908_v55  ;;  %v6275_v38 = vpop.eup %6274  ;;  %v3957_v19 = vsel %vm156_vm0, %v3949_v39, 0.0 }
 0xb2d   :  { %v3930_v16 = vrot.slane %v3929_v27, 2  ;;  %v3934_v44 = vsel %vm156_vm0, %v6275_v38, 0.0  ;;  %v6277_v62 = vpop.eup %6276  ;;  %6280 = vrcp.f32 %v3919_v49 }
 0xb2e   :  { %v3911_v12 = vrot.slane %v3910_v23, 1  ;;  %v3935_v22 = vrot.slane %v3934_v44, 4  ;;  %6282 = vrcp.f32 %v3926_v63  ;;  %v3950_v55 = vmul.f32 %v6277_v62, %v8209_v56 }
 0xb2f   :  { %v3931_v31 = vadd.f32 %v3930_v16, %v3929_v27 }
 0xb30   :  { %v3912_v59 = vadd.f32 %v3911_v12, %v3910_v23  ;;  %v3936_v47 = vadd.f32 %v3935_v22, %v3934_v44  ;;  %v3958_v6 = vsel %vm156_vm0, %v3950_v55, 0.0 }
 0xb31   :  { %v3932_v41 = vrot.slane %v3931_v31, 1  ;;  %v3959_v4 = vadd.f32 %v3958_v6, %v3957_v19 }
 0xb32   :  { %v6279_v13 = vpop.eup %6278  ;;  %6284 = vrcp.f32 %v3912_v59  ;;  %v3937_v29 = vrot.slane %v3936_v47, 2 }
 0xb33   :  { %v3951_v11 = vmul.f32 %v6279_v13, %v8223_v18  ;;  %v3933_v9 = vadd.f32 %v3932_v41, %v3931_v31  ;;  %v6281_v52 = vpop.eup %6280 }
 0xb34   :  { %v3938_v0 = vadd.f32 %v3937_v29, %v3936_v47  ;;  %v6283_v2 = vpop.eup %6282  ;;  %v3953_v56 = vmul.f32 %v6281_v52, %v8225_v14 }
 0xb35   :  { %6286 = vrcp.f32 %v3933_v9  ;;  %v3960_v40 = vsel %vm156_vm0, %v3951_v11, 0.0  ;;  %v3954_v10 = vmul.f32 %v6283_v2, %v8219_v1 }
 0xb36   :  { %v3939_v33 = vrot.slane %v3938_v0, 1  ;;  %v3961_v18 = vadd.f32 %v3960_v40, %v3959_v4  ;;  %v3964_v31 = vsel %vm156_vm0, %v3953_v56, 0.0  ;;  %v8318_v40 = vld [vmem:[%s8821_s2 + $0x198] ss:$0 sm:$0xff]  ;;  %v9181_v4 = vld [vmem:[#allocation39_spill] sm:$0xff] }
 0xb37   :  { %v3966_v62 = vsel %vm156_vm0, %v3954_v10, 0.0 }
 0xb38   :  { %v6285_v42 = vpop.eup %6284  ;;  %v3940_v49 = vadd.f32 %v3939_v33, %v3938_v0 }
 0xb39   :  { %v3952_v27 = vmul.f32 %v6285_v42, %v6269_v26 }
 0xb3a   :  { %6288 = vrcp.f32 %v3940_v49  ;;  %v9184_v49 = vld [vmem:[#allocation84_spill] sm:$0xff] }
 0xb3b   :  { %v6287_v23 = vpop.eup %6286  ;;  %v3962_v16 = vsel %vm156_vm0, %v3952_v27, 0.0 }
 0xb3c   :  { %v3963_v63 = vadd.f32 %v3962_v16, %v3961_v18  ;;  %v3955_v12 = vmul.f32 %v6287_v23, %v6271_v15  ;;  %v9185_v18 = vld [vmem:[#allocation38_spill] sm:$0xff]  ;;  %v9186_v23 = vld [vmem:[#allocation79_spill] sm:$0xff]  ;;  %v9188_v16 = vld [vmem:[#allocation81_spill] sm:$0xff] }
 0xb3e   :  { %v3965_v44 = vadd.f32 %v3964_v31, %v3963_v63  ;;  %v3968_v26 = vsel %vm156_vm0, %v3955_v12, 0.0  ;;  %v9189_v63 = vld [vmem:[#allocation37_spill] sm:$0xff] }
 0xb3f   :  { %v9191_v31 = vld [vmem:[#allocation77_spill] sm:$0xff] }
 0xb40   :  { %v3967_v59 = vadd.f32 %v3966_v62, %v3965_v44  ;;  %v6289_v22 = vpop.eup %6288  ;;  %v9192_v44 = vld [vmem:[#allocation78_spill] sm:$0xff]  ;;  %v9193_v62 = vld [vmem:[#allocation35_spill] sm:$0xff] }
 0xb41   :  { %v3956_v41 = vmul.f32 %v6289_v22, %v6275_v38  ;;  %v8252_v38 = vld [vmem:[%s8821_s2 + $0x98] sm:$0xff]  ;;  %v9196_v22 = vld [vmem:[#allocation75_spill] sm:$0xff] }
 0xb42   :  { %v3969_v14 = vadd.f32 %v3968_v26, %v3967_v59  ;;  %v9194_v59 = vld [vmem:[#allocation73_spill] sm:$0xff]  ;;  %v9195_v26 = vld [vmem:[#allocation74_spill] sm:$0xff] }
 0xb43   :  { %v3970_v13 = vsel %vm156_vm0, %v3956_v41, 0.0 }
 0xb44   :  { %v3971_v47 = vadd.f32 %v3970_v13, %v3969_v14  ;;  %v9197_v14 = vld [vmem:[#allocation66_spill] sm:$0xff]  ;;  %v9199_v13 = vld [vmem:[#allocation107_spill] sm:$0xff] }
 0xb46   :  { %3972 = vadd.xlane.f32.xlu2 %v3971_v47  ;;  %v9200_v47 = vld [vmem:[#allocation108_spill] sm:$0xff] }
 0xbb9   :  { %v3973_v1 = vpop.xlane.xlu2 %3972 }
 0xbba   :  { %v3974_v9 = vadd.f32 1e-08, %v3973_v1  ;;  %v9201_v1 = vld [vmem:[#allocation64_spill] sm:$0xff] }
 0xbbc   :  { %6290 = vrcp.f32 %v3974_v9  ;;  %v9202_v9 = vld [vmem:[#allocation103_spill] sm:$0xff] }
 0xbc2   :  { %v6291_v29 = vpop.eup %6290 }
 0xbc3   :  { %v3976_v15 = vmul.f32 %v6291_v29, %v3949_v39  ;;  %v3977_v19 = vmul.f32 %v6291_v29, %v3950_v55  ;;  %v3978_v52 = vmul.f32 %v6291_v29, %v3951_v11  ;;  %v3979_v0 = vmul.f32 %v6291_v29, %v3952_v27  ;;  %v6333_v39 = vld [vmem:[%s8821_s2 + $0x38] sm:$0xff]  ;;  %v6339_v11 = vld [vmem:[%s8821_s2 + $0x20] sm:$0xff]  ;;  %v9182_v27 = vld [vmem:[#allocation82_spill] sm:$0xff] }
 0xbc4   :  { %v3980_v55 = vmul.f32 %v6291_v29, %v3953_v56  ;;  %v3982_v2 = vmul.f32 %v6291_v29, %v3955_v12  ;;  %v3983_v6 = vmul.f32 %v6291_v29, %v3956_v41  ;;  %v9183_v56 = vld [vmem:[#allocation83_spill] sm:$0xff]  ;;  %v9190_v12 = vld [vmem:[#allocation76_spill] sm:$0xff]  ;;  %v9198_v41 = vld [vmem:[#allocation106_spill] sm:$0xff] }
 0xbc5   :  { %4000 = vmatmul.f32.vlgmr.msrb.gmra.mxu3 %v3976_v15  ;;  %4020 = vmatmul.f32.vlgmr.msra.gmra.mxu0 %v3977_v19  ;;  %v9204_v15 = vld [vmem:[#allocation105_spill] sm:$0xff]  ;;  %v9205_v19 = vld [vmem:[#allocation60_spill] sm:$0xff] }
 0xbc6   :  { %4040 = vmatmul.f32.vlgmr.msra.gmra.mxu1 %v3978_v52  ;;  %4060 = vmatmul.f32.vlgmr.msra.gmra.mxu2 %v3979_v0  ;;  %v9206_v52 = vld [vmem:[#allocation100_spill] sm:$0xff]  ;;  %v9207_v0 = vld [vmem:[#allocation101_spill] sm:$0xff] }
 0xbc7   :  { %4207 = vmatpush.msra.mxu1 %v9106_v21  ;;  %4227 = vmatpush.msra.mxu2 %v9107_v48  ;;  %v8263_v21 = vld [vmem:[%s8821_s2 + $0x90] sm:$0xff] }
 0xbc8   :  { %4159 = vmatpush.msrb.mxu3 %v8252_v38  ;;  %4184 = vmatpush.msra.mxu0 %v6333_v39  ;;  %v6335_v48 = vld [vmem:[%s8821_s2 + $0x30] sm:$0xff]  ;;  %v9208_v39 = vld [vmem:[#allocation102_spill] sm:$0xff] }
 0xbc9   :  { %4208 = vmatpush.msra.mxu1 %v9108_v46  ;;  %4228 = vmatpush.msra.mxu2 %v9109_v57  ;;  %v8274_v46 = vld [vmem:[%s8821_s2 + $0x88] sm:$0xff] }
 0xbca   :  { %4160 = vmatpush.msrb.mxu3 %v8263_v21  ;;  %4185 = vmatpush.msra.mxu0 %v6335_v48  ;;  %v6337_v57 = vld [vmem:[%s8821_s2 + $0x28] sm:$0xff]  ;;  %v9209_v48 = vld [vmem:[#allocation57_spill] sm:$0xff] }
 0xbcb   :  { %4209 = vmatpush.msra.mxu1 %v9110_v61  ;;  %4229 = vmatpush.msra.mxu2 %v9111_v35  ;;  %v3981_v61 = vmul.f32 %v6291_v29, %v3954_v10  ;;  %v8285_v35 = vld [vmem:[%s8821_s2 + $0x80] sm:$0xff]  ;;  %v9187_v10 = vld [vmem:[#allocation80_spill] sm:$0xff] }
 0xbcc   :  { %4161 = vmatpush.msrb.mxu3 %v8274_v46  ;;  %4186 = vmatpush.msra.mxu0 %v6337_v57  ;;  %v9203_v29 = vld [vmem:[#allocation104_spill] sm:$0xff]  ;;  %v9210_v57 = vld [vmem:[#allocation97_spill] sm:$0xff] }
 0xbcd   :  { %4210 = vmatpush.msra.mxu1 %v9112_v50  ;;  %4230 = vmatpush.msra.mxu2 %v9113_v36 }
 0xbce   :  { %4162 = vmatpush.msrb.mxu3 %v8285_v35  ;;  %4187 = vmatpush.msra.mxu0 %v6339_v11 }
 0xbcf   :  { %4080 = vmatmul.f32.vlgmr.msra.gmra.mxu3 %v3980_v55  ;;  %4100 = vmatmul.f32.vlgmr.msrb.gmra.mxu0 %v3981_v61  ;;  %v9211_v55 = vld [vmem:[#allocation98_spill] sm:$0xff]  ;;  %v9212_v61 = vld [vmem:[#allocation99_spill] sm:$0xff] }
 0xbd0   :  { %4120 = vmatmul.f32.vlgmr.msrb.gmra.mxu1 %v3982_v2  ;;  %4140 = vmatmul.f32.vlgmr.msrb.gmra.mxu2 %v3983_v6 }
 0xbd1   :  { %4247 = vmatpush.msra.mxu3 %v9121_v37  ;;  %4267 = vmatpush.msrb.mxu0 %v9122_v53 }
 0xbd2   :  { %4287 = vmatpush.msrb.mxu1 %v9114_v32  ;;  %4307 = vmatpush.msrb.mxu2 %v9115_v28 }
 0xbd3   :  { %4248 = vmatpush.msra.mxu3 %v9127_v5  ;;  %4268 = vmatpush.msrb.mxu0 %v9128_v43 }
 0xbd4   :  { %4288 = vmatpush.msrb.mxu1 %v9117_v25  ;;  %4308 = vmatpush.msrb.mxu2 %v9118_v45 }
 0xbd5   :  { %4249 = vmatpush.msra.mxu3 %v9129_v17  ;;  %4269 = vmatpush.msrb.mxu0 %v9130_v51 }
 0xbd6   :  { %4289 = vmatpush.msrb.mxu1 %v9119_v7  ;;  %4309 = vmatpush.msrb.mxu2 %v9120_v8 }
 0xbd7   :  { %4250 = vmatpush.msra.mxu3 %v9133_v20  ;;  %4270 = vmatpush.msrb.mxu0 %v9134_v58 }
 0xbd8   :  { %4290 = vmatpush.msrb.mxu1 %v9123_v34  ;;  %4310 = vmatpush.msrb.mxu2 %v9124_v54  ;;  %v6340_v54 = vld [vmem:[%s8821_s2 + $0x148] sm:$0xf] }
 0xc42   :  { %v4021_v50 = vpop.f32.mrf.mxu0 }
 0xc43   :  { %v4041_v28 = vpop.f32.mrf.mxu1 }
 0xc48   :  { %v4001_v36 = vpop.f32.mrf.mxu3 }
 0xc49   :  { %v4022_v32 = vadd.f32 %v4021_v50, %v4001_v36  ;;  %v4061_v45 = vpop.f32.mrf.mxu2 }
 0xc4b   :  { %v4042_v25 = vadd.f32 %v4041_v28, %v4022_v32 }
 0xc4c   :  { %v4101_v7 = vpop.f32.mrf.mxu0 }
 0xc4d   :  { %v4062_v37 = vadd.f32 %v4061_v45, %v4042_v25  ;;  %v4121_v8 = vpop.f32.mrf.mxu1 }
 0xc52   :  { %v4081_v53 = vpop.f32.mrf.mxu3 }
 0xc53   :  { %v4082_v5 = vadd.f32 %v4081_v53, %v4062_v37  ;;  %v4141_v51 = vpop.f32.mrf.mxu2 }
 0xc55   :  { %v4102_v43 = vadd.f32 %v4101_v7, %v4082_v5 }
 0xc57   :  { %v4122_v17 = vadd.f32 %v4121_v8, %v4102_v43 }
 0xc59   :  { %v4142_v20 = vadd.f32 %v4141_v51, %v4122_v17 }
 0xc5b   :  { %6067 = vmatmul.msk.f32.vlgmr.msrb.gmra.mxu3 %vm781_vm2, %v4142_v20 }
 0xc5c   :  { %4327 = vmatpush.msrb.mxu3 %v9135_v3  ;;  %v9177_v3 = vld [vmem:[#allocation96_spill] sm:$0xff] }
 0xc5e   :  { %4328 = vmatpush.msrb.mxu3 %v9137_v30  ;;  %v9178_v30 = vld [vmem:[#allocation93_spill] sm:$0xff] }
 0xc60   :  { %4329 = vmatpush.msrb.mxu3 %v9141_v60  ;;  %v9179_v60 = vld [vmem:[#allocation90_spill] sm:$0xff] }
 0xc62   :  { %4330 = vmatpush.msrb.mxu3 %v9143_v24  ;;  %v9180_v24 = vld [vmem:[#allocation87_spill] sm:$0xff] }
 0xcde   :  { %v4164_v34 = vpop.f32.mrf.mxu3 }
 0xcdf   :  { %v4167_v58 = vadd.f32 %v6340_v54, %v4164_v34 }
 0xce1   :  { %v8321_v42 = vadd.f32 %v8318_v40, %v4167_v58 }
 0xce3   :  { %6068 = vmatmul.msk.f32.vlgmr.msra.gmra.mxu0 %vm781_vm2, %v8321_v42 }
 0xce4   :  { %4347 = vmatpush.msra.mxu0 %v9177_v3 }
 0xce6   :  { %4348 = vmatpush.msra.mxu0 %v9178_v30 }
 0xce8   :  { %4349 = vmatpush.msra.mxu0 %v9179_v60 }
 0xcea   :  { %4350 = vmatpush.msra.mxu0 %v9180_v24 }
 0xd60   :  { %v4189_v33 = vpop.f32.mrf.mxu0 }
 0xd61   :  { %6069 = vmatmul.msk.f32.vlgmr.msra.gmra.mxu1 %vm781_vm2, %v4189_v33  ;;  %6070 = vmatmul.msk.f32.vlgmr.msra.gmra.mxu2 %vm781_vm2, %v4189_v33 }
 0xd62   :  { %6071 = vmatmul.msk.f32.vlgmr.msra.gmra.mxu3 %vm781_vm2, %v4189_v33  ;;  %6072 = vmatmul.msk.f32.vlgmr.msrb.gmra.mxu0 %vm781_vm2, %v4189_v33 }
 0xd63   :  { %4561 = vmatpush.xpose.msra.mxu1 %v9181_v4  ;;  %4581 = vmatpush.xpose.msra.mxu2 %v9182_v27 }
 0xd64   :  { %4610 = vmatpush.xpose.msra.mxu3 %v9183_v56  ;;  %4630 = vmatpush.xpose.msrb.mxu0 %v9184_v49 }
 0xd67   :  { %4562 = vmatpush.xpose.msra.mxu1 %v9185_v18  ;;  %4582 = vmatpush.xpose.msra.mxu2 %v9186_v23 }
 0xd68   :  { %4611 = vmatpush.xpose.msra.mxu3 %v9187_v10  ;;  %4631 = vmatpush.xpose.msrb.mxu0 %v9188_v16 }
 0xd69   :  { %6073 = vmatmul.msk.f32.vlgmr.msrb.gmra.mxu1 %vm781_vm2, %v4189_v33  ;;  %6074 = vmatmul.msk.f32.vlgmr.msrb.gmra.mxu2 %vm781_vm2, %v4189_v33 }
 0xd6a   :  { %6075 = vmatmul.msk.f32.vlgmr.msrb.gmra.mxu3 %vm781_vm2, %v4189_v33  ;;  %6076 = vmatmul.msk.f32.vlgmr.msra.gmra.mxu0 %vm781_vm2, %v4189_v33 }
 0xd6b   :  { %4563 = vmatpush.xpose.msra.mxu1 %v9189_v63  ;;  %4583 = vmatpush.xpose.msra.mxu2 %v9190_v12 }
 0xd6c   :  { %4612 = vmatpush.xpose.msra.mxu3 %v9191_v31  ;;  %4632 = vmatpush.xpose.msrb.mxu0 %v9192_v44 }
 0xd6f   :  { %4564 = vmatpush.xpose.msra.mxu1 %v9193_v62  ;;  %4584 = vmatpush.xpose.msra.mxu2 %v9194_v59 }
 0xd70   :  { %4613 = vmatpush.xpose.msra.mxu3 %v9195_v26  ;;  %4633 = vmatpush.xpose.msrb.mxu0 %v9196_v22 }
 0xd73   :  { %4659 = vmatpush.xpose.msrb.mxu1 %v9197_v14  ;;  %4679 = vmatpush.xpose.msrb.mxu2 %v9198_v41 }
 0xd74   :  { %4708 = vmatpush.xpose.msrb.mxu3 %v9199_v13  ;;  %4728 = vmatpush.xpose.msra.mxu0 %v9200_v47 }
 0xd77   :  { %4660 = vmatpush.xpose.msrb.mxu1 %v9201_v1  ;;  %4680 = vmatpush.xpose.msrb.mxu2 %v9202_v9 }
 0xd78   :  { %4709 = vmatpush.xpose.msrb.mxu3 %v9203_v29  ;;  %4729 = vmatpush.xpose.msra.mxu0 %v9204_v15 }
 0xd7b   :  { %4661 = vmatpush.xpose.msrb.mxu1 %v9205_v19  ;;  %4681 = vmatpush.xpose.msrb.mxu2 %v9206_v52 }
 0xd7c   :  { %4710 = vmatpush.xpose.msrb.mxu3 %v9207_v0  ;;  %4730 = vmatpush.xpose.msra.mxu0 %v9208_v39 }
 0xd7f   :  { %4662 = vmatpush.xpose.msrb.mxu1 %v9209_v48  ;;  %4682 = vmatpush.xpose.msrb.mxu2 %v9210_v57 }
 0xd80   :  { %4711 = vmatpush.xpose.msrb.mxu3 %v9211_v55  ;;  %4731 = vmatpush.xpose.msra.mxu0 %v9212_v61 }
 0xdde   :  { %v4212_v11 = vpop.f32.mrf.mxu1 }
 0xddf   :  { %v4355_v2 = vmul.f32 0.17677669, %v4212_v11  ;;  %v4272_v6 = vpop.f32.mrf.mxu0 }
 0xde0   :  { %v4358_v50 = vmul.f32 0.17677669, %v4272_v6 }
 0xde1   :  { %v4363_v36 = vsel %vm156_vm0, %v4355_v2, -inf }
 0xde2   :  { %v4364_v32 = vrot.slane %v4363_v36, 4  ;;  %v4384_v28 = vsel %vm156_vm0, %v4358_v50, -inf }
 0xde3   :  { %v4385_v25 = vrot.slane %v4384_v28, 4 }
 0xde4   :  { %v4365_v45 = vmax.f32 %v4363_v36, %v4364_v32  ;;  %v4232_v37 = vpop.f32.mrf.mxu2 }
 0xde5   :  { %v4386_v53 = vmax.f32 %v4384_v28, %v4385_v25  ;;  %v4356_v5 = vmul.f32 0.17677669, %v4232_v37  ;;  %v4252_v7 = vpop.f32.mrf.mxu3 }
 0xde6   :  { %v4366_v43 = vrot.slane %v4365_v45, 2  ;;  %v4357_v8 = vmul.f32 0.17677669, %v4252_v7  ;;  %v4292_v17 = vpop.f32.mrf.mxu1 }
 0xde7   :  { %v4387_v51 = vrot.slane %v4386_v53, 2  ;;  %v4370_v20 = vsel %vm156_vm0, %v4356_v5, -inf  ;;  %v8372_v34 = vmul.f32 0.17677669, %v4292_v17  ;;  %v4352_v54 = vpop.f32.mrf.mxu0 }
 0xde8   :  { %v4367_v58 = vmax.f32 %v4365_v45, %v4366_v43  ;;  %v4371_v3 = vrot.slane %v4370_v20, 4  ;;  %v4377_v30 = vsel %vm156_vm0, %v4357_v8, -inf  ;;  %v8375_v60 = vmul.f32 0.17677669, %v4352_v54 }
 0xde9   :  { %v4388_v24 = vmax.f32 %v4386_v53, %v4387_v51  ;;  %v4378_v33 = vrot.slane %v4377_v30, 4  ;;  %v4391_v4 = vsel %vm156_vm0, %v8372_v34, -inf }
 0xdea   :  { %v4368_v27 = vrot.slane %v4367_v58, 1  ;;  %v4372_v56 = vmax.f32 %v4370_v20, %v4371_v3  ;;  %v4392_v49 = vrot.slane %v4391_v4, 4  ;;  %v4412_v18 = vsel %vm156_vm0, %v8375_v60, -inf }
 0xdeb   :  { %v4389_v23 = vrot.slane %v4388_v24, 1  ;;  %v4379_v10 = vmax.f32 %v4377_v30, %v4378_v33  ;;  %v4413_v16 = vrot.slane %v4412_v18, 4 }
 0xdec   :  { %v4369_v63 = vmax.f32 %v4367_v58, %v4368_v27  ;;  %v4373_v12 = vrot.slane %v4372_v56, 2  ;;  %v4393_v31 = vmax.f32 %v4391_v4, %v4392_v49  ;;  %v4312_v44 = vpop.f32.mrf.mxu2 }
 0xded   :  { %v4390_v62 = vmax.f32 %v4388_v24, %v4389_v23  ;;  %v4380_v59 = vrot.slane %v4379_v10, 2  ;;  %v4414_v26 = vmax.f32 %v4412_v18, %v4413_v16  ;;  %v4360_v22 = vmul.f32 0.17677669, %v4312_v44  ;;  %v4332_v14 = vpop.f32.mrf.mxu3 }
 0xdee   :  { %v4419_v41 = vsub.f32 %v4355_v2, %v4369_v63  ;;  %v4374_v13 = vmax.f32 %v4372_v56, %v4373_v12  ;;  %v4394_v47 = vrot.slane %v4393_v31, 2  ;;  %v8381_v1 = vmul.f32 0.17677669, %v4332_v14 }
 0xdef   :  { %v4422_v9 = vsub.f32 %v4358_v50, %v4390_v62  ;;  %v4381_v29 = vmax.f32 %v4379_v10, %v4380_v59  ;;  %v4415_v15 = vrot.slane %v4414_v26, 2  ;;  %v4398_v19 = vsel %vm156_vm0, %v4360_v22, -inf }
 0xdf0   :  { %v4427_v52 = vmul.f32 1.442695, %v4419_v41  ;;  %v4375_v0 = vrot.slane %v4374_v13, 1  ;;  %v4395_v39 = vmax.f32 %v4393_v31, %v4394_v47  ;;  %v4399_v48 = vrot.slane %v4398_v19, 4 }
 0xdf1   :  { %v4433_v57 = vmul.f32 1.442695, %v4422_v9  ;;  %v4382_v55 = vrot.slane %v4381_v29, 1  ;;  %v4416_v61 = vmax.f32 %v4414_v26, %v4415_v15  ;;  %v4405_v11 = vsel %vm156_vm0, %v8381_v1, -inf }
 0xdf2   :  { %6292 = vpow2.f32 %v4427_v52  ;;  %v4376_v2 = vmax.f32 %v4374_v13, %v4375_v0  ;;  %v4396_v6 = vrot.slane %v4395_v39, 1  ;;  %v4400_v36 = vmax.f32 %v4398_v19, %v4399_v48 }
 0xdf3   :  { %6294 = vpow2.f32 %v4433_v57  ;;  %v4383_v50 = vmax.f32 %v4381_v29, %v4382_v55  ;;  %v4417_v32 = vrot.slane %v4416_v61, 1  ;;  %v4406_v28 = vrot.slane %v4405_v11, 4 }
 0xdf4   :  { %v4420_v25 = vsub.f32 %v4356_v5, %v4376_v2  ;;  %v4397_v45 = vmax.f32 %v4395_v39, %v4396_v6  ;;  %v4401_v37 = vrot.slane %v4400_v36, 2 }
 0xdf5   :  { %v4421_v53 = vsub.f32 %v4357_v8, %v4383_v50  ;;  %v4418_v7 = vmax.f32 %v4416_v61, %v4417_v32  ;;  %v4407_v43 = vmax.f32 %v4405_v11, %v4406_v28 }
 0xdf6   :  { %v4429_v17 = vmul.f32 1.442695, %v4420_v25  ;;  %v4423_v51 = vsub.f32 %v8372_v34, %v4397_v45  ;;  %v4402_v20 = vmax.f32 %v4400_v36, %v4401_v37 }
 0xdf7   :  { %v4431_v54 = vmul.f32 1.442695, %v4421_v53  ;;  %v4426_v58 = vsub.f32 %v8375_v60, %v4418_v7  ;;  %v4408_v3 = vrot.slane %v4407_v43, 2 }
 0xdf8   :  { %v8388_v30 = vpop.eup %6292  ;;  %6296 = vpow2.f32 %v4429_v17  ;;  %v4435_v24 = vmul.f32 1.442695, %v4423_v51  ;;  %v4403_v33 = vrot.slane %v4402_v20, 1 }
 0xdf9   :  { %v8390_v4 = vpop.eup %6294  ;;  %v4443_v5 = vsel %vm156_vm0, %v8388_v30, 0.0  ;;  %6298 = vpow2.f32 %v4431_v54  ;;  %v4441_v8 = vmul.f32 1.442695, %v4426_v58  ;;  %v4409_v27 = vmax.f32 %v4407_v43, %v4408_v3 }
 0xdfa   :  { %v4444_v56 = vrot.slane %v4443_v5, 4  ;;  %v4464_v34 = vsel %vm156_vm0, %v8390_v4, 0.0  ;;  %6300 = vpow2.f32 %v4435_v24  ;;  %v4404_v60 = vmax.f32 %v4402_v20, %v4403_v33 }
 0xdfb   :  { %v4465_v49 = vrot.slane %v4464_v34, 4  ;;  %6302 = vpow2.f32 %v4441_v8  ;;  %v4410_v18 = vrot.slane %v4409_v27, 1 }
 0xdfc   :  { %v4445_v23 = vadd.f32 %v4444_v56, %v4443_v5  ;;  %v4424_v10 = vsub.f32 %v4360_v22, %v4404_v60 }
 0xdfd   :  { %v4466_v16 = vadd.f32 %v4465_v49, %v4464_v34  ;;  %v4411_v63 = vmax.f32 %v4409_v27, %v4410_v18 }
 0xdfe   :  { %v8396_v12 = vpop.eup %6296  ;;  %v4446_v31 = vrot.slane %v4445_v23, 2  ;;  %v4437_v44 = vmul.f32 1.442695, %v4424_v10 }
 0xdff   :  { %v8398_v62 = vpop.eup %6298  ;;  %v4467_v59 = vrot.slane %v4466_v16, 2  ;;  %v4450_v26 = vsel %vm156_vm0, %v8396_v12, 0.0  ;;  %v4425_v14 = vsub.f32 %v8381_v1, %v4411_v63 }
 0xe00   :  { %v8403_v41 = vpop.eup %6300  ;;  %v4447_v13 = vadd.f32 %v4446_v31, %v4445_v23  ;;  %v4451_v47 = vrot.slane %v4450_v26, 4  ;;  %v4457_v22 = vsel %vm156_vm0, %v8398_v62, 0.0  ;;  %6304 = vpow2.f32 %v4437_v44 }
 0xe01   :  { %v8407_v9 = vpop.eup %6302  ;;  %v4468_v29 = vadd.f32 %v4467_v59, %v4466_v16  ;;  %v4458_v15 = vrot.slane %v4457_v22, 4  ;;  %v4471_v19 = vsel %vm156_vm0, %v8403_v41, 0.0  ;;  %v4439_v52 = vmul.f32 1.442695, %v4425_v14 }
 0xe02   :  { %v4448_v0 = vrot.slane %v4447_v13, 1  ;;  %v4452_v39 = vadd.f32 %v4451_v47, %v4450_v26  ;;  %v4472_v48 = vrot.slane %v4471_v19, 4  ;;  %v4492_v1 = vsel %vm156_vm0, %v8407_v9, 0.0 }
 0xe03   :  { %v4469_v57 = vrot.slane %v4468_v29, 1  ;;  %v4459_v55 = vadd.f32 %v4458_v15, %v4457_v22  ;;  %v4493_v61 = vrot.slane %v4492_v1, 4  ;;  %6306 = vpow2.f32 %v4439_v52 }
 0xe04   :  { %v4449_v11 = vadd.f32 %v4448_v0, %v4447_v13  ;;  %v4453_v2 = vrot.slane %v4452_v39, 2  ;;  %v4473_v6 = vadd.f32 %v4472_v48, %v4471_v19 }
 0xe05   :  { %v4470_v36 = vadd.f32 %v4469_v57, %v4468_v29  ;;  %v4460_v50 = vrot.slane %v4459_v55, 2  ;;  %v4494_v32 = vadd.f32 %v4493_v61, %v4492_v1 }
 0xe06   :  { %v8413_v28 = vpop.eup %6304  ;;  %v4454_v25 = vadd.f32 %v4453_v2, %v4452_v39  ;;  %v4474_v45 = vrot.slane %v4473_v6, 2 }
 0xe07   :  { %6308 = vrcp.f32 %v4470_v36  ;;  %v4461_v37 = vadd.f32 %v4460_v50, %v4459_v55  ;;  %v4495_v53 = vrot.slane %v4494_v32, 2  ;;  %v4478_v7 = vsel %vm156_vm0, %v8413_v28, 0.0 }
 0xe08   :  { %6310 = vrcp.f32 %v4449_v11  ;;  %v4455_v43 = vrot.slane %v4454_v25, 1  ;;  %v4475_v17 = vadd.f32 %v4474_v45, %v4473_v6  ;;  %v4479_v51 = vrot.slane %v4478_v7, 4 }
 0xe09   :  { %v6307_v20 = vpop.eup %6306  ;;  %v4462_v54 = vrot.slane %v4461_v37, 1  ;;  %v4496_v58 = vadd.f32 %v4495_v53, %v4494_v32 }
 0xe0a   :  { %v4456_v3 = vadd.f32 %v4455_v43, %v4454_v25  ;;  %v4480_v24 = vadd.f32 %v4479_v51, %v4478_v7  ;;  %v4485_v33 = vsel %vm156_vm0, %v6307_v20, 0.0  ;;  %v4476_v8 = vrot.slane %v4475_v17, 1 }
 0xe0b   :  { %v4463_v5 = vadd.f32 %v4462_v54, %v4461_v37  ;;  %v4497_v27 = vrot.slane %v4496_v58, 1  ;;  %v4486_v56 = vrot.slane %v4485_v33, 4 }
 0xe0c   :  { %6312 = vrcp.f32 %v4456_v3  ;;  %v4481_v34 = vrot.slane %v4480_v24, 2  ;;  %v4477_v16 = vadd.f32 %v4476_v8, %v4475_v17 }
 0xe0d   :  { %v6309_v60 = vpop.eup %6308  ;;  %6314 = vrcp.f32 %v4463_v5  ;;  %v4487_v49 = vadd.f32 %v4486_v56, %v4485_v33  ;;  %v4498_v18 = vadd.f32 %v4497_v27, %v4496_v58 }
 0xe0e   :  { %v6311_v23 = vpop.eup %6310  ;;  %v4482_v10 = vadd.f32 %v4481_v34, %v4480_v24  ;;  %v8419_v44 = vmul.f32 %v6309_v60, %v8390_v4  ;;  %v6342_v60 = vld [vmem:[%s8821_s2 + $0xb8] sm:$0xff] }
 0xe0f   :  { %v4488_v63 = vrot.slane %v4487_v49, 2  ;;  %v8422_v26 = vmul.f32 %v6311_v23, %v8388_v30  ;;  %6316 = vrcp.f32 %v4498_v18  ;;  %v6344_v18 = vld [vmem:[%s8821_s2 + $0xd8] sm:$0xff]  ;;  %v6345_v23 = vld [vmem:[%s8821_s2 + $0xb0] sm:$0xff] }
 0xe10   :  { %v4483_v31 = vrot.slane %v4482_v10, 1  ;;  %6318 = vrcp.f32 %v4477_v16  ;;  %v4524_v4 = vrot.slane %v8419_v44, 4  ;;  %v6348_v16 = vld [vmem:[%s8821_s2 + $0xa8] sm:$0xff] }
 0xe11   :  { %v4489_v59 = vadd.f32 %v4488_v63, %v4487_v49  ;;  %v4540_v30 = vsel %vm156_vm0, %v8422_v26, 0.0  ;;  %v6343_v49 = vld [vmem:[%s8821_s2 + $0xf8] sm:$0xff]  ;;  %v6349_v63 = vld [vmem:[%s8821_s2 + $0xe8] sm:$0xff] }
 0xe12   :  { %v6313_v14 = vpop.eup %6312  ;;  %v4484_v13 = vadd.f32 %v4483_v31, %v4482_v10  ;;  %v6346_v10 = vld [vmem:[%s8821_s2 + $0xf0] sm:$0xff] }
 0xe13   :  { %v6315_v47 = vpop.eup %6314  ;;  %v4490_v22 = vrot.slane %v4489_v59, 1  ;;  %v8425_v29 = vmul.f32 %v6313_v14, %v8396_v12  ;;  %v4590_v12 = vsel %vm156_vm0, %v8419_v44, 0.0 }
 0xe14   :  { %6320 = vrcp.f32 %v4484_v13  ;;  %v8428_v15 = vmul.f32 %v6315_v47, %v8398_v62  ;;  %v6351_v13 = vld [vmem:[%s8821_s2 + $0xa0] sm:$0xff] }
 0xe15   :  { %v4523_v19 = vrot.slane %v8425_v29, 4  ;;  %v4541_v52 = vsel %vm156_vm0, %v8425_v29, 0.0  ;;  %v4491_v0 = vadd.f32 %v4490_v22, %v4489_v59  ;;  %v6317_v1 = vpop.eup %6316  ;;  %v6352_v47 = vld [vmem:[%s8821_s2 + $0xe0] sm:$0xff] }
 0xe16   :  { %v4589_v39 = vsel %vm156_vm0, %v8428_v15, 0.0  ;;  %v4528_v62 = vsel %vm156_vm0, %v8428_v15, %v4524_v4  ;;  %v4542_v48 = vadd.f32 %v4541_v52, %v4540_v30  ;;  %v6319_v61 = vpop.eup %6318  ;;  %v8451_v2 = vmul.f32 %v6317_v1, %v8407_v9  ;;  %v6353_v4 = vld [vmem:[%s8821_s2 + $0xc0] sm:$0xff] }
 0xe17   :  { %v4591_v57 = vadd.f32 %v4590_v12, %v4589_v39  ;;  %6078 = vst [vmem:[%s8823_s4 + $0x28] sm:$0xff] %v4528_v62  ;;  %v4527_v55 = vsel %vm156_vm0, %v8422_v26, %v4523_v19  ;;  %6322 = vrcp.f32 %v4491_v0  ;;  %v8457_v50 = vmul.f32 %v6319_v61, %v8403_v41 }
 0xe18   :  { %4543 = vadd.xlane.f32.xlu0 %v4542_v48  ;;  %6077 = vst [vmem:[%s8823_s4 + $0x20] sm:$0xff] %v4527_v55  ;;  %v4526_v45 = vrot.slane %v8451_v2, 4  ;;  %v4688_v9 = vsel %vm156_vm0, %v8451_v2, 0.0 }
 0xe19   :  { %4592 = vadd.xlane.f32.xlu1 %v4591_v57  ;;  %v4638_v43 = vsel %vm156_vm0, %v8457_v50, 0.0 }
 0xe1a   :  { %v6321_v11 = vpop.eup %6320 }
 0xe1b   :  { %v8454_v6 = vmul.f32 %v6321_v11, %v8413_v28 }
 0xe1d   :  { %v6323_v36 = vpop.eup %6322  ;;  %v4525_v32 = vrot.slane %v8454_v6, 4  ;;  %v4639_v7 = vsel %vm156_vm0, %v8454_v6, 0.0 }
 0xe1e   :  { %v4513_v25 = vmul.f32 %v6323_v36, %v6307_v20  ;;  %v4640_v17 = vadd.f32 %v4639_v7, %v4638_v43 }
 0xe1f   :  { %v4529_v37 = vsel %vm156_vm0, %v8457_v50, %v4525_v32 }
 0xe20   :  { %v4687_v53 = vsel %vm156_vm0, %v4513_v25, 0.0  ;;  %v4530_v28 = vsel %vm156_vm0, %v4513_v25, %v4526_v45  ;;  %6079 = vst [vmem:[%s8823_s4 + $0x30] sm:$0xff] %v4529_v37 }
 0xe21   :  { %v4689_v41 = vadd.f32 %v4688_v9, %v4687_v53  ;;  %6080 = vst [vmem:[%s8823_s4 + $0x38] sm:$0xff] %v4530_v28 }
 0xe23   :  { %4690 = vadd.xlane.f32.xlu2 %v4689_v41 }
 0xe2b   :  { %4641 = vadd.xlane.f32.xlu2 %v4640_v17 }
 0xe8b   :  { %v4544_v51 = vpop.xlane.xlu0 %4543 }
 0xe8c   :  { %v4593_v20 = vpop.xlane.xlu1 %4592  ;;  %v4545_v54 = vadd.f32 1e-08, %v4544_v51 }
 0xe8d   :  { %v4594_v58 = vadd.f32 1e-08, %v4593_v20 }
 0xe8e   :  { %6324 = vrcp.f32 %v4545_v54 }
 0xe8f   :  { %6326 = vrcp.f32 %v4594_v58 }
 0xe94   :  { %v6325_v3 = vpop.eup %6324 }
 0xe95   :  { %v6327_v24 = vpop.eup %6326  ;;  %v4547_v33 = vmul.f32 %v6325_v3, %v8422_v26  ;;  %v4548_v5 = vmul.f32 %v6325_v3, %v8425_v29 }
 0xe96   :  { %v4596_v8 = vmul.f32 %v6327_v24, %v8428_v15  ;;  %v4597_v27 = vmul.f32 %v6327_v24, %v8419_v44  ;;  %v4691_v56 = vpop.xlane.xlu2 %4690 }
 0xe97   :  { %v4692_v34 = vadd.f32 1e-08, %v4691_v56  ;;  %4565 = vmatmul.f32.vlgmr.msra.gmra.mxu1 %v4547_v33  ;;  %4585 = vmatmul.f32.vlgmr.msra.gmra.mxu2 %v4548_v5  ;;  %v6354_v33 = vld [vmem:[%s8821_s2 + $0x1a0] ss:$0 sm:$0xff] }
 0xe98   :  { %4614 = vmatmul.f32.vlgmr.msra.gmra.mxu3 %v4596_v8  ;;  %4634 = vmatmul.f32.vlgmr.msrb.gmra.mxu0 %v4597_v27 }
 0xe99   :  { %6328 = vrcp.f32 %v4692_v34  ;;  %4855 = vmatpush.msra.mxu3 %v6342_v60  ;;  %4888 = vmatpush.msrb.mxu0 %v6343_v49  ;;  %v6355_v60 = vld [vmem:[%s8821_s2 + $0x1a8] ss:$0 sm:$0xff] }
 0xe9a   :  { %4762 = vmatpush.msra.mxu1 %v8252_v38  ;;  %4827 = vmatpush.msra.mxu2 %v6344_v18  ;;  %v6347_v38 = vld [vmem:[%s8821_s2 + $0xd0] sm:$0xff] }
 0xe9b   :  { %4856 = vmatpush.msra.mxu3 %v6345_v23  ;;  %4889 = vmatpush.msrb.mxu0 %v6346_v10 }
 0xe9c   :  { %4763 = vmatpush.msra.mxu1 %v8263_v21  ;;  %4828 = vmatpush.msra.mxu2 %v6347_v38  ;;  %v6350_v21 = vld [vmem:[%s8821_s2 + $0xc8] sm:$0xff] }
 0xe9d   :  { %4857 = vmatpush.msra.mxu3 %v6348_v16  ;;  %4890 = vmatpush.msrb.mxu0 %v6349_v63  ;;  %v9213_v63 = vld [vmem:[#allocation7_spill] sm:$0xff] }
 0xe9e   :  { %v4642_v31 = vpop.xlane.xlu2 %4641  ;;  %4764 = vmatpush.msra.mxu1 %v8274_v46  ;;  %4829 = vmatpush.msra.mxu2 %v6350_v21  ;;  %v9214_v21 = vld [vmem:[#allocation27_spill] sm:$0xff] }
 0xe9f   :  { %v6329_v59 = vpop.eup %6328  ;;  %v4643_v14 = vadd.f32 1e-08, %v4642_v31  ;;  %4858 = vmatpush.msra.mxu3 %v6351_v13  ;;  %4891 = vmatpush.msrb.mxu0 %v6352_v47  ;;  %v70_v31 = vld [vmem:[%s8821_s2 + $0x190] sm:$0xf] }
 0xea0   :  { %v4694_v22 = vmul.f32 %v6329_v59, %v4513_v25  ;;  %v4695_v46 = vmul.f32 %v6329_v59, %v8451_v2  ;;  %4765 = vmatpush.msra.mxu1 %v8285_v35  ;;  %4830 = vmatpush.msra.mxu2 %v6353_v4  ;;  %v9215_v59 = vld [vmem:[#allocation10_spill] sm:$0xff] }
 0xea1   :  { %6330 = vrcp.f32 %v4643_v14 }
 0xea2   :  { %4712 = vmatmul.f32.vlgmr.msrb.gmra.mxu3 %v4694_v22  ;;  %4732 = vmatmul.f32.vlgmr.msra.gmra.mxu0 %v4695_v46  ;;  %v9216_v46 = vld [vmem:[#allocation22_spill] sm:$0xff] }
 0xea3   :  { %6094 = vmatpush.msk.msrb.mxu3 %vm156_vm0, %v8428_v15  ;;  %6096 = vmatpush.msk.msra.mxu0 %vm156_vm0, %v8419_v44 }
 0xea7   :  { %v6331_v19 = vpop.eup %6330 }
 0xea8   :  { %v4645_v30 = vmul.f32 %v6331_v19, %v8457_v50  ;;  %v4646_v52 = vmul.f32 %v6331_v19, %v8454_v6  ;;  %v9217_v19 = vld [vmem:[#allocation31_spill] sm:$0xff] }
 0xeaa   :  { %4663 = vmatmul.f32.vlgmr.msrb.gmra.mxu1 %v4645_v30  ;;  %4683 = vmatmul.f32.vlgmr.msrb.gmra.mxu2 %v4646_v52  ;;  %v9218_v52 = vld [vmem:[#allocation33_spill] sm:$0xff] }
 0xeab   :  { %6090 = vmatpush.msk.msrb.mxu1 %vm156_vm0, %v8422_v26  ;;  %6092 = vmatpush.msk.msrb.mxu2 %vm156_vm0, %v8425_v29 }
 0xf14   :  { %v4566_v12 = vpop.f32.mrf.mxu1 }
 0xf15   :  { %v4635_v35 = vpop.f32.mrf.mxu0 }
 0xf1a   :  { %v4586_v0 = vpop.f32.mrf.mxu2 }
 0xf1b   :  { %v4615_v39 = vpop.f32.mrf.mxu3  ;;  %v4587_v62 = vadd.f32 %v4586_v0, %v4566_v12  ;;  %v9219_v0 = vld [vmem:[#allocation28_spill] sm:$0xff] }
 0xf1c   :  { %v4636_v15 = vadd.f32 %v4635_v35, %v4615_v39 }
 0xf1e   :  { %v4737_v44 = vrot.slane %v4636_v15, 4  ;;  %v9220_v15 = vld [vmem:[#allocation24_spill] sm:$0xff] }
 0xf1f   :  { %v4733_v57 = vpop.f32.mrf.mxu0 }
 0xf20   :  { %v4742_v48 = vsel %vm156_vm0, %v4587_v62, %v4737_v44 }
 0xf21   :  { %6081 = vmatmul.msk.f32.vlgmr.msra.gmra.mxu1 %vm781_vm2, %v4742_v48  ;;  %v9221_v48 = vld [vmem:[#allocation36_spill] sm:$0xff] }
 0xf22   :  { %6098 = vmatpush.msk.msra.mxu1 %vm156_vm0, %v8457_v50 }
 0xf25   :  { %v4713_v1 = vpop.f32.mrf.mxu3 }
 0xf26   :  { %v4734_v26 = vadd.f32 %v4733_v57, %v4713_v1 }
 0xf27   :  { %v4664_v55 = vpop.f32.mrf.mxu1 }
 0xf28   :  { %v4740_v29 = vrot.slane %v4734_v26, 4 }
 0xf2d   :  { %v4684_v61 = vpop.f32.mrf.mxu2 }
 0xf2e   :  { %v4685_v11 = vadd.f32 %v4684_v61, %v4664_v55 }
 0xf30   :  { %v4743_v2 = vsel %vm156_vm0, %v4685_v11, %v4740_v29 }
 0xf31   :  { %6082 = vmatmul.msk.f32.gmra.mxu1 %vm781_vm2, %v4743_v2 }
 0xf9e   :  { %v4767_v36 = vpop.f32.mrf.mxu1 }
 0xf9f   :  { %v4776_v32 = vrot.slane %v4767_v36, 4  ;;  %v4773_v25 = vadd.f32 %v4767_v36, %v8321_v42 }
 0xfa1   :  { %v4778_v45 = vadd.f32 %v4776_v32, %v8321_v42  ;;  %v8542_v50 = vadd.f32 %v8318_v40, %v4773_v25 }
 0xfa3   :  { %v4779_v37 = vadd.f32 %v8318_v40, %v4778_v45 }
 0xfa5   :  { %v4804_v53 = vrot.slane %v4779_v37, 4 }
 0xfa7   :  { %v4806_v9 = vsel %vm156_vm0, %v8542_v50, %v4804_v53  ;;  %v9222_v53 = vld [vmem:[#allocation8_spill] sm:$0xff] }
 0xfa8   :  { %6086 = vmatmul.msk.f32.vlgmr.msra.gmra.mxu3 %vm781_vm2, %v4806_v9 }
 0xfae   :  { %v4770_v28 = vpop.f32.mrf.mxu1 }
 0xfaf   :  { %v4780_v41 = vadd.f32 %v4770_v28, %v8321_v42  ;;  %v4783_v17 = vrot.slane %v4770_v28, 4 }
 0xfb1   :  { %v4781_v7 = vadd.f32 %v8318_v40, %v4780_v41  ;;  %v4785_v20 = vadd.f32 %v4783_v17, %v8321_v42 }
 0xfb3   :  { %v4807_v43 = vrot.slane %v4781_v7, 4  ;;  %6087 = vmatmul.msk.f32.gmra.mxu3 %vm781_vm2, %v4781_v7  ;;  %v4786_v54 = vadd.f32 %v8318_v40, %v4785_v20 }
 0xfb5   :  { %v4809_v51 = vsel %vm156_vm0, %v4779_v37, %v4807_v43 }
 0xfb6   :  { %6084 = vmatmul.msk.f32.vlgmr.msra.gmra.mxu2 %vm781_vm2, %v4809_v51  ;;  %v6357_v51 = vld [vmem:[%s8821_s2 + $0x128] sm:$0xff] }
 0xfb7   :  { %6100 = vmatpush.msk.msra.mxu2 %vm156_vm0, %v8454_v6 }
 0xfbe   :  { %6085 = vmatmul.msk.f32.gmra.mxu2 %vm781_vm2, %v4786_v54 }
0x102b   :  { %v4860_v58 = vpop.f32.mrf.mxu3 }
0x1036   :  { %v4863_v27 = vpop.f32.mrf.mxu3 }
0x1039   :  { %v4832_v3 = vpop.f32.mrf.mxu2 }
0x103a   :  { %v4861_v24 = vadd.f32 %v4860_v58, %v4832_v3  ;;  %v6358_v3 = vld [vmem:[%s8821_s2 + $0x130] sm:$0xff] }
0x103c   :  { %v4866_v5 = vadd.f32 %v6354_v33, %v4861_v24 }
0x103e   :  { %v4868_v8 = vmax.f32 %v4866_v5, 0.0  ;;  %v5351_v5 = vld.sshfl [vmem:[#allocation1] sm:$0xff pattern:$0x75316420] }
0x1040   :  { %6088 = vmatmul.msk.f32.vlgmr.msrb.gmra.mxu0 %vm781_vm2, %v4868_v8 }
0x1041   :  { %v4835_v56 = vpop.f32.mrf.mxu2 }
0x1042   :  { %v4864_v6 = vadd.f32 %v4863_v27, %v4835_v56 }
0x1044   :  { %v4867_v34 = vadd.f32 %v6354_v33, %v4864_v6 }
0x1046   :  { %v4869_v42 = vmax.f32 %v4867_v34, 0.0 }
0x1048   :  { %6089 = vmatmul.msk.f32.gmra.mxu0 %vm781_vm2, %v4869_v42 }
0x10bd   :  { %v4893_v40 = vpop.f32.mrf.mxu0 }
0x10be   :  { %v4894_v49 = vadd.f32 %v6355_v60, %v4893_v40  ;;  %v6359_v40 = vld [vmem:[%s8821_s2 + $0x138] sm:$0xff] }
0x10c0   :  { %v4899_v18 = vmul.f32 20.0, %v4894_v49 }
0x10c2   :  { %v4981_v23 = vrot.slane %v4899_v18, 4  ;;  %4901 = vxpose.xlu2.b32.start.end [1/1] (short) (narrow) %v4899_v18, 8  ;;  %v5353_v18 = vld.sshfl [vmem:[#allocation1 + $0x10] sm:$0xff pattern:$0x75316420] }
0x10c4   :  { %4983 = vxpose.xlu1.b32.start.end [1/1] (short) (narrow) %v4981_v23, 8  ;;  %v5354_v23 = vld.sshfl [vmem:[#allocation1 + $0x18] sm:$0xff pattern:$0x75316420] }
0x10c5   :  { %v4896_v10 = vpop.f32.mrf.mxu0 }
0x10c6   :  { %v4897_v38 = vadd.f32 %v6355_v60, %v4896_v10  ;;  %v5356_v10 = vld.sshfl [vmem:[#allocation1 + $0x28] sm:$0xff pattern:$0x75316420] }
0x10c8   :  { %v4900_v16 = vmul.f32 20.0, %v4897_v38  ;;  %v5355_v38 = vld.sshfl [vmem:[#allocation1 + $0x20] sm:$0xff pattern:$0x75316420] }
0x10ca   :  { %5062 = vxpose.xlu0.b32.start.end [1/1] (short) (narrow) %v4900_v16, 8  ;;  %v6360_v16 = vld [vmem:[%s8821_s2 + $0x100] sm:$0xff] }
0x111e   :  { %4788 = vrot.lane.b32.xlu1 %v4779_v37, %s6366_s1 }
0x1126   :  { %2647 = vrot.lane.b32.xlu1 %v9213_v63, %s6367_s20  ;;  %v6361_v63 = vld [vmem:[%s8821_s2 + $0x108] sm:$0xff] }
0x112b   :  { %3493 = vperm.xlu2 %6180, %v70_v31   ;;  %v6362_v31 = vld [vmem:[%s8821_s2 + $0x110] sm:$0xff] }
0x1133   :  { %2643 = vrot.lane.b32.xlu2 %v9214_v21, %s6368_s23  ;;  %v6363_v21 = vld [vmem:[%s8821_s2 + $0x118] sm:$0xff] }
0x1138   :  { %2639 = vrot.lane.b32.xlu0 %v9215_v59, %s6366_s1 }
0x113b   :  { %4792 = vrot.lane.b32.xlu2 %v4781_v7, %s6368_s23 }
0x1143   :  { %4796 = vrot.lane.b32.xlu2 %v4786_v54, %s6367_s20  ;;  %v5352_v54 = vld.sshfl [vmem:[#allocation1 + $0x8] sm:$0xff pattern:$0x75316420] }
0x115b   :  { %v4917_v14 = vpop.trf.xlu2 }
0x115c   :  { %6091 = vmatmul.msk.f32.vlgmr.msrb.gmra.mxu1 %vm143_vm1, %v4917_v14  ;;  %6093 = vmatmul.msk.f32.vlgmr.msrb.gmra.mxu2 %vm143_vm1, %v4917_v14 }
0x1168   :  { %v4999_v13 = vpop.trf.xlu1 }
0x1169   :  { %6095 = vmatmul.msk.f32.vlgmr.msrb.gmra.mxu3 %vm143_vm1, %v4999_v13  ;;  %6097 = vmatmul.msk.f32.vlgmr.msra.gmra.mxu0 %vm143_vm1, %v4999_v13 }
0x116e   :  { %v5078_v47 = vpop.trf.xlu0 }
0x116f   :  { %6101 = vmatmul.msk.f32.vlgmr.msra.gmra.mxu2 %vm143_vm1, %v5078_v47  ;;  %6099 = vmatmul.msk.f32.vlgmr.msra.gmra.mxu1 %vm143_vm1, %v5078_v47 }
0x1185   :  { %v8577_v22 = vpop.permute.xlu2 %3493 }
0x1186   :  { %v3537_v4 = vadd.f32 %v9216_v46, %v8577_v22  ;;  %v3577_v30 = vadd.f32 %v9217_v19, %v8577_v22  ;;  %v3617_v35 = vadd.f32 %v9218_v52, %v8577_v22  ;;  %v3517_v39 = vadd.f32 %v9219_v0, %v8577_v22 }
0x1187   :  { %v3557_v12 = vadd.f32 %v9220_v15, %v8577_v22  ;;  %v3597_v1 = vadd.f32 %v9221_v48, %v8577_v22 }
0x1188   :  { %v3625_v62 = vrot.slane %v3537_v4, 4  ;;  %v3626_v44 = vrot.slane %v3577_v30, 4  ;;  %v3627_v57 = vrot.slane %v3617_v35, 4 }
0x118a   :  { %v3628_v26 = vsel %vm156_vm0, %v3517_v39, %v3625_v62  ;;  %v3629_v55 = vsel %vm156_vm0, %v3557_v12, %v3626_v44  ;;  %v3630_v61 = vsel %vm156_vm0, %v3597_v1, %v3627_v57 }
0x118b   :  { %3634 = vst [vmem:[%s8825_s6] sm:$0xff] %v3628_v26 }
0x118c   :  { %3635 = vst [vmem:[%s8825_s6 + $0x8] sm:$0xff] %v3629_v55 }
0x118d   :  { %v2644_v29 = vpop.permute.xlu2 %2643  ;;  %3636 = vst [vmem:[%s8825_s6 + $0x10] sm:$0xff] %v3630_v61 }
0x1190   :  { %v4789_v2 = vpop.permute.xlu1 %4788 }
0x1191   :  { %v4799_v36 = vsel %vm781_vm2, %v8542_v50, %v4789_v2  ;;  %v6356_v50 = vld [vmem:[%s8821_s2 + $0x120] sm:$0xff] }
0x1195   :  { %v4793_v11 = vpop.permute.xlu2 %4792 }
0x1196   :  { %v4800_v32 = vsel %vm2651_vm6, %v4799_v36, %v4793_v11 }
0x1198   :  { %v2648_v28 = vpop.permute.xlu1 %2647 }
0x119d   :  { %v4797_v25 = vpop.permute.xlu2 %4796 }
0x119e   :  { %v4801_v45 = vsel %vm2653_vm7, %v4800_v32, %v4797_v25 }
0x119f   :  { %6083 = vst [vmem:[%s8826_s3 + $0x4] sm:$0xf] %v4801_v45 }
0x11aa   :  { %v2640_v37 = vpop.permute.xlu0 %2639 }
0x11ab   :  { %v2650_v9 = vsel %vm781_vm2, %v9222_v53, %v2640_v37 }
0x11ac   :  { %v2652_v41 = vsel %vm2651_vm6, %v2650_v9, %v2644_v29 }
0x11ad   :  { %v2654_v7 = vsel %vm2653_vm7, %v2652_v41, %v2648_v28 }
0x11ae   :  { %2655 = vst [vmem:[%s8826_s3] sm:$0xf] %v2654_v7 }
0x11d9   :  { %v4957_v43 = vpop.f32.mrf.mxu1 }
0x11da   :  { %6104 = vmatpush.msk.msra.mxu3 %vm3005_vm3, %v4957_v43 }
0x11db   :  { %6105 = vmatmul.msk.f32.vlgmr.msra.gmra.mxu3 %vm3015_vm4, %v6356_v50 }
0x11df   :  { %v4977_v17 = vpop.f32.mrf.mxu2 }
0x11e0   :  { %6109 = vmatpush.msk.msrb.mxu0 %vm3005_vm3, %v4977_v17  ;;  %v5147_v58 = vrot.slane %v4977_v17, 6 }
0x11e1   :  { %6110 = vmatmul.msk.f32.vlgmr.msrb.gmra.mxu0 %vm3015_vm4, %v6356_v50 }
0x11e2   :  { %v5151_v56 = vsel %vm3005_vm3, %v4957_v43, %v5147_v58 }
0x11e3   :  { %6106 = vmatmul.msk.f32.gmra.mxu3 %vm3015_vm4, %v6357_v51 }
0x11e6   :  { %v5059_v20 = vpop.f32.mrf.mxu0 }
0x11e7   :  { %6119 = vmatpush.msk.msrb.mxu2 %vm3005_vm3, %v5059_v20  ;;  %v5149_v8 = vrot.slane %v5059_v20, 2 }
0x11e8   :  { %6120 = vmatmul.msk.f32.vlgmr.msrb.gmra.mxu2 %vm3015_vm4, %v6356_v50 }
0x11e9   :  { %6111 = vmatmul.msk.f32.gmra.mxu0 %vm3015_vm4, %v6357_v51  ;;  %6139 = vmatpush.msk.msra.mxu2 %vm156_vm0, %v5352_v54 }
0x11eb   :  { %6107 = vmatmul.msk.f32.gmra.mxu3 %vm3015_vm4, %v6358_v3  ;;  %6159 = vmatpush.msk.msrb.mxu2 %vm156_vm0, %v5356_v10 }
0x11ec   :  { %v5039_v24 = vpop.f32.mrf.mxu3  ;;  %v5118_v33 = vpop.f32.mrf.mxu1 }
0x11ed   :  { %v5148_v27 = vrot.slane %v5039_v24, 4  ;;  %6114 = vmatpush.msk.msrb.mxu1 %vm3005_vm3, %v5039_v24  ;;  %6124 = vmatpush.msk.msrb.mxu3 %vm3005_vm3, %v5118_v33 }
0x11ee   :  { %6115 = vmatmul.msk.f32.vlgmr.msrb.gmra.mxu1 %vm3015_vm4, %v6356_v50 }
0x11ef   :  { %v5152_v6 = vsel %vm3007_vm5, %v5148_v27, %v5149_v8  ;;  %6134 = vmatpush.msk.msra.mxu1 %vm156_vm0, %v5351_v5  ;;  %6144 = vmatpush.msk.msra.mxu3 %vm156_vm0, %v5353_v18  ;;  %v9224_v5 = vld [vmem:[#allocation9_spill] sm:$0xff]  ;;  %v9226_v18 = vld [vmem:[#allocation34_spill] sm:$0xff] }
0x11f0   :  { %v5153_v34 = vsel %vm156_vm0, %v5151_v56, %v5152_v6  ;;  %6121 = vmatmul.msk.f32.gmra.mxu2 %vm3015_vm4, %v6357_v51 }
0x11f1   :  { %6102 = vst [vmem:[%s8824_s5 + $0xc] sm:$0xff] %v5153_v34  ;;  %6112 = vmatmul.msk.f32.gmra.mxu0 %vm3015_vm4, %v6358_v3  ;;  %6154 = vmatpush.msk.msrb.mxu1 %vm156_vm0, %v5355_v38  ;;  %v9225_v34 = vld [vmem:[#allocation23_spill] sm:$0xff] }
0x11f2   :  { %v5138_v42 = vpop.f32.mrf.mxu2 }
0x11f3   :  { %6108 = vmatmul.msk.f32.gmra.mxu3 %vm3015_vm4, %v6359_v40  ;;  %v5150_v60 = vrot.slane %v5138_v42, 6  ;;  %6129 = vmatpush.msk.msra.mxu0 %vm3005_vm3, %v5138_v42 }
0x11f5   :  { %v5154_v49 = vsel %vm3005_vm3, %v5118_v33, %v5150_v60  ;;  %6149 = vmatpush.msk.msrb.mxu0 %vm156_vm0, %v5354_v23 }
0x11f6   :  { %6116 = vmatmul.msk.f32.gmra.mxu1 %vm3015_vm4, %v6357_v51  ;;  %6103 = vst [vmem:[%s8824_s5 + $0x14] sm:$0xf] %v5154_v49 }
0x11f8   :  { %6122 = vmatmul.msk.f32.gmra.mxu2 %vm3015_vm4, %v6358_v3 }
0x11f9   :  { %6113 = vmatmul.msk.f32.gmra.mxu0 %vm3015_vm4, %v6359_v40 }
0x11fb   :  { %6125 = vmatmul.msk.f32.vlgmr.msrb.gmra.mxu3 %vm3015_vm4, %v6356_v50 }
0x11fe   :  { %6117 = vmatmul.msk.f32.gmra.mxu1 %vm3015_vm4, %v6358_v3 }
0x1200   :  { %6123 = vmatmul.msk.f32.gmra.mxu2 %vm3015_vm4, %v6359_v40 }
0x1201   :  { %6130 = vmatmul.msk.f32.vlgmr.msra.gmra.mxu0 %vm3015_vm4, %v6356_v50 }
0x1203   :  { %6126 = vmatmul.msk.f32.gmra.mxu3 %vm3015_vm4, %v6357_v51 }
0x1206   :  { %6118 = vmatmul.msk.f32.gmra.mxu1 %vm3015_vm4, %v6359_v40 }
0x1208   :  { %6140 = vmatmul.msk.f32.vlgmr.msra.gmra.mxu2 %vm143_vm1, %v6360_v16 }
0x1209   :  { %6131 = vmatmul.msk.f32.gmra.mxu0 %vm3015_vm4, %v6357_v51 }
0x120b   :  { %6127 = vmatmul.msk.f32.gmra.mxu3 %vm3015_vm4, %v6358_v3 }
0x120e   :  { %6135 = vmatmul.msk.f32.vlgmr.msra.gmra.mxu1 %vm143_vm1, %v6360_v16 }
0x1210   :  { %6141 = vmatmul.msk.f32.gmra.mxu2 %vm143_vm1, %v6361_v63 }
0x1211   :  { %6132 = vmatmul.msk.f32.gmra.mxu0 %vm3015_vm4, %v6358_v3  ;;  %v9223_v3 = vld [vmem:[#allocation6_spill] sm:$0xff] }
0x1213   :  { %6128 = vmatmul.msk.f32.gmra.mxu3 %vm3015_vm4, %v6359_v40 }
0x1216   :  { %6136 = vmatmul.msk.f32.gmra.mxu1 %vm143_vm1, %v6361_v63 }
0x1218   :  { %6142 = vmatmul.msk.f32.gmra.mxu2 %vm143_vm1, %v6362_v31 }
0x1219   :  { %6133 = vmatmul.msk.f32.gmra.mxu0 %vm3015_vm4, %v6359_v40 }
0x121b   :  { %6145 = vmatmul.msk.f32.vlgmr.msra.gmra.mxu3 %vm143_vm1, %v6360_v16 }
0x121e   :  { %6137 = vmatmul.msk.f32.gmra.mxu1 %vm143_vm1, %v6362_v31 }
0x1220   :  { %6143 = vmatmul.msk.f32.gmra.mxu2 %vm143_vm1, %v6363_v21 }
0x1221   :  { %6150 = vmatmul.msk.f32.vlgmr.msrb.gmra.mxu0 %vm143_vm1, %v6360_v16 }
0x1223   :  { %6146 = vmatmul.msk.f32.gmra.mxu3 %vm143_vm1, %v6361_v63 }
0x1226   :  { %6138 = vmatmul.msk.f32.gmra.mxu1 %vm143_vm1, %v6363_v21 }
0x1228   :  { %6160 = vmatmul.msk.f32.vlgmr.msrb.gmra.mxu2 %vm143_vm1, %v6360_v16 }
0x1229   :  { %6151 = vmatmul.msk.f32.gmra.mxu0 %vm143_vm1, %v6361_v63 }
0x122b   :  { %6147 = vmatmul.msk.f32.gmra.mxu3 %vm143_vm1, %v6362_v31 }
0x122e   :  { %6155 = vmatmul.msk.f32.vlgmr.msrb.gmra.mxu1 %vm143_vm1, %v6360_v16 }
0x1230   :  { %6161 = vmatmul.msk.f32.gmra.mxu2 %vm143_vm1, %v6361_v63 }
0x1231   :  { %6152 = vmatmul.msk.f32.gmra.mxu0 %vm143_vm1, %v6362_v31 }
0x1233   :  { %6148 = vmatmul.msk.f32.gmra.mxu3 %vm143_vm1, %v6363_v21 }
0x1236   :  { %6156 = vmatmul.msk.f32.gmra.mxu1 %vm143_vm1, %v6361_v63 }
0x1238   :  { %6162 = vmatmul.msk.f32.gmra.mxu2 %vm143_vm1, %v6362_v31 }
0x1239   :  { %6153 = vmatmul.msk.f32.gmra.mxu0 %vm143_vm1, %v6363_v21 }
0x123e   :  { %6157 = vmatmul.msk.f32.gmra.mxu1 %vm143_vm1, %v6362_v31 }
0x1240   :  { %6163 = vmatmul.msk.f32.gmra.mxu2 %vm143_vm1, %v6363_v21 }
0x1246   :  { %6158 = vmatmul.msk.f32.gmra.mxu1 %vm143_vm1, %v6363_v21 }
0x125e   :  { %v5189_v59 = vpop.f32.mrf.mxu3  ;;  %v5218_v14 = vpop.f32.mrf.mxu0 }
0x1266   :  { %v5192_v13 = vpop.f32.mrf.mxu3  ;;  %v5221_v47 = vpop.f32.mrf.mxu0 }
0x126b   :  { %v8707_v46 = vpop.f32.mrf.mxu1  ;;  %v8709_v4 = vpop.f32.mrf.mxu2 }
0x126e   :  { %v5195_v19 = vpop.f32.mrf.mxu3  ;;  %v5224_v30 = vpop.f32.mrf.mxu0 }
0x1273   :  { %v8711_v52 = vpop.f32.mrf.mxu1  ;;  %v8713_v35 = vpop.f32.mrf.mxu2 }
0x1276   :  { %v5198_v0 = vpop.f32.mrf.mxu3  ;;  %v5227_v39 = vpop.f32.mrf.mxu0 }
0x127b   :  { %v8715_v15 = vpop.f32.mrf.mxu1  ;;  %v8717_v12 = vpop.f32.mrf.mxu2 }
0x127e   :  { %v8719_v62 = vpop.f32.mrf.mxu3  ;;  %v8721_v44 = vpop.f32.mrf.mxu0 }
0x1283   :  { %v8723_v48 = vpop.f32.mrf.mxu1  ;;  %v8725_v1 = vpop.f32.mrf.mxu2 }
0x1286   :  { %v8727_v57 = vpop.f32.mrf.mxu3  ;;  %v8729_v26 = vpop.f32.mrf.mxu0 }
0x128b   :  { %v5386_v55 = vpop.f32.mrf.mxu1  ;;  %v5415_v61 = vpop.f32.mrf.mxu2 }
0x128c   :  { %v5387_v54 = vadd.f32 %v5386_v55, %v5189_v59  ;;  %v5416_v58 = vadd.f32 %v5415_v61, %v5218_v14 }
0x128e   :  { %v8731_v29 = vpop.f32.mrf.mxu3  ;;  %v8733_v11 = vpop.f32.mrf.mxu0  ;;  %v5543_v23 = vadd.f32 %v5387_v54, %v9226_v18  ;;  %v5544_v10 = vadd.f32 %v5416_v58, %v9226_v18 }
0x1290   :  { %v5567_v14 = vmax.f32 %v5543_v23, 0.0 }
0x1293   :  { %v5389_v2 = vpop.f32.mrf.mxu1  ;;  %v5418_v36 = vpop.f32.mrf.mxu2 }
0x1294   :  { %v5390_v50 = vadd.f32 %v5389_v2, %v5192_v13  ;;  %v5419_v17 = vadd.f32 %v5418_v36, %v5221_v47  ;;  %v5568_v13 = vmax.f32 %v5544_v10, 0.0 }
0x1296   :  { %v8735_v32 = vpop.f32.mrf.mxu3  ;;  %v8737_v25 = vpop.f32.mrf.mxu0  ;;  %v5549_v42 = vadd.f32 %v5390_v50, %v9225_v34  ;;  %v5550_v40 = vadd.f32 %v5419_v17, %v9225_v34 }
0x1298   :  { %v5573_v21 = vmax.f32 %v5549_v42, 0.0  ;;  %v5574_v59 = vmax.f32 %v5550_v40, 0.0 }
0x129b   :  { %v5392_v45 = vpop.f32.mrf.mxu1  ;;  %v5421_v37 = vpop.f32.mrf.mxu2 }
0x129c   :  { %v5393_v28 = vadd.f32 %v5392_v45, %v5195_v19  ;;  %v5422_v41 = vadd.f32 %v5421_v37, %v5224_v30  ;;  %v8754_v30 = vld [vmem:[%s8821_s2 + $0x140] sm:$0xf] }
0x129e   :  { %v5444_v53 = vpop.f32.mrf.mxu3  ;;  %v5473_v9 = vpop.f32.mrf.mxu0  ;;  %v5555_v24 = vadd.f32 %v5393_v28, %v9223_v3  ;;  %v5556_v33 = vadd.f32 %v5422_v41, %v9223_v3 }
0x12a0   :  { %v5579_v38 = vmax.f32 %v5555_v24, 0.0  ;;  %v5580_v16 = vmax.f32 %v5556_v33, 0.0 }
0x12a3   :  { %v5395_v7 = vpop.f32.mrf.mxu1  ;;  %v5424_v43 = vpop.f32.mrf.mxu2 }
0x12a4   :  { %v5396_v51 = vadd.f32 %v5395_v7, %v5198_v0  ;;  %v5425_v20 = vadd.f32 %v5424_v43, %v5227_v39  ;;  %v5445_v7 = vadd.f32 %v5444_v53, %v8707_v46  ;;  %v5474_v43 = vadd.f32 %v5473_v9, %v8709_v4 }
0x12a6   :  { %v5561_v8 = vadd.f32 %v5396_v51, %v9224_v5  ;;  %v5562_v27 = vadd.f32 %v5425_v20, %v9224_v5  ;;  %v5447_v56 = vpop.f32.mrf.mxu3  ;;  %v5476_v6 = vpop.f32.mrf.mxu0  ;;  %v5545_v46 = vadd.f32 %v5445_v7, %v9226_v18  ;;  %v5546_v4 = vadd.f32 %v5474_v43, %v9226_v18 }
0x12a7   :  { %v5448_v45 = vadd.f32 %v5447_v56, %v8711_v52  ;;  %v5477_v37 = vadd.f32 %v5476_v6, %v8713_v35 }
0x12a8   :  { %v5585_v60 = vmax.f32 %v5561_v8, 0.0  ;;  %v5586_v49 = vmax.f32 %v5562_v27, 0.0  ;;  %v5569_v24 = vmax.f32 %v5545_v46, 0.0  ;;  %v5570_v33 = vmax.f32 %v5546_v4, 0.0 }
0x12a9   :  { %v5551_v52 = vadd.f32 %v5448_v45, %v9225_v34  ;;  %v5552_v35 = vadd.f32 %v5477_v37, %v9225_v34 }
0x12aa   :  { %5603 = vmatpush.msrb.mxu3 %v5585_v60  ;;  %5623 = vmatpush.msra.mxu0 %v5586_v49 }
0x12ab   :  { %v8747_v63 = vpop.f32.mrf.mxu1  ;;  %v8749_v31 = vpop.f32.mrf.mxu2  ;;  %v5575_v54 = vmax.f32 %v5551_v52, 0.0  ;;  %v5576_v58 = vmax.f32 %v5552_v35, 0.0 }
0x12ac   :  { %5604 = vmatpush.msrb.mxu3 %v5579_v38  ;;  %5624 = vmatpush.msra.mxu0 %v5580_v16 }
0x12ae   :  { %v5450_v47 = vpop.f32.mrf.mxu3  ;;  %v5479_v19 = vpop.f32.mrf.mxu0  ;;  %5605 = vmatpush.msrb.mxu3 %v5573_v21  ;;  %5625 = vmatpush.msra.mxu0 %v5574_v59 }
0x12af   :  { %v5451_v55 = vadd.f32 %v5450_v47, %v8715_v15  ;;  %v5480_v61 = vadd.f32 %v5479_v19, %v8717_v12 }
0x12b0   :  { %5606 = vmatpush.msrb.mxu3 %v5567_v14  ;;  %5626 = vmatpush.msra.mxu0 %v5568_v13 }
0x12b1   :  { %6164 = vmatmul.msk.f32.vlgmr.msrb.gmra.mxu3 %vm781_vm2, %v8754_v30  ;;  %6165 = vmatmul.msk.f32.vlgmr.msra.gmra.mxu0 %vm781_vm2, %v8754_v30  ;;  %v5557_v50 = vadd.f32 %v5451_v55, %v9223_v3  ;;  %v5558_v15 = vadd.f32 %v5480_v61, %v9223_v3 }
0x12b3   :  { %v5505_v0 = vpop.f32.mrf.mxu1  ;;  %v5534_v39 = vpop.f32.mrf.mxu2  ;;  %v5581_v53 = vmax.f32 %v5557_v50, 0.0  ;;  %v5582_v9 = vmax.f32 %v5558_v15, 0.0 }
0x12b4   :  { %v5506_v56 = vadd.f32 %v5505_v0, %v8727_v57  ;;  %v5535_v40 = vadd.f32 %v5534_v39, %v8729_v26  ;;  %v5532_v57 = vadd.f32 %v8749_v31, %v8721_v44 }
0x12b6   :  { %v5453_v2 = vpop.f32.mrf.mxu3  ;;  %v5482_v36 = vpop.f32.mrf.mxu0  ;;  %v5553_v23 = vadd.f32 %v5506_v56, %v9225_v34  ;;  %v5554_v10 = vadd.f32 %v5535_v40, %v9225_v34 }
0x12b7   :  { %v5454_v28 = vadd.f32 %v5453_v2, %v8723_v48  ;;  %v5483_v41 = vadd.f32 %v5482_v36, %v8725_v1 }
0x12b8   :  { %v5577_v31 = vmax.f32 %v5553_v23, 0.0 }
0x12b9   :  { %v5563_v12 = vadd.f32 %v5454_v28, %v9224_v5  ;;  %v5564_v17 = vadd.f32 %v5483_v41, %v9224_v5 }
0x12bb   :  { %v5587_v51 = vmax.f32 %v5563_v12, 0.0  ;;  %v5588_v48 = vmax.f32 %v5564_v17, 0.0  ;;  %v5508_v20 = vpop.f32.mrf.mxu1  ;;  %v5537_v1 = vpop.f32.mrf.mxu2 }
0x12bc   :  { %v5509_v8 = vadd.f32 %v5508_v20, %v8731_v29  ;;  %v5538_v27 = vadd.f32 %v5537_v1, %v8733_v11  ;;  %v5503_v29 = vadd.f32 %v8747_v63, %v8719_v62  ;;  %v5548_v62 = vadd.f32 %v5532_v57, %v9226_v18 }
0x12bd   :  { %5643 = vmatpush.msra.mxu1 %v5587_v51  ;;  %5663 = vmatpush.msra.mxu2 %v5588_v48 }
0x12be   :  { %v5559_v11 = vadd.f32 %v5509_v8, %v9223_v3  ;;  %v5560_v26 = vadd.f32 %v5538_v27, %v9223_v3  ;;  %v5547_v21 = vadd.f32 %v5503_v29, %v9226_v18  ;;  %v5578_v3 = vmax.f32 %v5554_v10, 0.0 }
0x12bf   :  { %5644 = vmatpush.msra.mxu1 %v5581_v53  ;;  %5664 = vmatpush.msra.mxu2 %v5582_v9 }
0x12c0   :  { %v5583_v63 = vmax.f32 %v5559_v11, 0.0  ;;  %v5584_v44 = vmax.f32 %v5560_v26, 0.0  ;;  %v5571_v59 = vmax.f32 %v5547_v21, 0.0 }
0x12c1   :  { %5645 = vmatpush.msra.mxu1 %v5575_v54  ;;  %5665 = vmatpush.msra.mxu2 %v5576_v58 }
0x12c3   :  { %v5511_v6 = vpop.f32.mrf.mxu1  ;;  %v5540_v42 = vpop.f32.mrf.mxu2  ;;  %5646 = vmatpush.msra.mxu1 %v5569_v24  ;;  %5666 = vmatpush.msra.mxu2 %v5570_v33 }
0x12c4   :  { %v5512_v60 = vadd.f32 %v5511_v6, %v8735_v32  ;;  %v5541_v49 = vadd.f32 %v5540_v42, %v8737_v25  ;;  %6166 = vmatmul.msk.f32.vlgmr.msra.gmra.mxu1 %vm781_vm2, %v8754_v30  ;;  %6167 = vmatmul.msk.f32.vlgmr.msra.gmra.mxu2 %vm781_vm2, %v8754_v30 }
0x12c6   :  { %v5565_v32 = vadd.f32 %v5512_v60, %v9224_v5  ;;  %v5566_v25 = vadd.f32 %v5541_v49, %v9224_v5  ;;  %v5572_v5 = vmax.f32 %v5548_v62, 0.0 }
0x12c8   :  { %v5589_v38 = vmax.f32 %v5565_v32, 0.0  ;;  %v5590_v16 = vmax.f32 %v5566_v25, 0.0 }
0x12ca   :  { %5683 = vmatpush.msra.mxu3 %v5589_v38  ;;  %5703 = vmatpush.msrb.mxu0 %v5590_v16 }
0x12cc   :  { %5684 = vmatpush.msra.mxu3 %v5583_v63  ;;  %5704 = vmatpush.msrb.mxu0 %v5584_v44 }
0x12ce   :  { %5685 = vmatpush.msra.mxu3 %v5577_v31  ;;  %5705 = vmatpush.msrb.mxu0 %v5578_v3 }
0x12d0   :  { %5686 = vmatpush.msra.mxu3 %v5571_v59  ;;  %5706 = vmatpush.msrb.mxu0 %v5572_v5 }
0x12d1   :  { %6168 = vmatmul.msk.f32.vlgmr.msra.gmra.mxu3 %vm781_vm2, %v8754_v30  ;;  %6169 = vmatmul.msk.f32.vlgmr.msrb.gmra.mxu0 %vm781_vm2, %v8754_v30 }
0x132e   :  { %v5628_v34 = vpop.f32.mrf.mxu0 }
0x132f   :  { %v5629_v18 = vadd.f32 %v5628_v34, %v8577_v22 }
0x1331   :  { %v5717_v13 = vrot.slane %v5629_v18, 4 }
0x1334   :  { %v5608_v14 = vpop.f32.mrf.mxu3 }
0x1335   :  { %v5609_v47 = vadd.f32 %v5608_v14, %v8577_v22 }
0x1337   :  { %v5720_v19 = vsel %vm156_vm0, %v5609_v47, %v5717_v13 }
0x1338   :  { %6170 = vst [vmem:[%s8825_s6 + $0x18] sm:$0xff] %v5720_v19 }
0x1341   :  { %v5648_v0 = vpop.f32.mrf.mxu1 }
0x1342   :  { %v5649_v61 = vadd.f32 %v5648_v0, %v8577_v22 }
0x1347   :  { %v5668_v39 = vpop.f32.mrf.mxu2 }
0x1348   :  { %v5669_v55 = vadd.f32 %v5668_v39, %v8577_v22 }
0x134a   :  { %v5718_v30 = vrot.slane %v5669_v55, 4 }
0x134c   :  { %v5721_v2 = vsel %vm156_vm0, %v5649_v61, %v5718_v30 }
0x134d   :  { %6171 = vst [vmem:[%s8825_s6 + $0x20] sm:$0xff] %v5721_v2 }
0x134e   :  { %v5708_v36 = vpop.f32.mrf.mxu0 }
0x134f   :  { %v5709_v45 = vadd.f32 %v5708_v36, %v8577_v22 }
0x1351   :  { %v5719_v28 = vrot.slane %v5709_v45, 4 }
0x1354   :  { %v5688_v37 = vpop.f32.mrf.mxu3 }
0x1355   :  { %v5689_v41 = vadd.f32 %v5688_v37, %v8577_v22 }
0x1357   :  { %v5722_v7 = vsel %vm156_vm0, %v5689_v41, %v5719_v28 }
0x1358   :  { %6172 = vst [vmem:[%s8825_s6 + $0x28] sm:$0xff] %v5722_v7 }

</bundles_post_ra>
